<compile_context>
chip_gen: v7x
topology: tpu7x:2x2x1
jax: 0.10.0
libtpu: 0.0.40
codegen_flags: <defaults>
</compile_context>

<pallas_src>
import math
import functools

import jax
import jax.numpy as jnp
import jax.scipy.linalg as jsl
from jax.experimental import pallas as pl
from jax.experimental.pallas import tpu as pltpu


# ---------------------------------------------------------------------------
# Fused Pallas kernel (channels on sublanes, points on lanes)
# ---------------------------------------------------------------------------

def _fused_kernel(grid_ref,
                  # packed [wdecoder | grid_num decoders] block-diag MLP
                  pw1, pb1, pw2, pb2, pw3, pb3, pw4, pb4,
                  # inverse PointGenCon decoder (f folded into ib1)
                  iw1, ib1, iw2, ib2, iw3, ib3, iw4, ib4,
                  # outputs
                  y_ref, inv_ref, bw_ref, *, grid_num):
    G = grid_num
    x = grid_ref[...]                                        # (gd, TN)

    def layer(w, b, h, relu=True):
        z = jnp.dot(w[...], h, preferred_element_type=jnp.float32) + b[...]
        return jnp.maximum(z, 0.0) if relu else z

    # --- packed wdecoder + G decoders (block-diagonal weights) --------------
    h = layer(pw1, pb1, x)                                   # ((1+G)*c1, TN)
    h = layer(pw2, pb2, h)                                   # ((1+G)*c2, TN)
    h = layer(pw3, pb3, h)                                   # ((1+G)*c3, TN)
    z = layer(pw4, pb4, h, relu=False)                       # (G + 3G, TN)

    zw = z[:G]                                               # (G, TN)  blend logits
    zd = jnp.tanh(z[G:])                                     # (3G, TN) per-decoder xyz

    # --- channel softmax over the G sublane rows (explicit row chain) -------
    m = zw[0:1]
    for gi in range(1, G):
        m = jnp.maximum(m, zw[gi:gi + 1])
    e = jnp.exp(zw - m)                                      # (G, TN)
    s = e[0:1]
    for gi in range(1, G):
        s = s + e[gi:gi + 1]
    r = pl.reciprocal(s, approx=True)
    r = r * (2.0 - s * r)                                    # one Newton step
    w = e * r                                                # (G, TN)
    bw_ref[...] = w.astype(bw_ref.dtype)

    # --- blend the G decoder outputs with the softmax weights ---------------
    acc = zd[0:3] * w[0:1]
    for gi in range(1, G):
        acc = acc + zd[3 * gi:3 * gi + 3] * w[gi:gi + 1]
    y_ref[...] = acc.astype(y_ref.dtype)                     # (3, TN)

    # --- inverse decoder on the blended points (f folded into ib1) ----------
    h = layer(iw1, ib1, acc)
    h = layer(iw2, ib2, h)
    h = layer(iw3, ib3, h)
    zi = layer(iw4, ib4, h, relu=False)
    inv_ref[...] = jnp.tanh(zi).astype(inv_ref.dtype)        # (3, TN)


# ---------------------------------------------------------------------------
# Tiling choice (generation-aware compromise, VMEM-bounded cap)
# ---------------------------------------------------------------------------

_TILE_CAP = 2048   # ~3 live ((1+G)*66, TN) f32 activations stay << any VMEM limit


def _choose_tiling(n, batch):
    n128 = -(-n // 128) * 128
    tile = min(_TILE_CAP, n128)
    # Prefer a single big tile (1-TC v5e/v6e pay ~0.35us per extra step), but
    # keep >=2 grid steps when each step is still >=1024 points so both v7x
    # TensorCores get meaningful work.
    if batch * (n128 // tile) < 2 and tile >= 2048:
        tile = 1024
    n_pad = -(-n // tile) * tile
    return tile, n_pad


# ---------------------------------------------------------------------------
# Wrapper
# ---------------------------------------------------------------------------

def blended_atlasnet_forward(params, x, grid):
    """x: (B,3,N) point cloud (or image; unused by the OPT encoder);
       grid: (B, grid_dim, N). Returns dict matching the PyTorch module."""
    if x.ndim == 4:
        x = x[:, :3, :, :]          # mirrors the x.dim()==4 branch (x unused in OPT)

    f = params["f"]                                    # (1, K) OptEncoder output
    B, gd, N = grid.shape
    tile_n, N_pad = _choose_tiling(N, B)
    grid_p = grid if N_pad == N else jnp.pad(grid, ((0, 0), (0, 0), (0, N_pad - N)))

    # --- build packed / transposed weights at trace time --------------------
    (ww1, wb1), (ww2, wb2), (ww3, wb3), (ww4, wb4) = params["wdecoder"]
    (dw1, db1), (dw2, db2), (dw3, db3), (dw4, db4) = params["decoders"]
    (iw1, ib1), (iw2, ib2), (iw3, ib3), (iw4, ib4) = params["inv_decoder"]
    G = dw1.shape[0]

    # layer 1: keep only the grid rows; fold f into the bias (exact reorder)
    w1_blocks = [ww1[:gd].T] + [dw1[g, :gd].T for g in range(G)]
    b1_blocks = [(wb1 + f @ ww1[gd:]).T] + [(db1[g] + f @ dw1[g, gd:]).T for g in range(G)]
    pw1 = jnp.concatenate(w1_blocks, axis=0)           # ((1+G)*c1, gd)
    pb1 = jnp.concatenate(b1_blocks, axis=0)           # ((1+G)*c1, 1)

    def pack(wd_w, wd_b, de_w, de_b):
        w = jsl.block_diag(wd_w.T, *[de_w[g].T for g in range(G)])
        b = jnp.concatenate([wd_b.T] + [de_b[g].T for g in range(G)], axis=0)
        return w, b

    pw2, pb2 = pack(ww2, wb2, dw2, db2)                # ((1+G)*c2, (1+G)*c1)
    pw3, pb3 = pack(ww3, wb3, dw3, db3)
    pw4, pb4 = pack(ww4, wb4, dw4, db4)                # (G+3G, (1+G)*c3)

    piw1 = iw1[:3].T                                   # (c1i, 3)
    pib1 = (ib1 + f @ iw1[3:]).T                       # (c1i, 1)
    inv_weights = [piw1, pib1, iw2.T, ib2.T, iw3.T, ib3.T, iw4.T, ib4.T]

    weights = [pw1, pb1, pw2, pb2, pw3, pb3, pw4, pb4] + inv_weights

    def const_spec(a):
        nd = a.ndim      # fetched once, stays VMEM-resident across grid steps
        return pl.BlockSpec(a.shape, lambda b, n, _nd=nd: (0,) * _nd)

    out_shapes = (
        jax.ShapeDtypeStruct((B, 3, N_pad), jnp.float32),   # yo   (channels-first)
        jax.ShapeDtypeStruct((B, 3, N_pad), jnp.float32),   # invo
        jax.ShapeDtypeStruct((B, G, N_pad), jnp.float32),   # blend weights
    )
    out_specs = (
        pl.BlockSpec((None, 3, tile_n), lambda b, n: (b, 0, n)),
        pl.BlockSpec((None, 3, tile_n), lambda b, n: (b, 0, n)),
        pl.BlockSpec((None, G, tile_n), lambda b, n: (b, 0, n)),
    )

    yo_p, invo_p, w_p = pl.pallas_call(
        functools.partial(_fused_kernel, grid_num=G),
        out_shape=out_shapes,
        grid=(B, N_pad // tile_n),
        in_specs=[pl.BlockSpec((None, gd, tile_n), lambda b, n: (b, 0, n))]
                 + [const_spec(a) for a in weights],
        out_specs=out_specs,
        compiler_params=pltpu.CompilerParams(
            dimension_semantics=("parallel", "parallel")),
    )(grid_p, *weights)

    # Layout plumbing back to the module's return layout (outside the kernel).
    yo = jnp.transpose(yo_p[:, :, :N], (0, 2, 1))           # (B, N, 3)
    invo = jnp.transpose(invo_p[:, :, :N], (0, 2, 1))       # (B, N, 3)
    blend_w = w_p[:, :, :N][:, :, None, :]                  # (B, G, 1, N)
    grid_x = jnp.transpose(grid, (0, 2, 1))                 # (B, N, gd)

    return {"y": yo, "inv_x": invo, "grid_x": grid_x, "blend_w": blend_w}


# ---------------------------------------------------------------------------
# Deterministic parameter init (matches module shapes; conv weights ~ N(0,0.02))
# ---------------------------------------------------------------------------

def _init_mlp4(key, c_in, odim, stack=None):
    c1, c2, c3 = c_in, c_in // 2, c_in // 4
    dims = [(c_in, c1), (c1, c2), (c2, c3), (c3, odim)]
    layers = []
    for ci, co in dims:
        key, kw, kb = jax.random.split(key, 3)
        wshape = (ci, co) if stack is None else (stack, ci, co)
        bshape = (1, co) if stack is None else (stack, 1, co)
        w = 0.02 * jax.random.normal(kw, wshape, jnp.float32)
        bound = 1.0 / math.sqrt(ci)
        b = jax.random.uniform(kb, bshape, jnp.float32, -bound, bound)
        layers.append((w, b))
    return key, tuple(layers)


def init_params(key, bottleneck, grid_dim, grid_num):
    key, kf = jax.random.split(key)
    f = math.sqrt(2.0 / bottleneck) * jax.random.normal(kf, (1, bottleneck), jnp.float32)
    key, wdec = _init_mlp4(key, grid_dim + bottleneck, grid_num)
    key, decs = _init_mlp4(key, grid_dim + bottleneck, 3, stack=grid_num)
    key, invd = _init_mlp4(key, 3 + bottleneck, 3)
    return {"f": f, "wdecoder": wdec, "decoders": decs, "inv_decoder": invd}


# ---------------------------------------------------------------------------
# Pure-JAX reference (original concat formulation: validates fusion, f-folding,
# layout flip and block-diagonal packing)
# ---------------------------------------------------------------------------

def _mlp4_ref(x, params, final_act):
    (w1, b1), (w2, b2), (w3, b3), (w4, b4) = params
    h = jax.nn.relu(x @ w1 + b1)
    h = jax.nn.relu(h @ w2 + b2)
    h = jax.nn.relu(h @ w3 + b3)
    y = h @ w4 + b4
    if final_act == "tanh":
        return jnp.tanh(y)
    if final_act == "softmax":
        return jax.nn.softmax(y, axis=-1)
    return y


def forward_ref(params, x, grid):
    f = params["f"]
    B, K = f.shape
    N = grid.shape[2]
    grid_nc = jnp.transpose(grid, (0, 2, 1))
    expf = jnp.broadcast_to(f[:, None, :], (grid.shape[0], N, K))
    w_in = jnp.concatenate([grid_nc, expf], axis=-1)
    w = _mlp4_ref(w_in, params["wdecoder"], "softmax")
    (W1, B1), (W2, B2), (W3, B3), (W4, B4) = params["decoders"]
    yo = jnp.zeros((grid.shape[0], N, 3), jnp.float32)
    for g in range(W1.shape[0]):
        pg = ((W1[g], B1[g]), (W2[g], B2[g]), (W3[g], B3[g]), (W4[g], B4[g]))
        yo = yo + _mlp4_ref(w_in, pg, "tanh") * w[..., g:g + 1]
    invo = _mlp4_ref(jnp.concatenate([yo, expf], axis=-1), params["inv_decoder"], "tanh")
    return {"y": yo, "inv_x": invo, "grid_x": grid_nc,
            "blend_w": jnp.transpose(w, (0, 2, 1))[:, :, None, :]}


# ---------------------------------------------------------------------------
# Driver
# ---------------------------------------------------------------------------

if __name__ == "__main__":
    # Small hyperparameters consistent with the module (OPT mode => batch 1,
    # since the OptEncoder feature f has shape (1, bottleneck)).
    bottleneck = 64
    grid_dim = 2
    grid_num = 4
    pts_num = 400          # NOT a multiple of 128 -> exercises lane padding
    B = 1

    key = jax.random.PRNGKey(0)
    key, kp, kx, kg = jax.random.split(key, 4)
    params = init_params(kp, bottleneck, grid_dim, grid_num)

    # x is the raw input (ignored by the OPT encoder); grid is the 2nd input.
    x = jax.random.normal(kx, (B, 3, pts_num), jnp.float32)
    grid = jax.random.uniform(kg, (B, grid_dim, pts_num), jnp.float32)  # grid_dim!=3 -> uniform

    out = jax.jit(blended_atlasnet_forward)(params, x, grid)
    out = jax.block_until_ready(out)

    # Shape checks (match the PyTorch outputs after its transposes).
    assert out["y"].shape == (B, pts_num, 3)
    assert out["inv_x"].shape == (B, pts_num, 3)
    assert out["grid_x"].shape == (B, pts_num, grid_dim)
    assert out["blend_w"].shape == (B, grid_num, 1, pts_num)

    # Numerical check against a pure-JAX reference using the original
    # concat-based, per-decoder formulation (validates f-folding, the layout
    # flip and the block-diagonal decoder packing).
    ref = forward_ref(params, x, grid)
    for k in ("y", "inv_x", "grid_x", "blend_w"):
        assert jnp.allclose(out[k], ref[k], rtol=1e-3, atol=2e-5), k
    # Blend weights are a softmax over grid_num -> sum to ~1 (Newton-refined
    # EUP reciprocal keeps the residual ~1e-6).
    assert jnp.allclose(jnp.sum(out["blend_w"], axis=1), 1.0, atol=1e-4)

    print("KERNEL_OK")
</pallas_src>

<mosaic_0001>
module attributes {stable_mosaic.version = 11 : i64} {
  func.func @_fused_kernel(%arg0: i32, %arg1: i32, %arg2: memref<1x2x512xf32, #tpu.memory_space<vmem>>, %arg3: memref<330x2xf32, #tpu.memory_space<vmem>>, %arg4: memref<330x1xf32, #tpu.memory_space<vmem>>, %arg5: memref<165x330xf32, #tpu.memory_space<vmem>>, %arg6: memref<165x1xf32, #tpu.memory_space<vmem>>, %arg7: memref<80x165xf32, #tpu.memory_space<vmem>>, %arg8: memref<80x1xf32, #tpu.memory_space<vmem>>, %arg9: memref<16x80xf32, #tpu.memory_space<vmem>>, %arg10: memref<16x1xf32, #tpu.memory_space<vmem>>, %arg11: memref<67x3xf32, #tpu.memory_space<vmem>>, %arg12: memref<67x1xf32, #tpu.memory_space<vmem>>, %arg13: memref<33x67xf32, #tpu.memory_space<vmem>>, %arg14: memref<33x1xf32, #tpu.memory_space<vmem>>, %arg15: memref<16x33xf32, #tpu.memory_space<vmem>>, %arg16: memref<16x1xf32, #tpu.memory_space<vmem>>, %arg17: memref<3x16xf32, #tpu.memory_space<vmem>>, %arg18: memref<3x1xf32, #tpu.memory_space<vmem>>, %arg19: memref<1x3x512xf32, #tpu.memory_space<vmem>>, %arg20: memref<1x3x512xf32, #tpu.memory_space<vmem>>, %arg21: memref<1x4x512xf32, #tpu.memory_space<vmem>>) attributes {dimension_semantics = [#tpu.dimension_semantics<parallel>, #tpu.dimension_semantics<parallel>], iteration_bounds = array<i64: 1, 1>, scalar_prefetch = 0 : i64, scratch_operands = 0 : i64, tpu.core_type = #tpu.core_type<tc>, window_params = [{transform_indices = @transform_0, window_bounds = array<i64: 1, 2, 512>}, {pipeline_mode = #tpu.pipeline_mode<synchronous>, transform_indices = @transform_1, window_bounds = array<i64: 330, 2>}, {pipeline_mode = #tpu.pipeline_mode<synchronous>, transform_indices = @transform_2, window_bounds = array<i64: 330, 1>}, {pipeline_mode = #tpu.pipeline_mode<synchronous>, transform_indices = @transform_3, window_bounds = array<i64: 165, 330>}, {pipeline_mode = #tpu.pipeline_mode<synchronous>, transform_indices = @transform_4, window_bounds = array<i64: 165, 1>}, {pipeline_mode = #tpu.pipeline_mode<synchronous>, transform_indices = @transform_5, window_bounds = array<i64: 80, 165>}, {pipeline_mode = #tpu.pipeline_mode<synchronous>, transform_indices = @transform_6, window_bounds = array<i64: 80, 1>}, {pipeline_mode = #tpu.pipeline_mode<synchronous>, transform_indices = @transform_7, window_bounds = array<i64: 16, 80>}, {pipeline_mode = #tpu.pipeline_mode<synchronous>, transform_indices = @transform_8, window_bounds = array<i64: 16, 1>}, {pipeline_mode = #tpu.pipeline_mode<synchronous>, transform_indices = @transform_9, window_bounds = array<i64: 67, 3>}, {pipeline_mode = #tpu.pipeline_mode<synchronous>, transform_indices = @transform_10, window_bounds = array<i64: 67, 1>}, {pipeline_mode = #tpu.pipeline_mode<synchronous>, transform_indices = @transform_11, window_bounds = array<i64: 33, 67>}, {pipeline_mode = #tpu.pipeline_mode<synchronous>, transform_indices = @transform_12, window_bounds = array<i64: 33, 1>}, {pipeline_mode = #tpu.pipeline_mode<synchronous>, transform_indices = @transform_13, window_bounds = array<i64: 16, 33>}, {pipeline_mode = #tpu.pipeline_mode<synchronous>, transform_indices = @transform_14, window_bounds = array<i64: 16, 1>}, {pipeline_mode = #tpu.pipeline_mode<synchronous>, transform_indices = @transform_15, window_bounds = array<i64: 3, 16>}, {pipeline_mode = #tpu.pipeline_mode<synchronous>, transform_indices = @transform_16, window_bounds = array<i64: 3, 1>}, {transform_indices = @transform_17, window_bounds = array<i64: 1, 3, 512>}, {transform_indices = @transform_18, window_bounds = array<i64: 1, 3, 512>}, {transform_indices = @transform_19, window_bounds = array<i64: 1, 4, 512>}]} {
    %c0 = arith.constant 0 : index
    %c0_0 = arith.constant 0 : index
    %c0_1 = arith.constant 0 : index
    %0 = vector.load %arg2[%c0, %c0_0, %c0_1] : memref<1x2x512xf32, #tpu.memory_space<vmem>>, vector<1x2x512xf32>
    %1 = vector.shape_cast %0 : vector<1x2x512xf32> to vector<2x512xf32>
    %c0_2 = arith.constant 0 : index
    %c0_3 = arith.constant 0 : index
    %2 = vector.load %arg3[%c0_2, %c0_3] : memref<330x2xf32, #tpu.memory_space<vmem>>, vector<330x2xf32>
    %cst = arith.constant dense<0.000000e+00> : vector<330x512xf32>
    %3 = tpu.matmul %2, %1, %cst {dimension_numbers = #tpu.dot_dimension_numbers<[1], [0], [0], [1], [0, 0, 1, 1], [], []>} : vector<330x2xf32>, vector<2x512xf32>, vector<330x512xf32> -> vector<330x512xf32>
    %c0_4 = arith.constant 0 : index
    %c0_5 = arith.constant 0 : index
    %4 = vector.load %arg4[%c0_4, %c0_5] : memref<330x1xf32, #tpu.memory_space<vmem>>, vector<330x1xf32>
    %5 = vector.broadcast %4 : vector<330x1xf32> to vector<330x512xf32>
    %6 = arith.addf %3, %5 : vector<330x512xf32>
    %cst_6 = arith.constant 0.000000e+00 : f32
    %7 = vector.broadcast %cst_6 : f32 to vector<330x512xf32>
    %8 = arith.maximumf %6, %7 : vector<330x512xf32>
    %c0_7 = arith.constant 0 : index
    %c0_8 = arith.constant 0 : index
    %9 = vector.load %arg5[%c0_7, %c0_8] : memref<165x330xf32, #tpu.memory_space<vmem>>, vector<165x330xf32>
    %cst_9 = arith.constant dense<0.000000e+00> : vector<165x512xf32>
    %10 = tpu.matmul %9, %8, %cst_9 {dimension_numbers = #tpu.dot_dimension_numbers<[1], [0], [0], [1], [0, 0, 1, 1], [], []>} : vector<165x330xf32>, vector<330x512xf32>, vector<165x512xf32> -> vector<165x512xf32>
    %c0_10 = arith.constant 0 : index
    %c0_11 = arith.constant 0 : index
    %11 = vector.load %arg6[%c0_10, %c0_11] : memref<165x1xf32, #tpu.memory_space<vmem>>, vector<165x1xf32>
    %12 = vector.broadcast %11 : vector<165x1xf32> to vector<165x512xf32>
    %13 = arith.addf %10, %12 : vector<165x512xf32>
    %cst_12 = arith.constant 0.000000e+00 : f32
    %14 = vector.broadcast %cst_12 : f32 to vector<165x512xf32>
    %15 = arith.maximumf %13, %14 : vector<165x512xf32>
    %c0_13 = arith.constant 0 : index
    %c0_14 = arith.constant 0 : index
    %16 = vector.load %arg7[%c0_13, %c0_14] : memref<80x165xf32, #tpu.memory_space<vmem>>, vector<80x165xf32>
    %cst_15 = arith.constant dense<0.000000e+00> : vector<80x512xf32>
    %17 = tpu.matmul %16, %15, %cst_15 {dimension_numbers = #tpu.dot_dimension_numbers<[1], [0], [0], [1], [0, 0, 1, 1], [], []>} : vector<80x165xf32>, vector<165x512xf32>, vector<80x512xf32> -> vector<80x512xf32>
    %c0_16 = arith.constant 0 : index
    %c0_17 = arith.constant 0 : index
    %18 = vector.load %arg8[%c0_16, %c0_17] : memref<80x1xf32, #tpu.memory_space<vmem>>, vector<80x1xf32>
    %19 = vector.broadcast %18 : vector<80x1xf32> to vector<80x512xf32>
    %20 = arith.addf %17, %19 : vector<80x512xf32>
    %cst_18 = arith.constant 0.000000e+00 : f32
    %21 = vector.broadcast %cst_18 : f32 to vector<80x512xf32>
    %22 = arith.maximumf %20, %21 : vector<80x512xf32>
    %c0_19 = arith.constant 0 : index
    %c0_20 = arith.constant 0 : index
    %23 = vector.load %arg9[%c0_19, %c0_20] : memref<16x80xf32, #tpu.memory_space<vmem>>, vector<16x80xf32>
    %cst_21 = arith.constant dense<0.000000e+00> : vector<16x512xf32>
    %24 = tpu.matmul %23, %22, %cst_21 {dimension_numbers = #tpu.dot_dimension_numbers<[1], [0], [0], [1], [0, 0, 1, 1], [], []>} : vector<16x80xf32>, vector<80x512xf32>, vector<16x512xf32> -> vector<16x512xf32>
    %c0_22 = arith.constant 0 : index
    %c0_23 = arith.constant 0 : index
    %25 = vector.load %arg10[%c0_22, %c0_23] : memref<16x1xf32, #tpu.memory_space<vmem>>, vector<16x1xf32>
    %26 = vector.broadcast %25 : vector<16x1xf32> to vector<16x512xf32>
    %27 = arith.addf %24, %26 : vector<16x512xf32>
    %28 = vector.extract_strided_slice %27 {offsets = [0, 0], sizes = [4, 512], strides = [1, 1]} : vector<16x512xf32> to vector<4x512xf32>
    %29 = vector.extract_strided_slice %27 {offsets = [4, 0], sizes = [12, 512], strides = [1, 1]} : vector<16x512xf32> to vector<12x512xf32>
    %30 = math.tanh %29 : vector<12x512xf32>
    %31 = vector.extract_strided_slice %28 {offsets = [0, 0], sizes = [1, 512], strides = [1, 1]} : vector<4x512xf32> to vector<1x512xf32>
    %32 = vector.extract_strided_slice %28 {offsets = [1, 0], sizes = [1, 512], strides = [1, 1]} : vector<4x512xf32> to vector<1x512xf32>
    %33 = arith.maximumf %31, %32 : vector<1x512xf32>
    %34 = vector.extract_strided_slice %28 {offsets = [2, 0], sizes = [1, 512], strides = [1, 1]} : vector<4x512xf32> to vector<1x512xf32>
    %35 = arith.maximumf %33, %34 : vector<1x512xf32>
    %36 = vector.extract_strided_slice %28 {offsets = [3, 0], sizes = [1, 512], strides = [1, 1]} : vector<4x512xf32> to vector<1x512xf32>
    %37 = arith.maximumf %35, %36 : vector<1x512xf32>
    %38 = vector.broadcast %37 : vector<1x512xf32> to vector<4x512xf32>
    %39 = arith.subf %28, %38 : vector<4x512xf32>
    %40 = math.exp %39 : vector<4x512xf32>
    %41 = vector.extract_strided_slice %40 {offsets = [0, 0], sizes = [1, 512], strides = [1, 1]} : vector<4x512xf32> to vector<1x512xf32>
    %42 = vector.extract_strided_slice %40 {offsets = [1, 0], sizes = [1, 512], strides = [1, 1]} : vector<4x512xf32> to vector<1x512xf32>
    %43 = arith.addf %41, %42 : vector<1x512xf32>
    %44 = vector.extract_strided_slice %40 {offsets = [2, 0], sizes = [1, 512], strides = [1, 1]} : vector<4x512xf32> to vector<1x512xf32>
    %45 = arith.addf %43, %44 : vector<1x512xf32>
    %46 = vector.extract_strided_slice %40 {offsets = [3, 0], sizes = [1, 512], strides = [1, 1]} : vector<4x512xf32> to vector<1x512xf32>
    %47 = arith.addf %45, %46 : vector<1x512xf32>
    %48 = tpu.reciprocal %47 {approx = true} : vector<1x512xf32> -> vector<1x512xf32>
    %49 = arith.mulf %47, %48 : vector<1x512xf32>
    %cst_24 = arith.constant 2.000000e+00 : f32
    %50 = vector.broadcast %cst_24 : f32 to vector<1x512xf32>
    %51 = arith.subf %50, %49 : vector<1x512xf32>
    %52 = arith.mulf %48, %51 : vector<1x512xf32>
    %53 = vector.broadcast %52 : vector<1x512xf32> to vector<4x512xf32>
    %54 = arith.mulf %40, %53 : vector<4x512xf32>
    %c0_25 = arith.constant 0 : index
    %c0_26 = arith.constant 0 : index
    %c0_27 = arith.constant 0 : index
    %55 = vector.load %arg21[%c0_25, %c0_26, %c0_27] : memref<1x4x512xf32, #tpu.memory_space<vmem>>, vector<1x4x512xf32>
    %56 = vector.shape_cast %55 : vector<1x4x512xf32> to vector<4x512xf32>
    %57 = vector.shape_cast %54 : vector<4x512xf32> to vector<1x4x512xf32>
    tpu.vector_store %arg21[%c0_25, %c0_26, %c0_27], %57 {strides = array<i32>} : memref<1x4x512xf32, #tpu.memory_space<vmem>>, vector<1x4x512xf32>,
    %58 = vector.extract_strided_slice %30 {offsets = [0, 0], sizes = [3, 512], strides = [1, 1]} : vector<12x512xf32> to vector<3x512xf32>
    %59 = vector.extract_strided_slice %54 {offsets = [0, 0], sizes = [1, 512], strides = [1, 1]} : vector<4x512xf32> to vector<1x512xf32>
    %60 = vector.broadcast %59 : vector<1x512xf32> to vector<3x512xf32>
    %61 = arith.mulf %58, %60 : vector<3x512xf32>
    %62 = vector.extract_strided_slice %30 {offsets = [3, 0], sizes = [3, 512], strides = [1, 1]} : vector<12x512xf32> to vector<3x512xf32>
    %63 = vector.extract_strided_slice %54 {offsets = [1, 0], sizes = [1, 512], strides = [1, 1]} : vector<4x512xf32> to vector<1x512xf32>
    %64 = vector.broadcast %63 : vector<1x512xf32> to vector<3x512xf32>
    %65 = arith.mulf %62, %64 : vector<3x512xf32>
    %66 = arith.addf %61, %65 : vector<3x512xf32>
    %67 = vector.extract_strided_slice %30 {offsets = [6, 0], sizes = [3, 512], strides = [1, 1]} : vector<12x512xf32> to vector<3x512xf32>
    %68 = vector.extract_strided_slice %54 {offsets = [2, 0], sizes = [1, 512], strides = [1, 1]} : vector<4x512xf32> to vector<1x512xf32>
    %69 = vector.broadcast %68 : vector<1x512xf32> to vector<3x512xf32>
    %70 = arith.mulf %67, %69 : vector<3x512xf32>
    %71 = arith.addf %66, %70 : vector<3x512xf32>
    %72 = vector.extract_strided_slice %30 {offsets = [9, 0], sizes = [3, 512], strides = [1, 1]} : vector<12x512xf32> to vector<3x512xf32>
    %73 = vector.extract_strided_slice %54 {offsets = [3, 0], sizes = [1, 512], strides = [1, 1]} : vector<4x512xf32> to vector<1x512xf32>
    %74 = vector.broadcast %73 : vector<1x512xf32> to vector<3x512xf32>
    %75 = arith.mulf %72, %74 : vector<3x512xf32>
    %76 = arith.addf %71, %75 : vector<3x512xf32>
    %c0_28 = arith.constant 0 : index
    %c0_29 = arith.constant 0 : index
    %c0_30 = arith.constant 0 : index
    %77 = vector.load %arg19[%c0_28, %c0_29, %c0_30] : memref<1x3x512xf32, #tpu.memory_space<vmem>>, vector<1x3x512xf32>
    %78 = vector.shape_cast %77 : vector<1x3x512xf32> to vector<3x512xf32>
    %79 = vector.shape_cast %76 : vector<3x512xf32> to vector<1x3x512xf32>
    tpu.vector_store %arg19[%c0_28, %c0_29, %c0_30], %79 {strides = array<i32>} : memref<1x3x512xf32, #tpu.memory_space<vmem>>, vector<1x3x512xf32>,
    %c0_31 = arith.constant 0 : index
    %c0_32 = arith.constant 0 : index
    %80 = vector.load %arg11[%c0_31, %c0_32] : memref<67x3xf32, #tpu.memory_space<vmem>>, vector<67x3xf32>
    %cst_33 = arith.constant dense<0.000000e+00> : vector<67x512xf32>
    %81 = tpu.matmul %80, %76, %cst_33 {dimension_numbers = #tpu.dot_dimension_numbers<[1], [0], [0], [1], [0, 0, 1, 1], [], []>} : vector<67x3xf32>, vector<3x512xf32>, vector<67x512xf32> -> vector<67x512xf32>
    %c0_34 = arith.constant 0 : index
    %c0_35 = arith.constant 0 : index
    %82 = vector.load %arg12[%c0_34, %c0_35] : memref<67x1xf32, #tpu.memory_space<vmem>>, vector<67x1xf32>
    %83 = vector.broadcast %82 : vector<67x1xf32> to vector<67x512xf32>
    %84 = arith.addf %81, %83 : vector<67x512xf32>
    %cst_36 = arith.constant 0.000000e+00 : f32
    %85 = vector.broadcast %cst_36 : f32 to vector<67x512xf32>
    %86 = arith.maximumf %84, %85 : vector<67x512xf32>
    %c0_37 = arith.constant 0 : index
    %c0_38 = arith.constant 0 : index
    %87 = vector.load %arg13[%c0_37, %c0_38] : memref<33x67xf32, #tpu.memory_space<vmem>>, vector<33x67xf32>
    %cst_39 = arith.constant dense<0.000000e+00> : vector<33x512xf32>
    %88 = tpu.matmul %87, %86, %cst_39 {dimension_numbers = #tpu.dot_dimension_numbers<[1], [0], [0], [1], [0, 0, 1, 1], [], []>} : vector<33x67xf32>, vector<67x512xf32>, vector<33x512xf32> -> vector<33x512xf32>
    %c0_40 = arith.constant 0 : index
    %c0_41 = arith.constant 0 : index
    %89 = vector.load %arg14[%c0_40, %c0_41] : memref<33x1xf32, #tpu.memory_space<vmem>>, vector<33x1xf32>
    %90 = vector.broadcast %89 : vector<33x1xf32> to vector<33x512xf32>
    %91 = arith.addf %88, %90 : vector<33x512xf32>
    %cst_42 = arith.constant 0.000000e+00 : f32
    %92 = vector.broadcast %cst_42 : f32 to vector<33x512xf32>
    %93 = arith.maximumf %91, %92 : vector<33x512xf32>
    %c0_43 = arith.constant 0 : index
    %c0_44 = arith.constant 0 : index
    %94 = vector.load %arg15[%c0_43, %c0_44] : memref<16x33xf32, #tpu.memory_space<vmem>>, vector<16x33xf32>
    %cst_45 = arith.constant dense<0.000000e+00> : vector<16x512xf32>
    %95 = tpu.matmul %94, %93, %cst_45 {dimension_numbers = #tpu.dot_dimension_numbers<[1], [0], [0], [1], [0, 0, 1, 1], [], []>} : vector<16x33xf32>, vector<33x512xf32>, vector<16x512xf32> -> vector<16x512xf32>
    %c0_46 = arith.constant 0 : index
    %c0_47 = arith.constant 0 : index
    %96 = vector.load %arg16[%c0_46, %c0_47] : memref<16x1xf32, #tpu.memory_space<vmem>>, vector<16x1xf32>
    %97 = vector.broadcast %96 : vector<16x1xf32> to vector<16x512xf32>
    %98 = arith.addf %95, %97 : vector<16x512xf32>
    %cst_48 = arith.constant 0.000000e+00 : f32
    %99 = vector.broadcast %cst_48 : f32 to vector<16x512xf32>
    %100 = arith.maximumf %98, %99 : vector<16x512xf32>
    %c0_49 = arith.constant 0 : index
    %c0_50 = arith.constant 0 : index
    %101 = vector.load %arg17[%c0_49, %c0_50] : memref<3x16xf32, #tpu.memory_space<vmem>>, vector<3x16xf32>
    %cst_51 = arith.constant dense<0.000000e+00> : vector<3x512xf32>
    %102 = tpu.matmul %101, %100, %cst_51 {dimension_numbers = #tpu.dot_dimension_numbers<[1], [0], [0], [1], [0, 0, 1, 1], [], []>} : vector<3x16xf32>, vector<16x512xf32>, vector<3x512xf32> -> vector<3x512xf32>
    %c0_52 = arith.constant 0 : index
    %c0_53 = arith.constant 0 : index
    %103 = vector.load %arg18[%c0_52, %c0_53] : memref<3x1xf32, #tpu.memory_space<vmem>>, vector<3x1xf32>
    %104 = vector.broadcast %103 : vector<3x1xf32> to vector<3x512xf32>
    %105 = arith.addf %102, %104 : vector<3x512xf32>
    %106 = math.tanh %105 : vector<3x512xf32>
    %c0_54 = arith.constant 0 : index
    %c0_55 = arith.constant 0 : index
    %c0_56 = arith.constant 0 : index
    %107 = vector.load %arg20[%c0_54, %c0_55, %c0_56] : memref<1x3x512xf32, #tpu.memory_space<vmem>>, vector<1x3x512xf32>
    %108 = vector.shape_cast %107 : vector<1x3x512xf32> to vector<3x512xf32>
    %109 = vector.shape_cast %106 : vector<3x512xf32> to vector<1x3x512xf32>
    tpu.vector_store %arg20[%c0_54, %c0_55, %c0_56], %109 {strides = array<i32>} : memref<1x3x512xf32, #tpu.memory_space<vmem>>, vector<1x3x512xf32>,
    return
  }
  func.func @transform_0(%arg0: i32, %arg1: i32) -> (i32, i32, i32) {
    %c0_i32 = arith.constant 0 : i32
    %c0_i32_0 = arith.constant 0 : i32
    return %arg0, %c0_i32, %arg1 : i32, i32, i32
  }
  func.func @transform_1(%arg0: i32, %arg1: i32) -> (i32, i32) {
    %c0_i32 = arith.constant 0 : i32
    %c0_i32_0 = arith.constant 0 : i32
    %c0_i32_1 = arith.constant 0 : i32
    return %c0_i32, %c0_i32_0 : i32, i32
  }
  func.func @transform_2(%arg0: i32, %arg1: i32) -> (i32, i32) {
    %c0_i32 = arith.constant 0 : i32
    %c0_i32_0 = arith.constant 0 : i32
    %c0_i32_1 = arith.constant 0 : i32
    return %c0_i32, %c0_i32_0 : i32, i32
  }
  func.func @transform_3(%arg0: i32, %arg1: i32) -> (i32, i32) {
    %c0_i32 = arith.constant 0 : i32
    %c0_i32_0 = arith.constant 0 : i32
    %c0_i32_1 = arith.constant 0 : i32
    return %c0_i32, %c0_i32_0 : i32, i32
  }
  func.func @transform_4(%arg0: i32, %arg1: i32) -> (i32, i32) {
    %c0_i32 = arith.constant 0 : i32
    %c0_i32_0 = arith.constant 0 : i32
    %c0_i32_1 = arith.constant 0 : i32
    return %c0_i32, %c0_i32_0 : i32, i32
  }
  func.func @transform_5(%arg0: i32, %arg1: i32) -> (i32, i32) {
    %c0_i32 = arith.constant 0 : i32
    %c0_i32_0 = arith.constant 0 : i32
    %c0_i32_1 = arith.constant 0 : i32
    return %c0_i32, %c0_i32_0 : i32, i32
  }
  func.func @transform_6(%arg0: i32, %arg1: i32) -> (i32, i32) {
    %c0_i32 = arith.constant 0 : i32
    %c0_i32_0 = arith.constant 0 : i32
    %c0_i32_1 = arith.constant 0 : i32
    return %c0_i32, %c0_i32_0 : i32, i32
  }
  func.func @transform_7(%arg0: i32, %arg1: i32) -> (i32, i32) {
    %c0_i32 = arith.constant 0 : i32
    %c0_i32_0 = arith.constant 0 : i32
    %c0_i32_1 = arith.constant 0 : i32
    return %c0_i32, %c0_i32_0 : i32, i32
  }
  func.func @transform_8(%arg0: i32, %arg1: i32) -> (i32, i32) {
    %c0_i32 = arith.constant 0 : i32
    %c0_i32_0 = arith.constant 0 : i32
    %c0_i32_1 = arith.constant 0 : i32
    return %c0_i32, %c0_i32_0 : i32, i32
  }
  func.func @transform_9(%arg0: i32, %arg1: i32) -> (i32, i32) {
    %c0_i32 = arith.constant 0 : i32
    %c0_i32_0 = arith.constant 0 : i32
    %c0_i32_1 = arith.constant 0 : i32
    return %c0_i32, %c0_i32_0 : i32, i32
  }
  func.func @transform_10(%arg0: i32, %arg1: i32) -> (i32, i32) {
    %c0_i32 = arith.constant 0 : i32
    %c0_i32_0 = arith.constant 0 : i32
    %c0_i32_1 = arith.constant 0 : i32
    return %c0_i32, %c0_i32_0 : i32, i32
  }
  func.func @transform_11(%arg0: i32, %arg1: i32) -> (i32, i32) {
    %c0_i32 = arith.constant 0 : i32
    %c0_i32_0 = arith.constant 0 : i32
    %c0_i32_1 = arith.constant 0 : i32
    return %c0_i32, %c0_i32_0 : i32, i32
  }
  func.func @transform_12(%arg0: i32, %arg1: i32) -> (i32, i32) {
    %c0_i32 = arith.constant 0 : i32
    %c0_i32_0 = arith.constant 0 : i32
    %c0_i32_1 = arith.constant 0 : i32
    return %c0_i32, %c0_i32_0 : i32, i32
  }
  func.func @transform_13(%arg0: i32, %arg1: i32) -> (i32, i32) {
    %c0_i32 = arith.constant 0 : i32
    %c0_i32_0 = arith.constant 0 : i32
    %c0_i32_1 = arith.constant 0 : i32
    return %c0_i32, %c0_i32_0 : i32, i32
  }
  func.func @transform_14(%arg0: i32, %arg1: i32) -> (i32, i32) {
    %c0_i32 = arith.constant 0 : i32
    %c0_i32_0 = arith.constant 0 : i32
    %c0_i32_1 = arith.constant 0 : i32
    return %c0_i32, %c0_i32_0 : i32, i32
  }
  func.func @transform_15(%arg0: i32, %arg1: i32) -> (i32, i32) {
    %c0_i32 = arith.constant 0 : i32
    %c0_i32_0 = arith.constant 0 : i32
    %c0_i32_1 = arith.constant 0 : i32
    return %c0_i32, %c0_i32_0 : i32, i32
  }
  func.func @transform_16(%arg0: i32, %arg1: i32) -> (i32, i32) {
    %c0_i32 = arith.constant 0 : i32
    %c0_i32_0 = arith.constant 0 : i32
    %c0_i32_1 = arith.constant 0 : i32
    return %c0_i32, %c0_i32_0 : i32, i32
  }
  func.func @transform_17(%arg0: i32, %arg1: i32) -> (i32, i32, i32) {
    %c0_i32 = arith.constant 0 : i32
    %c0_i32_0 = arith.constant 0 : i32
    return %arg0, %c0_i32, %arg1 : i32, i32, i32
  }
  func.func @transform_18(%arg0: i32, %arg1: i32) -> (i32, i32, i32) {
    %c0_i32 = arith.constant 0 : i32
    %c0_i32_0 = arith.constant 0 : i32
    return %arg0, %c0_i32, %arg1 : i32, i32, i32
  }
  func.func @transform_19(%arg0: i32, %arg1: i32) -> (i32, i32, i32) {
    %c0_i32 = arith.constant 0 : i32
    %c0_i32_0 = arith.constant 0 : i32
    return %arg0, %c0_i32, %arg1 : i32, i32, i32
  }
}

</mosaic_0001>

<bundles_post_ra>
// kernel: blended_atlasnet_forward.1
= control target key start
LH: loop header
LB: loop body
LE: loop exit
PB: predicated region body
PF: predicated region fallthrough
CT: control target
= control target key end

     0   :  { %v359_v0 = vlaneseq  ;;  %v5125_v1 = vmov 0   ;;  %v5126_v4 = vmov 1983009808   ;;  %v5127_v11 = vmov 0.0   ;;  %s6443_s2 = inlined_call_operand.vmem [shape: f32[330,1], index: 2, kind: input, shape index: {}]   ;;  %s6444_s0 = inlined_call_operand.vmem [shape: f32[1,2,512], index: 0, kind: input, shape index: {}]   ;;  %s6445_s1 = inlined_call_operand.vmem [shape: f32[330,2], index: 1, kind: input, shape index: {}]   ;;  %s6446_s4 = inlined_call_operand.vmem [shape: f32[165,1], index: 4, kind: input, shape index: {}]   ;;  %s6447_s6 = inlined_call_operand.vmem [shape: f32[80,1], index: 6, kind: input, shape index: {}]   ;;  %s6448_s8 = inlined_call_operand.vmem [shape: f32[16,1], index: 8, kind: input, shape index: {}]   ;;  %s6449_s10 = inlined_call_operand.vmem [shape: f32[67,1], index: 10, kind: input, shape index: {}]   ;;  %s6450_s12 = inlined_call_operand.vmem [shape: f32[33,1], index: 12, kind: input, shape index: {}]   ;;  %s6451_s14 = inlined_call_operand.vmem [shape: f32[16,1], index: 14, kind: input, shape index: {}]   ;;  %s6452_s16 = inlined_call_operand.vmem [shape: f32[3,1], index: 16, kind: input, shape index: {}]   ;;  %s6453_s3 = inlined_call_operand.vmem [shape: f32[165,330], index: 3, kind: input, shape index: {}]   ;;  %s6454_s5 = inlined_call_operand.vmem [shape: f32[80,165], index: 5, kind: input, shape index: {}]   ;;  %s6455_s7 = inlined_call_operand.vmem [shape: f32[16,80], index: 7, kind: input, shape index: {}]   ;;  %s6456_s19 = inlined_call_operand.vmem [shape: f32[1,4,512], index: 19, kind: output, shape index: {2}]   ;;  %s6457_s17 = inlined_call_operand.vmem [shape: f32[1,3,512], index: 17, kind: output, shape index: {0}]   ;;  %s6458_s9 = inlined_call_operand.vmem [shape: f32[67,3], index: 9, kind: input, shape index: {}]   ;;  %s6459_s11 = inlined_call_operand.vmem [shape: f32[33,67], index: 11, kind: input, shape index: {}]   ;;  %s6460_s13 = inlined_call_operand.vmem [shape: f32[16,33], index: 13, kind: input, shape index: {}]   ;;  %s6461_s15 = inlined_call_operand.vmem [shape: f32[3,16], index: 15, kind: input, shape index: {}]   ;;  %s6462_s18 = inlined_call_operand.vmem [shape: f32[1,3,512], index: 18, kind: output, shape index: {1}]  }
   0x1   :  { %6466 = sst [smem:[#allocation2_spill]] %s6443_s2  ;;  %5083 = vset.pattern.permute.xlu1 %v5125_v1  ;;  %5082 = vset.pattern.permute.xlu0 %v5125_v1  ;;  %v357_v5 = vunpack.c.l.s4 %v5126_v4  ;;  %vm499_vm0 = vcmask 1041408   ;;  %vm372_vm1 = vcmask 15360   ;;  %vm5128_vm2 = vmmov 1  }
   0x2   :  { %6467 = sst [smem:[#allocation3_spill]] %s6444_s0  ;;  %s6470_s20 = sld [smem:[#allocation2_spill]]  ;;  %v5235_v6 = vshrl.u32 %v359_v0, 7  ;;  %572 = vmatprep.mubr.f32.mxu0 %v5127_v11  ;;  %889 = vmatprep.mubr.f32.mxu1 %v5127_v11  ;;  %vm4643_vm3 = vmpackc.low %vm499_vm0, %vm5128_vm2  ;;  %vm1499_vm4 = vcmask 605184   ;;  %vm2503_vm5 = vcmask 302080   ;;  %vm2534_vm6 = vcmask 1044480  }
   0x3   :  { %6468 = sst [smem:[#allocation4_spill]] %s6445_s1  ;;  %s6471_s26 = sld [smem:[#allocation3_spill]]  ;;  %v358_v10 = vunpack.c.0.s8 %v357_v5  ;;  %vm2851_vm7 = vcmask 654336   ;;  %vm3423_vm8 = vcmask 1042432   ;;  %vm3395_vm9 = vcmask 23552  }
   0x4   :  { %6469 = sst [smem:[#allocation5_spill]] %s6446_s4  ;;  %s6472_s0 = sld [smem:[#allocation4_spill]]  ;;  %vm3741_vm10 = vcmask 547840   ;;  %vm4000_vm11 = vcmask 1040384   ;;  %vm3993_vm12 = vcmask 269312   ;;  %vm4182_vm13 = vcmask 130048  }
   0x5   :  { %v361_v13 = vsub.s32 %v358_v10, %v5235_v6 }
   0x8   :  { %v104_v2 = vld [vmem:[%s6470_s20 + $0x10] sm:$0xff]  ;;  %v102_v3 = vld [vmem:[%s6470_s20] sm:$0xff]  ;;  %v105_v7 = vld [vmem:[%s6470_s20 + $0x18] sm:$0xff] }
   0x9   :  { %156 = vperm.xlu1 %5083, %v104_v2   ;;  %146 = vperm.xlu0 %5082, %v102_v3   ;;  %v103_v8 = vld [vmem:[%s6470_s20 + $0x8] sm:$0xff]  ;;  %v59_v9 = vld [vmem:[%s6471_s26] sm:$0xff]  ;;  %v109_v21 = vld [vmem:[%s6470_s20 + $0x38] sm:$0xff]  ;;  %s6473_s26 = sld [smem:[#allocation5_spill]] }
   0xa   :  { %v355_v12 = vcombine.high %v59_v9, %v59_v9  ;;  %v107_v14 = vld [vmem:[%s6470_s20 + $0x28] sm:$0xff]  ;;  %v106_v15 = vld [vmem:[%s6470_s20 + $0x20] sm:$0xff]  ;;  %v362_v16 = vrot.slane %v59_v9, %v361_v13  ;;  %v108_v22 = vld [vmem:[%s6470_s20 + $0x30] sm:$0xff] }
   0xb   :  { %v60_v20 = vld [vmem:[%s6472_s0] sm:$0xff]  ;;  %v61_v23 = vld [vmem:[%s6472_s0 + $0x8] sm:$0xff]  ;;  %v62_v26 = vld [vmem:[%s6472_s0 + $0x10] sm:$0xff] }
   0xc   :  { %v369_v17 = vrot.slane %v355_v12, %v361_v13  ;;  %v370_v18 = vcombine.high %v362_v16, %v362_v16  ;;  %v111_v24 = vld [vmem:[%s6470_s20 + $0x48] sm:$0xff]  ;;  %v110_v25 = vld [vmem:[%s6470_s20 + $0x40] sm:$0xff]  ;;  %v113_v27 = vld [vmem:[%s6470_s20 + $0x58] sm:$0xff] }
   0xd   :  { %161 = vperm.xlu1 %5083, %v105_v7   ;;  %151 = vperm.xlu0 %5082, %v103_v8   ;;  %v112_v28 = vld [vmem:[%s6470_s20 + $0x50] sm:$0xff]  ;;  %v63_v29 = vld [vmem:[%s6472_s0 + $0x18] sm:$0xff]  ;;  %v115_v30 = vld [vmem:[%s6470_s20 + $0x68] sm:$0xff] }
   0xe   :  { %v371_v19 = vcombine.high %v369_v17, %v369_v17  ;;  %4354 = vmatprep.subr.msk.mxu0 %vm499_vm0, %v370_v18  ;;  %v114_v31 = vld [vmem:[%s6470_s20 + $0x60] sm:$0xff]  ;;  %v117_v33 = vld [vmem:[%s6470_s20 + $0x78] sm:$0xff]  ;;  %v116_v34 = vld [vmem:[%s6470_s20 + $0x70] sm:$0xff] }
   0xf   :  { %4355 = vmatpush1.msk.msra.mxu0 %vm499_vm0, %v362_v16  ;;  %v64_v32 = vld [vmem:[%s6472_s0 + $0x20] sm:$0xff]  ;;  %v65_v35 = vld [vmem:[%s6472_s0 + $0x28] sm:$0xff]  ;;  %v66_v38 = vld [vmem:[%s6472_s0 + $0x30] sm:$0xff] }
  0x10   :  { %4398 = vmatprep.subr.msk.mxu1 %vm499_vm0, %v371_v19  ;;  %4356 = vmatmul.mubr.msk.f32.vlgmr.msra.gmra.mrb[0].mxu0 %vm372_vm1, %v60_v20  ;;  %v119_v36 = vld [vmem:[%s6470_s20 + $0x88] sm:$0xff]  ;;  %v118_v37 = vld [vmem:[%s6470_s20 + $0x80] sm:$0xff]  ;;  %v121_v39 = vld [vmem:[%s6470_s20 + $0x98] sm:$0xff] }
  0x11   :  { %171 = vperm.xlu1 %5083, %v107_v14   ;;  %166 = vperm.xlu0 %5082, %v106_v15   ;;  %v120_v40 = vld [vmem:[%s6470_s20 + $0x90] sm:$0xff]  ;;  %v67_v41 = vld [vmem:[%s6472_s0 + $0x38] sm:$0xff]  ;;  %v123_v42 = vld [vmem:[%s6470_s20 + $0xa8] sm:$0xff] }
  0x12   :  { %4399 = vmatpush1.msk.msra.mxu1 %vm499_vm0, %v369_v17  ;;  %578 = vmatprep.mubr.f32.mxu0 %v5127_v11  ;;  %v122_v43 = vld [vmem:[%s6470_s20 + $0xa0] sm:$0xff]  ;;  %v125_v45 = vld [vmem:[%s6470_s20 + $0xb8] sm:$0xff]  ;;  %v124_v46 = vld [vmem:[%s6470_s20 + $0xb0] sm:$0xff] }
  0x13   :  { %4400 = vmatmul.mubr.msk.f32.vlgmr.msra.gmra.mrb[0].mxu1 %vm372_vm1, %v60_v20  ;;  %v68_v44 = vld [vmem:[%s6472_s0 + $0x40] sm:$0xff]  ;;  %v69_v47 = vld [vmem:[%s6472_s0 + $0x48] sm:$0xff]  ;;  %v70_v50 = vld [vmem:[%s6472_s0 + $0x50] sm:$0xff] }
  0x14   :  { %895 = vmatprep.mubr.f32.mxu1 %v5127_v11  ;;  %4357 = vmatmul.mubr.msk.f32.gmra.mrb[2].mxu0 %vm372_vm1, %v61_v23  ;;  %v127_v48 = vld [vmem:[%s6470_s20 + $0xc8] sm:$0xff]  ;;  %v126_v49 = vld [vmem:[%s6470_s20 + $0xc0] sm:$0xff]  ;;  %v129_v51 = vld [vmem:[%s6470_s20 + $0xd8] sm:$0xff] }
  0x15   :  { %181 = vperm.xlu1 %5083, %v109_v21   ;;  %176 = vperm.xlu0 %5082, %v108_v22   ;;  %v128_v52 = vld [vmem:[%s6470_s20 + $0xd0] sm:$0xff]  ;;  %v71_v53 = vld [vmem:[%s6472_s0 + $0x58] sm:$0xff]  ;;  %v131_v54 = vld [vmem:[%s6470_s20 + $0xe8] sm:$0xff] }
  0x16   :  { %584 = vmatprep.mubr.f32.mxu0 %v5127_v11  ;;  %v130_v55 = vld [vmem:[%s6470_s20 + $0xe0] sm:$0xff]  ;;  %v133_v57 = vld [vmem:[%s6470_s20 + $0xf8] sm:$0xff]  ;;  %v132_v58 = vld [vmem:[%s6470_s20 + $0xf0] sm:$0xff] }
  0x17   :  { %4401 = vmatmul.mubr.msk.f32.gmra.mrb[2].mxu1 %vm372_vm1, %v61_v23  ;;  %v72_v56 = vld [vmem:[%s6472_s0 + $0x60] sm:$0xff]  ;;  %v73_v59 = vld [vmem:[%s6472_s0 + $0x68] sm:$0xff]  ;;  %v74_v62 = vld [vmem:[%s6472_s0 + $0x70] sm:$0xff] }
  0x18   :  { %901 = vmatprep.mubr.f32.mxu1 %v5127_v11  ;;  %4358 = vmatmul.mubr.msk.f32.gmra.mrb[4].mxu0 %vm372_vm1, %v62_v26  ;;  %v135_v60 = vld [vmem:[%s6470_s20 + $0x108] sm:$0xff]  ;;  %v134_v61 = vld [vmem:[%s6470_s20 + $0x100] sm:$0xff]  ;;  %v137_v63 = vld [vmem:[%s6470_s20 + $0x118] sm:$0xff] }
  0x19   :  { %191 = vperm.xlu1 %5083, %v111_v24   ;;  %186 = vperm.xlu0 %5082, %v110_v25   ;;  %v136_v0 = vld [vmem:[%s6470_s20 + $0x110] sm:$0xff]  ;;  %v75_v1 = vld [vmem:[%s6472_s0 + $0x78] sm:$0xff]  ;;  %v139_v2 = vld [vmem:[%s6470_s20 + $0x128] sm:$0xff] }
  0x1a   :  { %590 = vmatprep.mubr.f32.mxu0 %v5127_v11  ;;  %v138_v3 = vld [vmem:[%s6470_s20 + $0x120] sm:$0xff]  ;;  %v141_v5 = vld [vmem:[%s6470_s20 + $0x138] sm:$0xff]  ;;  %v140_v7 = vld [vmem:[%s6470_s20 + $0x130] sm:$0xff] }
  0x1b   :  { %4402 = vmatmul.mubr.msk.f32.gmra.mrb[4].mxu1 %vm372_vm1, %v62_v26  ;;  %v76_v4 = vld [vmem:[%s6472_s0 + $0x80] sm:$0xff]  ;;  %v77_v8 = vld [vmem:[%s6472_s0 + $0x88] sm:$0xff]  ;;  %v78_v12 = vld [vmem:[%s6472_s0 + $0x90] sm:$0xff] }
  0x1c   :  { %907 = vmatprep.mubr.f32.mxu1 %v5127_v11  ;;  %4359 = vmatmul.mubr.msk.f32.gmra.mrb[6].mxu0 %vm372_vm1, %v63_v29  ;;  %v143_v9 = vld [vmem:[%s6470_s20 + $0x148] sm:$0x3]  ;;  %v142_v10 = vld [vmem:[%s6470_s20 + $0x140] sm:$0xff]  ;;  %v79_v15 = vld [vmem:[%s6472_s0 + $0x98] sm:$0xff] }
  0x1d   :  { %201 = vperm.xlu1 %5083, %v113_v27   ;;  %196 = vperm.xlu0 %5082, %v112_v28   ;;  %v1374_v13 = vld [vmem:[%s6473_s26 + $0x8] sm:$0xff]  ;;  %v1373_v14 = vld [vmem:[%s6473_s26] sm:$0xff]  ;;  %v1376_v16 = vld [vmem:[%s6473_s26 + $0x18] sm:$0xff] }
  0x1e   :  { %596 = vmatprep.mubr.f32.mxu0 %v5127_v11  ;;  %v1375_v17 = vld [vmem:[%s6473_s26 + $0x10] sm:$0xff]  ;;  %v80_v18 = vld [vmem:[%s6472_s0 + $0xa0] sm:$0xff]  ;;  %v1378_v19 = vld [vmem:[%s6473_s26 + $0x28] sm:$0xff] }
  0x1f   :  { %4403 = vmatmul.mubr.msk.f32.gmra.mrb[6].mxu1 %vm372_vm1, %v63_v29  ;;  %v1377_v20 = vld [vmem:[%s6473_s26 + $0x20] sm:$0xff]  ;;  %v81_v21 = vld [vmem:[%s6472_s0 + $0xa8] sm:$0xff]  ;;  %v1380_v22 = vld [vmem:[%s6473_s26 + $0x38] sm:$0xff] }
  0x20   :  { %913 = vmatprep.mubr.f32.mxu1 %v5127_v11  ;;  %4360 = vmatmul.mubr.msk.f32.gmra.mrb[8].mxu0 %vm372_vm1, %v64_v32  ;;  %v1379_v23 = vld [vmem:[%s6473_s26 + $0x30] sm:$0xff]  ;;  %v1382_v25 = vld [vmem:[%s6473_s26 + $0x48] sm:$0xff]  ;;  %v1381_v26 = vld [vmem:[%s6473_s26 + $0x40] sm:$0xff] }
  0x21   :  { %211 = vperm.xlu1 %5083, %v115_v30   ;;  %206 = vperm.xlu0 %5082, %v114_v31   ;;  %v82_v24 = vld [vmem:[%s6472_s0 + $0xb0] sm:$0xff]  ;;  %v83_v27 = vld [vmem:[%s6472_s0 + $0xb8] sm:$0xff]  ;;  %v84_v30 = vld [vmem:[%s6472_s0 + $0xc0] sm:$0xff] }
  0x22   :  { %602 = vmatprep.mubr.f32.mxu0 %v5127_v11  ;;  %v1384_v28 = vld [vmem:[%s6473_s26 + $0x58] sm:$0xff]  ;;  %v1383_v29 = vld [vmem:[%s6473_s26 + $0x50] sm:$0xff]  ;;  %v1386_v31 = vld [vmem:[%s6473_s26 + $0x68] sm:$0xff] }
  0x23   :  { %4404 = vmatmul.mubr.msk.f32.gmra.mrb[8].mxu1 %vm372_vm1, %v64_v32  ;;  %v1385_v32 = vld [vmem:[%s6473_s26 + $0x60] sm:$0xff] }
  0x24   :  { %919 = vmatprep.mubr.f32.mxu1 %v5127_v11  ;;  %4361 = vmatmul.mubr.msk.f32.gmra.mrb[10].mxu0 %vm372_vm1, %v65_v35 }
  0x25   :  { %221 = vperm.xlu1 %5083, %v117_v33   ;;  %216 = vperm.xlu0 %5082, %v116_v34   ;;  %v85_v33 = vld [vmem:[%s6472_s0 + $0xc8] sm:$0xff]  ;;  %v1388_v34 = vld [vmem:[%s6473_s26 + $0x78] sm:$0xff] }
  0x26   :  { %608 = vmatprep.mubr.f32.mxu0 %v5127_v11 }
  0x27   :  { %4405 = vmatmul.mubr.msk.f32.gmra.mrb[10].mxu1 %vm372_vm1, %v65_v35  ;;  %v1387_v35 = vld [vmem:[%s6473_s26 + $0x70] sm:$0xff] }
  0x28   :  { %925 = vmatprep.mubr.f32.mxu1 %v5127_v11  ;;  %4362 = vmatmul.mubr.msk.f32.gmra.mrb[12].mxu0 %vm372_vm1, %v66_v38 }
  0x29   :  { %231 = vperm.xlu1 %5083, %v119_v36   ;;  %226 = vperm.xlu0 %5082, %v118_v37   ;;  %v86_v36 = vld [vmem:[%s6472_s0 + $0xd0] sm:$0xff]  ;;  %v1390_v37 = vld [vmem:[%s6473_s26 + $0x88] sm:$0xff] }
  0x2a   :  { %614 = vmatprep.mubr.f32.mxu0 %v5127_v11 }
  0x2b   :  { %4406 = vmatmul.mubr.msk.f32.gmra.mrb[12].mxu1 %vm372_vm1, %v66_v38  ;;  %v1389_v38 = vld [vmem:[%s6473_s26 + $0x80] sm:$0xff] }
  0x2c   :  { %931 = vmatprep.mubr.f32.mxu1 %v5127_v11  ;;  %4363 = vmatmul.mubr.msk.f32.gmra.mrb[14].mxu0 %vm372_vm1, %v67_v41 }
  0x2d   :  { %241 = vperm.xlu1 %5083, %v121_v39   ;;  %236 = vperm.xlu0 %5082, %v120_v40   ;;  %v87_v39 = vld [vmem:[%s6472_s0 + $0xd8] sm:$0xff] }
  0x2e   :  { %620 = vmatprep.mubr.f32.mxu0 %v5127_v11  ;;  %v1392_v40 = vld [vmem:[%s6473_s26 + $0x98] sm:$0xff] }
  0x2f   :  { %4407 = vmatmul.mubr.msk.f32.gmra.mrb[14].mxu1 %vm372_vm1, %v67_v41  ;;  %v1391_v41 = vld [vmem:[%s6473_s26 + $0x90] sm:$0xff] }
  0x30   :  { %937 = vmatprep.mubr.f32.mxu1 %v5127_v11  ;;  %4364 = vmatmul.mubr.msk.f32.gmra.mrb[16].mxu0 %vm372_vm1, %v68_v44 }
  0x31   :  { %251 = vperm.xlu1 %5083, %v123_v42   ;;  %246 = vperm.xlu0 %5082, %v122_v43   ;;  %v88_v42 = vld [vmem:[%s6472_s0 + $0xe0] sm:$0xff] }
  0x32   :  { %626 = vmatprep.mubr.f32.mxu0 %v5127_v11  ;;  %v2443_v43 = vld [vmem:[%s6447_s6] sm:$0xff] }
  0x33   :  { %4408 = vmatmul.mubr.msk.f32.gmra.mrb[16].mxu1 %vm372_vm1, %v68_v44  ;;  %v1393_v44 = vld [vmem:[%s6473_s26 + $0xa0] sm:$0x1f] }
  0x34   :  { %943 = vmatprep.mubr.f32.mxu1 %v5127_v11  ;;  %4365 = vmatmul.mubr.msk.f32.gmra.mrb[18].mxu0 %vm372_vm1, %v69_v47 }
  0x35   :  { %261 = vperm.xlu1 %5083, %v125_v45   ;;  %256 = vperm.xlu0 %5082, %v124_v46   ;;  %v89_v45 = vld [vmem:[%s6472_s0 + $0xe8] sm:$0xff]  ;;  %v2445_v46 = vld [vmem:[%s6447_s6 + $0x10] sm:$0xff] }
  0x36   :  { %632 = vmatprep.mubr.f32.mxu0 %v5127_v11 }
  0x37   :  { %4409 = vmatmul.mubr.msk.f32.gmra.mrb[18].mxu1 %vm372_vm1, %v69_v47  ;;  %v2444_v47 = vld [vmem:[%s6447_s6 + $0x8] sm:$0xff] }
  0x38   :  { %949 = vmatprep.mubr.f32.mxu1 %v5127_v11  ;;  %4366 = vmatmul.mubr.msk.f32.gmra.mrb[20].mxu0 %vm372_vm1, %v70_v50 }
  0x39   :  { %271 = vperm.xlu1 %5083, %v127_v48   ;;  %266 = vperm.xlu0 %5082, %v126_v49   ;;  %v90_v48 = vld [vmem:[%s6472_s0 + $0xf0] sm:$0xff]  ;;  %v2447_v49 = vld [vmem:[%s6447_s6 + $0x20] sm:$0xff] }
  0x3a   :  { %638 = vmatprep.mubr.f32.mxu0 %v5127_v11 }
  0x3b   :  { %4410 = vmatmul.mubr.msk.f32.gmra.mrb[20].mxu1 %vm372_vm1, %v70_v50  ;;  %v2446_v50 = vld [vmem:[%s6447_s6 + $0x18] sm:$0xff] }
  0x3c   :  { %955 = vmatprep.mubr.f32.mxu1 %v5127_v11  ;;  %4367 = vmatmul.mubr.msk.f32.gmra.mrb[22].mxu0 %vm372_vm1, %v71_v53 }
  0x3d   :  { %281 = vperm.xlu1 %5083, %v129_v51   ;;  %276 = vperm.xlu0 %5082, %v128_v52   ;;  %v91_v51 = vld [vmem:[%s6472_s0 + $0xf8] sm:$0xff]  ;;  %v2449_v52 = vld [vmem:[%s6447_s6 + $0x30] sm:$0xff] }
  0x3e   :  { %644 = vmatprep.mubr.f32.mxu0 %v5127_v11 }
  0x3f   :  { %4411 = vmatmul.mubr.msk.f32.gmra.mrb[22].mxu1 %vm372_vm1, %v71_v53  ;;  %v2448_v53 = vld [vmem:[%s6447_s6 + $0x28] sm:$0xff] }
  0x40   :  { %961 = vmatprep.mubr.f32.mxu1 %v5127_v11  ;;  %4368 = vmatmul.mubr.msk.f32.gmra.mrb[24].mxu0 %vm372_vm1, %v72_v56 }
  0x41   :  { %291 = vperm.xlu1 %5083, %v131_v54   ;;  %286 = vperm.xlu0 %5082, %v130_v55   ;;  %v92_v54 = vld [vmem:[%s6472_s0 + $0x100] sm:$0xff] }
  0x42   :  { %650 = vmatprep.mubr.f32.mxu0 %v5127_v11  ;;  %v2451_v55 = vld [vmem:[%s6447_s6 + $0x40] sm:$0xff] }
  0x43   :  { %4412 = vmatmul.mubr.msk.f32.gmra.mrb[24].mxu1 %vm372_vm1, %v72_v56  ;;  %v2450_v56 = vld [vmem:[%s6447_s6 + $0x38] sm:$0xff] }
  0x44   :  { %967 = vmatprep.mubr.f32.mxu1 %v5127_v11  ;;  %4369 = vmatmul.mubr.msk.f32.gmra.mrb[26].mxu0 %vm372_vm1, %v73_v59 }
  0x45   :  { %301 = vperm.xlu1 %5083, %v133_v57   ;;  %296 = vperm.xlu0 %5082, %v132_v58   ;;  %v93_v57 = vld [vmem:[%s6472_s0 + $0x108] sm:$0xff]  ;;  %v2839_v58 = vld [vmem:[%s6448_s8] sm:$0xff] }
  0x46   :  { %656 = vmatprep.mubr.f32.mxu0 %v5127_v11 }
  0x47   :  { %4413 = vmatmul.mubr.msk.f32.gmra.mrb[26].mxu1 %vm372_vm1, %v73_v59  ;;  %v2452_v59 = vld [vmem:[%s6447_s6 + $0x48] sm:$0xff] }
  0x48   :  { %973 = vmatprep.mubr.f32.mxu1 %v5127_v11  ;;  %4370 = vmatmul.mubr.msk.f32.gmra.mrb[28].mxu0 %vm372_vm1, %v74_v62 }
  0x49   :  { %311 = vperm.xlu1 %5083, %v135_v60   ;;  %306 = vperm.xlu0 %5082, %v134_v61   ;;  %v94_v60 = vld [vmem:[%s6472_s0 + $0x110] sm:$0xff]  ;;  %v3337_v61 = vld [vmem:[%s6449_s10] sm:$0xff] }
  0x4a   :  { %662 = vmatprep.mubr.f32.mxu0 %v5127_v11 }
  0x4b   :  { %4414 = vmatmul.mubr.msk.f32.gmra.mrb[28].mxu1 %vm372_vm1, %v74_v62  ;;  %v2840_v62 = vld [vmem:[%s6448_s8 + $0x8] sm:$0xff] }
  0x4c   :  { %979 = vmatprep.mubr.f32.mxu1 %v5127_v11  ;;  %4371 = vmatmul.mubr.msk.f32.gmra.mrb[30].mxu0 %vm372_vm1, %v75_v1 }
  0x4d   :  { %321 = vperm.xlu1 %5083, %v137_v63   ;;  %316 = vperm.xlu0 %5082, %v136_v0   ;;  %v95_v63 = vld [vmem:[%s6472_s0 + $0x118] sm:$0xff]  ;;  %v3339_v0 = vld [vmem:[%s6449_s10 + $0x10] sm:$0xff] }
  0x4e   :  { %668 = vmatprep.mubr.f32.mxu0 %v5127_v11 }
  0x4f   :  { %4415 = vmatmul.mubr.msk.f32.gmra.mrb[30].mxu1 %vm372_vm1, %v75_v1  ;;  %v3338_v1 = vld [vmem:[%s6449_s10 + $0x8] sm:$0xff] }
  0x50   :  { %985 = vmatprep.mubr.f32.mxu1 %v5127_v11  ;;  %4372 = vmatmul.mubr.msk.f32.gmra.mrb[32].mxu0 %vm372_vm1, %v76_v4 }
  0x51   :  { %331 = vperm.xlu1 %5083, %v139_v2   ;;  %326 = vperm.xlu0 %5082, %v138_v3   ;;  %v96_v2 = vld [vmem:[%s6472_s0 + $0x120] sm:$0xff] }
  0x52   :  { %674 = vmatprep.mubr.f32.mxu0 %v5127_v11  ;;  %v3341_v3 = vld [vmem:[%s6449_s10 + $0x20] sm:$0xff] }
  0x53   :  { %4416 = vmatmul.mubr.msk.f32.gmra.mrb[32].mxu1 %vm372_vm1, %v76_v4  ;;  %v3340_v4 = vld [vmem:[%s6449_s10 + $0x18] sm:$0xff] }
  0x54   :  { %991 = vmatprep.mubr.f32.mxu1 %v5127_v11  ;;  %4373 = vmatmul.mubr.msk.f32.gmra.mrb[34].mxu0 %vm372_vm1, %v77_v8 }
  0x55   :  { %341 = vperm.xlu1 %5083, %v141_v5   ;;  %336 = vperm.xlu0 %5082, %v140_v7   ;;  %v97_v5 = vld [vmem:[%s6472_s0 + $0x128] sm:$0xff]  ;;  %v3343_v7 = vld [vmem:[%s6449_s10 + $0x30] sm:$0xff] }
  0x56   :  { %680 = vmatprep.mubr.f32.mxu0 %v5127_v11 }
  0x57   :  { %4417 = vmatmul.mubr.msk.f32.gmra.mrb[34].mxu1 %vm372_vm1, %v77_v8  ;;  %v3342_v8 = vld [vmem:[%s6449_s10 + $0x28] sm:$0xff] }
  0x58   :  { %997 = vmatprep.mubr.f32.mxu1 %v5127_v11  ;;  %4374 = vmatmul.mubr.msk.f32.gmra.mrb[36].mxu0 %vm372_vm1, %v78_v12 }
  0x59   :  { %351 = vperm.xlu1 %5083, %v143_v9   ;;  %346 = vperm.xlu0 %5082, %v142_v10   ;;  %v98_v9 = vld [vmem:[%s6472_s0 + $0x130] sm:$0xff]  ;;  %v3345_v10 = vld [vmem:[%s6449_s10 + $0x40] sm:$0x7] }
  0x5a   :  { %686 = vmatprep.mubr.f32.mxu0 %v5127_v11 }
  0x5b   :  { %4418 = vmatmul.mubr.msk.f32.gmra.mrb[36].mxu1 %vm372_vm1, %v78_v12  ;;  %v3344_v12 = vld [vmem:[%s6449_s10 + $0x38] sm:$0xff] }
  0x5c   :  { %1003 = vmatprep.mubr.f32.mxu1 %v5127_v11  ;;  %4375 = vmatmul.mubr.msk.f32.gmra.mrb[38].mxu0 %vm372_vm1, %v79_v15 }
  0x5d   :  { %1401 = vperm.xlu1 %5083, %v1374_v13   ;;  %1396 = vperm.xlu0 %5082, %v1373_v14   ;;  %v99_v13 = vld [vmem:[%s6472_s0 + $0x138] sm:$0xff]  ;;  %v3712_v14 = vld [vmem:[%s6450_s12 + $0x8] sm:$0xff] }
  0x5e   :  { %692 = vmatprep.mubr.f32.mxu0 %v5127_v11 }
  0x5f   :  { %4419 = vmatmul.mubr.msk.f32.gmra.mrb[38].mxu1 %vm372_vm1, %v79_v15  ;;  %v3711_v15 = vld [vmem:[%s6450_s12] sm:$0xff] }
  0x60   :  { %1009 = vmatprep.mubr.f32.mxu1 %v5127_v11  ;;  %4376 = vmatmul.mubr.msk.f32.gmra.mrb[40].mxu0 %vm372_vm1, %v80_v18 }
  0x61   :  { %1411 = vperm.xlu1 %5083, %v1376_v16   ;;  %1406 = vperm.xlu0 %5082, %v1375_v17   ;;  %v100_v16 = vld [vmem:[%s6472_s0 + $0x140] sm:$0xff]  ;;  %v3714_v17 = vld [vmem:[%s6450_s12 + $0x18] sm:$0xff] }
  0x62   :  { %698 = vmatprep.mubr.f32.mxu0 %v5127_v11 }
  0x63   :  { %4420 = vmatmul.mubr.msk.f32.gmra.mrb[40].mxu1 %vm372_vm1, %v80_v18  ;;  %v3713_v18 = vld [vmem:[%s6450_s12 + $0x10] sm:$0xff] }
  0x64   :  { %1015 = vmatprep.mubr.f32.mxu1 %v5127_v11  ;;  %4377 = vmatmul.mubr.msk.f32.gmra.mrb[42].mxu0 %vm372_vm1, %v81_v21 }
  0x65   :  { %1421 = vperm.xlu1 %5083, %v1378_v19   ;;  %1416 = vperm.xlu0 %5082, %v1377_v20   ;;  %v101_v19 = vld [vmem:[%s6472_s0 + $0x148] sm:$0x3]  ;;  %v3981_v20 = vld [vmem:[%s6451_s14] sm:$0xff] }
  0x66   :  { %704 = vmatprep.mubr.f32.mxu0 %v5127_v11 }
  0x67   :  { %4421 = vmatmul.mubr.msk.f32.gmra.mrb[42].mxu1 %vm372_vm1, %v81_v21  ;;  %v3715_v21 = vld [vmem:[%s6450_s12 + $0x20] sm:$0x1] }
  0x68   :  { %1021 = vmatprep.mubr.f32.mxu1 %v5127_v11  ;;  %4378 = vmatmul.mubr.msk.f32.gmra.mrb[44].mxu0 %vm372_vm1, %v82_v24 }
  0x69   :  { %1431 = vperm.xlu1 %5083, %v1380_v22   ;;  %1426 = vperm.xlu0 %5082, %v1379_v23   ;;  %v4176_v22 = vld [vmem:[%s6452_s16] sm:$0x7]  ;;  %v3982_v23 = vld [vmem:[%s6451_s14 + $0x8] sm:$0xff] }
  0x6a   :  { %710 = vmatprep.mubr.f32.mxu0 %v5127_v11 }
  0x6b   :  { %4422 = vmatmul.mubr.msk.f32.gmra.mrb[44].mxu1 %vm372_vm1, %v82_v24 }
  0x6c   :  { %1027 = vmatprep.mubr.f32.mxu1 %v5127_v11  ;;  %4379 = vmatmul.mubr.msk.f32.gmra.mrb[46].mxu0 %vm372_vm1, %v83_v27 }
  0x6d   :  { %1441 = vperm.xlu1 %5083, %v1382_v25   ;;  %1436 = vperm.xlu0 %5082, %v1381_v26  }
  0x6e   :  { %716 = vmatprep.mubr.f32.mxu0 %v5127_v11 }
  0x6f   :  { %4423 = vmatmul.mubr.msk.f32.gmra.mrb[46].mxu1 %vm372_vm1, %v83_v27 }
  0x70   :  { %1033 = vmatprep.mubr.f32.mxu1 %v5127_v11  ;;  %4380 = vmatmul.mubr.msk.f32.gmra.mrb[48].mxu0 %vm372_vm1, %v84_v30 }
  0x71   :  { %1451 = vperm.xlu1 %5083, %v1384_v28   ;;  %1446 = vperm.xlu0 %5082, %v1383_v29  }
  0x72   :  { %722 = vmatprep.mubr.f32.mxu0 %v5127_v11 }
  0x73   :  { %4424 = vmatmul.mubr.msk.f32.gmra.mrb[48].mxu1 %vm372_vm1, %v84_v30 }
  0x74   :  { %1039 = vmatprep.mubr.f32.mxu1 %v5127_v11  ;;  %4381 = vmatmul.mubr.msk.f32.gmra.mrb[50].mxu0 %vm372_vm1, %v85_v33 }
  0x75   :  { %1461 = vperm.xlu1 %5083, %v1386_v31   ;;  %1456 = vperm.xlu0 %5082, %v1385_v32  }
  0x76   :  { %728 = vmatprep.mubr.f32.mxu0 %v5127_v11 }
  0x77   :  { %4425 = vmatmul.mubr.msk.f32.gmra.mrb[50].mxu1 %vm372_vm1, %v85_v33 }
  0x78   :  { %1045 = vmatprep.mubr.f32.mxu1 %v5127_v11  ;;  %4382 = vmatmul.mubr.msk.f32.gmra.mrb[52].mxu0 %vm372_vm1, %v86_v36 }
  0x79   :  { %1471 = vperm.xlu1 %5083, %v1388_v34   ;;  %1466 = vperm.xlu0 %5082, %v1387_v35  }
  0x7a   :  { %734 = vmatprep.mubr.f32.mxu0 %v5127_v11 }
  0x7b   :  { %4426 = vmatmul.mubr.msk.f32.gmra.mrb[52].mxu1 %vm372_vm1, %v86_v36 }
  0x7c   :  { %1051 = vmatprep.mubr.f32.mxu1 %v5127_v11  ;;  %4383 = vmatmul.mubr.msk.f32.gmra.mrb[54].mxu0 %vm372_vm1, %v87_v39 }
  0x7d   :  { %1481 = vperm.xlu1 %5083, %v1390_v37   ;;  %1476 = vperm.xlu0 %5082, %v1389_v38  }
  0x7e   :  { %740 = vmatprep.mubr.f32.mxu0 %v5127_v11 }
  0x7f   :  { %4427 = vmatmul.mubr.msk.f32.gmra.mrb[54].mxu1 %vm372_vm1, %v87_v39 }
  0x80   :  { %1057 = vmatprep.mubr.f32.mxu1 %v5127_v11  ;;  %4384 = vmatmul.mubr.msk.f32.gmra.mrb[56].mxu0 %vm372_vm1, %v88_v42 }
  0x81   :  { %1491 = vperm.xlu1 %5083, %v1392_v40   ;;  %1486 = vperm.xlu0 %5082, %v1391_v41  }
  0x82   :  { %746 = vmatprep.mubr.f32.mxu0 %v5127_v11 }
  0x83   :  { %4428 = vmatmul.mubr.msk.f32.gmra.mrb[56].mxu1 %vm372_vm1, %v88_v42 }
  0x84   :  { %1063 = vmatprep.mubr.f32.mxu1 %v5127_v11  ;;  %4385 = vmatmul.mubr.msk.f32.gmra.mrb[58].mxu0 %vm372_vm1, %v89_v45 }
  0x85   :  { %2455 = vperm.xlu1 %5083, %v2443_v43   ;;  %1496 = vperm.xlu0 %5082, %v1393_v44  }
  0x86   :  { %752 = vmatprep.mubr.f32.mxu0 %v5127_v11 }
  0x87   :  { %4429 = vmatmul.mubr.msk.f32.gmra.mrb[58].mxu1 %vm372_vm1, %v89_v45 }
  0x88   :  { %1069 = vmatprep.mubr.f32.mxu1 %v5127_v11  ;;  %4386 = vmatmul.mubr.msk.f32.gmra.mrb[60].mxu0 %vm372_vm1, %v90_v48  ;;  %v147_v24 = vpop.permute.xlu0 %146  ;;  %v157_v36 = vpop.permute.xlu1 %156 }
  0x89   :  { %2465 = vperm.xlu1 %5083, %v2445_v46   ;;  %2460 = vperm.xlu0 %5082, %v2444_v47   ;;  %v1311_v47 = vld [vmem:[%s6453_s3 + $0x8] sm:$0xff] }
  0x8a   :  { %758 = vmatprep.mubr.f32.mxu0 %v5127_v11 }
  0x8b   :  { %4430 = vmatmul.mubr.msk.f32.gmra.mrb[60].mxu1 %vm372_vm1, %v90_v48 }
  0x8c   :  { %1075 = vmatprep.mubr.f32.mxu1 %v5127_v11  ;;  %4387 = vmatmul.mubr.msk.f32.gmra.mrb[62].mxu0 %vm372_vm1, %v91_v51  ;;  %v152_v31 = vpop.permute.xlu0 %151 }
  0x8d   :  { %2475 = vperm.xlu1 %5083, %v2447_v49   ;;  %2470 = vperm.xlu0 %5082, %v2446_v50  }
  0x8e   :  { %764 = vmatprep.mubr.f32.mxu0 %v5127_v11 }
  0x8f   :  { %4431 = vmatmul.mubr.msk.f32.gmra.mrb[62].mxu1 %vm372_vm1, %v91_v51 }
  0x90   :  { %1081 = vmatprep.mubr.f32.mxu1 %v5127_v11  ;;  %4388 = vmatmul.mubr.msk.f32.gmra.mrb[64].mxu0 %vm372_vm1, %v92_v54 }
  0x91   :  { %2485 = vperm.xlu1 %5083, %v2449_v52   ;;  %2480 = vperm.xlu0 %5082, %v2448_v53  }
  0x92   :  { %770 = vmatprep.mubr.f32.mxu0 %v5127_v11 }
  0x93   :  { %4432 = vmatmul.mubr.msk.f32.gmra.mrb[64].mxu1 %vm372_vm1, %v92_v54 }
  0x94   :  { %1087 = vmatprep.mubr.f32.mxu1 %v5127_v11  ;;  %4389 = vmatmul.mubr.msk.f32.gmra.mrb[66].mxu0 %vm372_vm1, %v93_v57 }
  0x95   :  { %2495 = vperm.xlu1 %5083, %v2451_v55   ;;  %2490 = vperm.xlu0 %5082, %v2450_v56  }
  0x96   :  { %776 = vmatprep.mubr.f32.mxu0 %v5127_v11 }
  0x97   :  { %4433 = vmatmul.mubr.msk.f32.gmra.mrb[66].mxu1 %vm372_vm1, %v93_v57 }
  0x98   :  { %1093 = vmatprep.mubr.f32.mxu1 %v5127_v11  ;;  %4390 = vmatmul.mubr.msk.f32.gmra.mrb[68].mxu0 %vm372_vm1, %v94_v60 }
  0x99   :  { %2843 = vperm.xlu1 %5083, %v2839_v58   ;;  %2500 = vperm.xlu0 %5082, %v2452_v59  }
  0x9a   :  { %782 = vmatprep.mubr.f32.mxu0 %v5127_v11 }
  0x9b   :  { %4434 = vmatmul.mubr.msk.f32.gmra.mrb[68].mxu1 %vm372_vm1, %v94_v60  ;;  %v162_v60 = vpop.permute.xlu1 %161 }
  0x9c   :  { %1099 = vmatprep.mubr.f32.mxu1 %v5127_v11  ;;  %4391 = vmatmul.mubr.msk.f32.gmra.mrb[70].mxu0 %vm372_vm1, %v95_v63 }
  0x9d   :  { %3348 = vperm.xlu1 %5083, %v3337_v61   ;;  %2848 = vperm.xlu0 %5082, %v2840_v62  }
  0x9e   :  { %788 = vmatprep.mubr.f32.mxu0 %v5127_v11 }
  0x9f   :  { %4435 = vmatmul.mubr.msk.f32.gmra.mrb[70].mxu1 %vm372_vm1, %v95_v63 }
  0xa0   :  { %1105 = vmatprep.mubr.f32.mxu1 %v5127_v11  ;;  %4392 = vmatmul.mubr.msk.f32.gmra.mrb[72].mxu0 %vm372_vm1, %v96_v2 }
  0xa1   :  { %3358 = vperm.xlu1 %5083, %v3339_v0   ;;  %3353 = vperm.xlu0 %5082, %v3338_v1  }
  0xa2   :  { %794 = vmatprep.mubr.f32.mxu0 %v5127_v11 }
  0xa3   :  { %4436 = vmatmul.mubr.msk.f32.gmra.mrb[72].mxu1 %vm372_vm1, %v96_v2 }
  0xa4   :  { %1111 = vmatprep.mubr.f32.mxu1 %v5127_v11  ;;  %4393 = vmatmul.mubr.msk.f32.gmra.mrb[74].mxu0 %vm372_vm1, %v97_v5 }
  0xa5   :  { %3368 = vperm.xlu1 %5083, %v3341_v3   ;;  %3363 = vperm.xlu0 %5082, %v3340_v4  }
  0xa6   :  { %800 = vmatprep.mubr.f32.mxu0 %v5127_v11 }
  0xa7   :  { %4437 = vmatmul.mubr.msk.f32.gmra.mrb[74].mxu1 %vm372_vm1, %v97_v5 }
  0xa8   :  { %1117 = vmatprep.mubr.f32.mxu1 %v5127_v11  ;;  %4394 = vmatmul.mubr.msk.f32.gmra.mrb[76].mxu0 %vm372_vm1, %v98_v9 }
  0xa9   :  { %3378 = vperm.xlu1 %5083, %v3343_v7   ;;  %3373 = vperm.xlu0 %5082, %v3342_v8  }
  0xaa   :  { %806 = vmatprep.mubr.f32.mxu0 %v5127_v11 }
  0xab   :  { %4438 = vmatmul.mubr.msk.f32.gmra.mrb[76].mxu1 %vm372_vm1, %v98_v9 }
  0xac   :  { %1123 = vmatprep.mubr.f32.mxu1 %v5127_v11  ;;  %4395 = vmatmul.mubr.msk.f32.gmra.mrb[78].mxu0 %vm372_vm1, %v99_v13 }
  0xad   :  { %3388 = vperm.xlu1 %5083, %v3345_v10   ;;  %3383 = vperm.xlu0 %5082, %v3344_v12  }
  0xae   :  { %812 = vmatprep.mubr.f32.mxu0 %v5127_v11 }
  0xaf   :  { %4439 = vmatmul.mubr.msk.f32.gmra.mrb[78].mxu1 %vm372_vm1, %v99_v13 }
  0xb0   :  { %1129 = vmatprep.mubr.f32.mxu1 %v5127_v11  ;;  %4396 = vmatmul.mubr.msk.f32.gmra.mrb[80].mxu0 %vm372_vm1, %v100_v16 }
  0xb1   :  { %3723 = vperm.xlu1 %5083, %v3712_v14   ;;  %3718 = vperm.xlu0 %5082, %v3711_v15  }
  0xb2   :  { %818 = vmatprep.mubr.f32.mxu0 %v5127_v11 }
  0xb3   :  { %4440 = vmatmul.mubr.msk.f32.gmra.mrb[80].mxu1 %vm372_vm1, %v100_v16 }
  0xb4   :  { %1135 = vmatprep.mubr.f32.mxu1 %v5127_v11  ;;  %4397 = vmatmul.mubr.msk.f32.gmra.mrb[82].mxu0 %vm372_vm1, %v101_v19 }
  0xb5   :  { %3733 = vperm.xlu1 %5083, %v3714_v17   ;;  %3728 = vperm.xlu0 %5082, %v3713_v18  }
  0xb6   :  { %1639 = vmatprep.mubr.f32.mxu0 %v1311_v47 }
  0xb7   :  { %4441 = vmatmul.mubr.msk.f32.gmra.mrb[82].mxu1 %vm372_vm1, %v101_v19  ;;  %v167_v19 = vpop.permute.xlu0 %166 }
  0xb8   :  { %2021 = vmatprep.mubr.f32.mxu1 %v1311_v47 }
  0xb9   :  { %3985 = vperm.xlu1 %5083, %v3981_v20   ;;  %3738 = vperm.xlu0 %5082, %v3715_v21  }
  0xbd   :  { %4179 = vperm.xlu1 %5083, %v4176_v22   ;;  %3990 = vperm.xlu0 %5082, %v3982_v23  }
  0xe3   :  { %v574_v25 = vpop.f32.mrb[0].mxu0 }
  0xe4   :  { %v575_v27 = vadd.f32 %v574_v25, %v147_v24  ;;  %v576_v29 = vpop.f32.mrb[1].mxu0 }
  0xe5   :  { %v577_v32 = vadd.f32 %v576_v29, %v147_v24 }
  0xe6   :  { %v891_v26 = vpop.f32.mrb[0].mxu1  ;;  %v1142_v39 = vmax.f32 %v575_v27, 0.0 }
  0xe7   :  { %v892_v28 = vadd.f32 %v891_v26, %v147_v24  ;;  %v893_v30 = vpop.f32.mrb[1].mxu1  ;;  %v580_v34 = vpop.f32.mrb[2].mxu0  ;;  %v1143_v48 = vmax.f32 %v577_v32, 0.0 }
  0xe8   :  { %v894_v33 = vadd.f32 %v893_v30, %v147_v24  ;;  %v581_v37 = vadd.f32 %v580_v34, %v152_v31  ;;  %v582_v41 = vpop.f32.mrb[3].mxu0 }
  0xe9   :  { %v1144_v40 = vmax.f32 %v892_v28, 0.0  ;;  %v583_v45 = vadd.f32 %v582_v41, %v152_v31  ;;  %v172_v28 = vpop.permute.xlu1 %171 }
  0xea   :  { %v897_v35 = vpop.f32.mrb[2].mxu1  ;;  %v1146_v43 = vmax.f32 %v581_v37, 0.0  ;;  %v1145_v49 = vmax.f32 %v894_v33, 0.0 }
  0xeb   :  { %v898_v38 = vadd.f32 %v897_v35, %v152_v31  ;;  %v899_v42 = vpop.f32.mrb[3].mxu1  ;;  %v586_v50 = vpop.f32.mrb[4].mxu0  ;;  %v1147_v54 = vmax.f32 %v583_v45, 0.0 }
  0xec   :  { %v900_v46 = vadd.f32 %v899_v42, %v152_v31  ;;  %v4564_v52 = vpack.c.bf16 %v1146_v43, %v1142_v39  ;;  %v587_v56 = vadd.f32 %v586_v50, %v157_v36  ;;  %v588_v58 = vpop.f32.mrb[5].mxu0 }
  0xed   :  { %v1148_v44 = vmax.f32 %v898_v38, 0.0  ;;  %v4562_v61 = vpack.c.bf16 %v1147_v54, %v1143_v48  ;;  %v589_v63 = vadd.f32 %v588_v58, %v157_v36  ;;  %v182_v58 = vpop.permute.xlu1 %181 }
  0xee   :  { %v903_v51 = vpop.f32.mrb[4].mxu1  ;;  %v1149_v55 = vmax.f32 %v900_v46, 0.0  ;;  %v1150_v5 = vmax.f32 %v587_v56, 0.0 }
  0xef   :  { %v4650_v53 = vpack.c.bf16 %v1148_v44, %v1144_v40  ;;  %v904_v57 = vadd.f32 %v903_v51, %v157_v36  ;;  %v905_v59 = vpop.f32.mrb[5].mxu1  ;;  %v592_v1 = vpop.f32.mrb[6].mxu0  ;;  %4563 = vmatprep.subr.bf16.mxu0 %v4562_v61  ;;  %v1151_v15 = vmax.f32 %v589_v63, 0.0 }
  0xf0   :  { %v4648_v62 = vpack.c.bf16 %v1149_v55, %v1145_v49  ;;  %v906_v0 = vadd.f32 %v905_v59, %v157_v36  ;;  %v593_v3 = vadd.f32 %v592_v1, %v162_v60  ;;  %v594_v8 = vpop.f32.mrb[7].mxu0  ;;  %4565 = vmatpush1.bf16.msra.mxu0 %v4564_v52  ;;  %v177_v49 = vpop.permute.xlu0 %176 }
  0xf1   :  { %v1152_v7 = vmax.f32 %v904_v57, 0.0  ;;  %v595_v13 = vadd.f32 %v594_v8, %v162_v60 }
  0xf2   :  { %v909_v2 = vpop.f32.mrb[6].mxu1  ;;  %4649 = vmatprep.subr.bf16.mxu1 %v4648_v62  ;;  %v1154_v10 = vmax.f32 %v593_v3, 0.0  ;;  %v1153_v16 = vmax.f32 %v906_v0, 0.0 }
  0xf3   :  { %v910_v4 = vadd.f32 %v909_v2, %v162_v60  ;;  %v911_v9 = vpop.f32.mrb[7].mxu1  ;;  %4651 = vmatpush1.bf16.msra.mxu1 %v4650_v53  ;;  %v598_v17 = vpop.f32.mrb[8].mxu0  ;;  %v1155_v22 = vmax.f32 %v595_v13, 0.0 }
  0xf4   :  { %v912_v14 = vadd.f32 %v911_v9, %v162_v60  ;;  %v4568_v20 = vpack.c.bf16 %v1154_v10, %v1150_v5  ;;  %v599_v24 = vadd.f32 %v598_v17, %v167_v19  ;;  %v600_v26 = vpop.f32.mrb[9].mxu0  ;;  %v187_v17 = vpop.permute.xlu0 %186 }
  0xf5   :  { %v1156_v12 = vmax.f32 %v910_v4, 0.0  ;;  %v4566_v29 = vpack.c.bf16 %v1155_v22, %v1151_v15  ;;  %v601_v31 = vadd.f32 %v600_v26, %v167_v19  ;;  %v192_v26 = vpop.permute.xlu1 %191 }
  0xf6   :  { %v915_v18 = vpop.f32.mrb[8].mxu1  ;;  %v1157_v23 = vmax.f32 %v912_v14, 0.0  ;;  %v1158_v37 = vmax.f32 %v599_v24, 0.0 }
  0xf7   :  { %v4654_v21 = vpack.c.bf16 %v1156_v12, %v1152_v7  ;;  %v916_v25 = vadd.f32 %v915_v18, %v167_v19  ;;  %v917_v27 = vpop.f32.mrb[9].mxu1  ;;  %v604_v33 = vpop.f32.mrb[10].mxu0  ;;  %4567 = vmatprep.subr.bf16.mxu0 %v4566_v29  ;;  %v1159_v45 = vmax.f32 %v601_v31, 0.0 }
  0xf8   :  { %v4652_v30 = vpack.c.bf16 %v1157_v23, %v1153_v16  ;;  %v918_v32 = vadd.f32 %v917_v27, %v167_v19  ;;  %v605_v35 = vadd.f32 %v604_v33, %v172_v28  ;;  %v606_v39 = vpop.f32.mrb[11].mxu0  ;;  %4569 = vmatpush1.bf16.msra.mxu0 %v4568_v20 }
  0xf9   :  { %v1160_v38 = vmax.f32 %v916_v25, 0.0  ;;  %v607_v43 = vadd.f32 %v606_v39, %v172_v28 }
  0xfa   :  { %v921_v34 = vpop.f32.mrb[10].mxu1  ;;  %4653 = vmatprep.subr.bf16.mxu1 %v4652_v30  ;;  %v1162_v41 = vmax.f32 %v605_v35, 0.0  ;;  %v1161_v46 = vmax.f32 %v918_v32, 0.0 }
  0xfb   :  { %v922_v36 = vadd.f32 %v921_v34, %v172_v28  ;;  %v923_v40 = vpop.f32.mrb[11].mxu1  ;;  %4655 = vmatpush1.bf16.msra.mxu1 %v4654_v21  ;;  %v610_v47 = vpop.f32.mrb[12].mxu0  ;;  %v1163_v52 = vmax.f32 %v607_v43, 0.0 }
  0xfc   :  { %v924_v44 = vadd.f32 %v923_v40, %v172_v28  ;;  %v4572_v50 = vpack.c.bf16 %v1162_v41, %v1158_v37  ;;  %v611_v54 = vadd.f32 %v610_v47, %v177_v49  ;;  %v612_v56 = vpop.f32.mrb[13].mxu0  ;;  %v197_v47 = vpop.permute.xlu0 %196 }
  0xfd   :  { %v1164_v42 = vmax.f32 %v922_v36, 0.0  ;;  %v4570_v59 = vpack.c.bf16 %v1163_v52, %v1159_v45  ;;  %v613_v61 = vadd.f32 %v612_v56, %v177_v49  ;;  %v202_v56 = vpop.permute.xlu1 %201 }
  0xfe   :  { %v927_v48 = vpop.f32.mrb[12].mxu1  ;;  %v1165_v53 = vmax.f32 %v924_v44, 0.0  ;;  %v1166_v3 = vmax.f32 %v611_v54, 0.0 }
  0xff   :  { %v4658_v51 = vpack.c.bf16 %v1164_v42, %v1160_v38  ;;  %v928_v55 = vadd.f32 %v927_v48, %v177_v49  ;;  %v929_v57 = vpop.f32.mrb[13].mxu1  ;;  %v616_v63 = vpop.f32.mrb[14].mxu0  ;;  %4571 = vmatprep.subr.bf16.mxu0 %v4570_v59  ;;  %v1167_v13 = vmax.f32 %v613_v61, 0.0 }
 0x100   :  { %v4656_v60 = vpack.c.bf16 %v1165_v53, %v1161_v46  ;;  %v930_v62 = vadd.f32 %v929_v57, %v177_v49  ;;  %v617_v1 = vadd.f32 %v616_v63, %v182_v58  ;;  %v618_v5 = vpop.f32.mrb[15].mxu0  ;;  %4573 = vmatpush1.bf16.msra.mxu0 %v4572_v50 }
 0x101   :  { %v1168_v4 = vmax.f32 %v928_v55, 0.0  ;;  %v619_v10 = vadd.f32 %v618_v5, %v182_v58 }
 0x102   :  { %v933_v0 = vpop.f32.mrb[14].mxu1  ;;  %4657 = vmatprep.subr.bf16.mxu1 %v4656_v60  ;;  %v1170_v8 = vmax.f32 %v617_v1, 0.0  ;;  %v1169_v14 = vmax.f32 %v930_v62, 0.0 }
 0x103   :  { %v934_v2 = vadd.f32 %v933_v0, %v182_v58  ;;  %v935_v7 = vpop.f32.mrb[15].mxu1  ;;  %4659 = vmatpush1.bf16.msra.mxu1 %v4658_v51  ;;  %v622_v15 = vpop.f32.mrb[16].mxu0  ;;  %v1171_v20 = vmax.f32 %v619_v10, 0.0 }
 0x104   :  { %v936_v12 = vadd.f32 %v935_v7, %v182_v58  ;;  %v4576_v18 = vpack.c.bf16 %v1170_v8, %v1166_v3  ;;  %v623_v22 = vadd.f32 %v622_v15, %v187_v17  ;;  %v624_v24 = vpop.f32.mrb[17].mxu0  ;;  %v207_v15 = vpop.permute.xlu0 %206 }
 0x105   :  { %v1172_v9 = vmax.f32 %v934_v2, 0.0  ;;  %v4574_v27 = vpack.c.bf16 %v1171_v20, %v1167_v13  ;;  %v625_v29 = vadd.f32 %v624_v24, %v187_v17  ;;  %v212_v24 = vpop.permute.xlu1 %211 }
 0x106   :  { %v939_v16 = vpop.f32.mrb[16].mxu1  ;;  %v1173_v21 = vmax.f32 %v936_v12, 0.0  ;;  %v1174_v35 = vmax.f32 %v623_v22, 0.0 }
 0x107   :  { %v4662_v19 = vpack.c.bf16 %v1172_v9, %v1168_v4  ;;  %v940_v23 = vadd.f32 %v939_v16, %v187_v17  ;;  %v941_v25 = vpop.f32.mrb[17].mxu1  ;;  %v628_v31 = vpop.f32.mrb[18].mxu0  ;;  %4575 = vmatprep.subr.bf16.mxu0 %v4574_v27  ;;  %v1175_v43 = vmax.f32 %v625_v29, 0.0 }
 0x108   :  { %v4660_v28 = vpack.c.bf16 %v1173_v21, %v1169_v14  ;;  %v942_v30 = vadd.f32 %v941_v25, %v187_v17  ;;  %v629_v33 = vadd.f32 %v628_v31, %v192_v26  ;;  %v630_v37 = vpop.f32.mrb[19].mxu0  ;;  %4577 = vmatpush1.bf16.msra.mxu0 %v4576_v18 }
 0x109   :  { %v1176_v36 = vmax.f32 %v940_v23, 0.0  ;;  %v631_v41 = vadd.f32 %v630_v37, %v192_v26 }
 0x10a   :  { %v945_v32 = vpop.f32.mrb[18].mxu1  ;;  %4661 = vmatprep.subr.bf16.mxu1 %v4660_v28  ;;  %v1178_v39 = vmax.f32 %v629_v33, 0.0  ;;  %v1177_v44 = vmax.f32 %v942_v30, 0.0 }
 0x10b   :  { %v946_v34 = vadd.f32 %v945_v32, %v192_v26  ;;  %v947_v38 = vpop.f32.mrb[19].mxu1  ;;  %4663 = vmatpush1.bf16.msra.mxu1 %v4662_v19  ;;  %v634_v45 = vpop.f32.mrb[20].mxu0  ;;  %v1179_v50 = vmax.f32 %v631_v41, 0.0 }
 0x10c   :  { %v948_v42 = vadd.f32 %v947_v38, %v192_v26  ;;  %v4580_v48 = vpack.c.bf16 %v1178_v39, %v1174_v35  ;;  %v635_v52 = vadd.f32 %v634_v45, %v197_v47  ;;  %v636_v54 = vpop.f32.mrb[21].mxu0  ;;  %v217_v45 = vpop.permute.xlu0 %216 }
 0x10d   :  { %v1180_v40 = vmax.f32 %v946_v34, 0.0  ;;  %v4578_v57 = vpack.c.bf16 %v1179_v50, %v1175_v43  ;;  %v637_v59 = vadd.f32 %v636_v54, %v197_v47  ;;  %v222_v54 = vpop.permute.xlu1 %221 }
 0x10e   :  { %v951_v46 = vpop.f32.mrb[20].mxu1  ;;  %v1181_v51 = vmax.f32 %v948_v42, 0.0  ;;  %v1182_v1 = vmax.f32 %v635_v52, 0.0 }
 0x10f   :  { %v4666_v49 = vpack.c.bf16 %v1180_v40, %v1176_v36  ;;  %v952_v53 = vadd.f32 %v951_v46, %v197_v47  ;;  %v953_v55 = vpop.f32.mrb[21].mxu1  ;;  %v640_v61 = vpop.f32.mrb[22].mxu0  ;;  %4579 = vmatprep.subr.bf16.mxu0 %v4578_v57  ;;  %v1183_v10 = vmax.f32 %v637_v59, 0.0 }
 0x110   :  { %v4664_v58 = vpack.c.bf16 %v1181_v51, %v1177_v44  ;;  %v954_v60 = vadd.f32 %v953_v55, %v197_v47  ;;  %v641_v63 = vadd.f32 %v640_v61, %v202_v56  ;;  %v642_v3 = vpop.f32.mrb[23].mxu0  ;;  %4581 = vmatpush1.bf16.msra.mxu0 %v4580_v48 }
 0x111   :  { %v1184_v2 = vmax.f32 %v952_v53, 0.0  ;;  %v643_v8 = vadd.f32 %v642_v3, %v202_v56 }
 0x112   :  { %v957_v62 = vpop.f32.mrb[22].mxu1  ;;  %4665 = vmatprep.subr.bf16.mxu1 %v4664_v58  ;;  %v1186_v5 = vmax.f32 %v641_v63, 0.0  ;;  %v1185_v12 = vmax.f32 %v954_v60, 0.0 }
 0x113   :  { %v958_v0 = vadd.f32 %v957_v62, %v202_v56  ;;  %v959_v4 = vpop.f32.mrb[23].mxu1  ;;  %4667 = vmatpush1.bf16.msra.mxu1 %v4666_v49  ;;  %v646_v13 = vpop.f32.mrb[24].mxu0  ;;  %v1187_v18 = vmax.f32 %v643_v8, 0.0 }
 0x114   :  { %v960_v9 = vadd.f32 %v959_v4, %v202_v56  ;;  %v4584_v16 = vpack.c.bf16 %v1186_v5, %v1182_v1  ;;  %v647_v20 = vadd.f32 %v646_v13, %v207_v15  ;;  %v648_v22 = vpop.f32.mrb[25].mxu0  ;;  %v227_v13 = vpop.permute.xlu0 %226 }
 0x115   :  { %v1188_v7 = vmax.f32 %v958_v0, 0.0  ;;  %v4582_v25 = vpack.c.bf16 %v1187_v18, %v1183_v10  ;;  %v649_v27 = vadd.f32 %v648_v22, %v207_v15  ;;  %v232_v22 = vpop.permute.xlu1 %231 }
 0x116   :  { %v963_v14 = vpop.f32.mrb[24].mxu1  ;;  %v1189_v19 = vmax.f32 %v960_v9, 0.0  ;;  %v1190_v33 = vmax.f32 %v647_v20, 0.0 }
 0x117   :  { %v4670_v17 = vpack.c.bf16 %v1188_v7, %v1184_v2  ;;  %v964_v21 = vadd.f32 %v963_v14, %v207_v15  ;;  %v965_v23 = vpop.f32.mrb[25].mxu1  ;;  %v652_v29 = vpop.f32.mrb[26].mxu0  ;;  %4583 = vmatprep.subr.bf16.mxu0 %v4582_v25  ;;  %v1191_v41 = vmax.f32 %v649_v27, 0.0 }
 0x118   :  { %v4668_v26 = vpack.c.bf16 %v1189_v19, %v1185_v12  ;;  %v966_v28 = vadd.f32 %v965_v23, %v207_v15  ;;  %v653_v31 = vadd.f32 %v652_v29, %v212_v24  ;;  %v654_v35 = vpop.f32.mrb[27].mxu0  ;;  %4585 = vmatpush1.bf16.msra.mxu0 %v4584_v16 }
 0x119   :  { %v1192_v34 = vmax.f32 %v964_v21, 0.0  ;;  %v655_v39 = vadd.f32 %v654_v35, %v212_v24 }
 0x11a   :  { %v969_v30 = vpop.f32.mrb[26].mxu1  ;;  %4669 = vmatprep.subr.bf16.mxu1 %v4668_v26  ;;  %v1194_v37 = vmax.f32 %v653_v31, 0.0  ;;  %v1193_v42 = vmax.f32 %v966_v28, 0.0 }
 0x11b   :  { %v970_v32 = vadd.f32 %v969_v30, %v212_v24  ;;  %v971_v36 = vpop.f32.mrb[27].mxu1  ;;  %4671 = vmatpush1.bf16.msra.mxu1 %v4670_v17  ;;  %v658_v43 = vpop.f32.mrb[28].mxu0  ;;  %v1195_v48 = vmax.f32 %v655_v39, 0.0 }
 0x11c   :  { %v972_v40 = vadd.f32 %v971_v36, %v212_v24  ;;  %v4588_v46 = vpack.c.bf16 %v1194_v37, %v1190_v33  ;;  %v659_v50 = vadd.f32 %v658_v43, %v217_v45  ;;  %v660_v52 = vpop.f32.mrb[29].mxu0  ;;  %v237_v43 = vpop.permute.xlu0 %236 }
 0x11d   :  { %v1196_v38 = vmax.f32 %v970_v32, 0.0  ;;  %v4586_v55 = vpack.c.bf16 %v1195_v48, %v1191_v41  ;;  %v661_v57 = vadd.f32 %v660_v52, %v217_v45  ;;  %v242_v52 = vpop.permute.xlu1 %241 }
 0x11e   :  { %v975_v44 = vpop.f32.mrb[28].mxu1  ;;  %v1197_v49 = vmax.f32 %v972_v40, 0.0  ;;  %v1198_v63 = vmax.f32 %v659_v50, 0.0 }
 0x11f   :  { %v4674_v47 = vpack.c.bf16 %v1196_v38, %v1192_v34  ;;  %v976_v51 = vadd.f32 %v975_v44, %v217_v45  ;;  %v977_v53 = vpop.f32.mrb[29].mxu1  ;;  %v664_v59 = vpop.f32.mrb[30].mxu0  ;;  %4587 = vmatprep.subr.bf16.mxu0 %v4586_v55  ;;  %v1199_v8 = vmax.f32 %v661_v57, 0.0 }
 0x120   :  { %v4672_v56 = vpack.c.bf16 %v1197_v49, %v1193_v42  ;;  %v978_v58 = vadd.f32 %v977_v53, %v217_v45  ;;  %v665_v61 = vadd.f32 %v664_v59, %v222_v54  ;;  %v666_v1 = vpop.f32.mrb[31].mxu0  ;;  %4589 = vmatpush1.bf16.msra.mxu0 %v4588_v46 }
 0x121   :  { %v1200_v0 = vmax.f32 %v976_v51, 0.0  ;;  %v667_v5 = vadd.f32 %v666_v1, %v222_v54 }
 0x122   :  { %v981_v60 = vpop.f32.mrb[30].mxu1  ;;  %4673 = vmatprep.subr.bf16.mxu1 %v4672_v56  ;;  %v1202_v3 = vmax.f32 %v665_v61, 0.0  ;;  %v1201_v9 = vmax.f32 %v978_v58, 0.0 }
 0x123   :  { %v982_v62 = vadd.f32 %v981_v60, %v222_v54  ;;  %v983_v2 = vpop.f32.mrb[31].mxu1  ;;  %4675 = vmatpush1.bf16.msra.mxu1 %v4674_v47  ;;  %v670_v10 = vpop.f32.mrb[32].mxu0  ;;  %v1203_v16 = vmax.f32 %v667_v5, 0.0 }
 0x124   :  { %v984_v7 = vadd.f32 %v983_v2, %v222_v54  ;;  %v4592_v14 = vpack.c.bf16 %v1202_v3, %v1198_v63  ;;  %v671_v18 = vadd.f32 %v670_v10, %v227_v13  ;;  %v672_v20 = vpop.f32.mrb[33].mxu0  ;;  %v247_v10 = vpop.permute.xlu0 %246 }
 0x125   :  { %v1204_v4 = vmax.f32 %v982_v62, 0.0  ;;  %v4590_v23 = vpack.c.bf16 %v1203_v16, %v1199_v8  ;;  %v673_v25 = vadd.f32 %v672_v20, %v227_v13  ;;  %v252_v20 = vpop.permute.xlu1 %251 }
 0x126   :  { %v987_v12 = vpop.f32.mrb[32].mxu1  ;;  %v1205_v17 = vmax.f32 %v984_v7, 0.0  ;;  %v1206_v31 = vmax.f32 %v671_v18, 0.0 }
 0x127   :  { %v4678_v15 = vpack.c.bf16 %v1204_v4, %v1200_v0  ;;  %v988_v19 = vadd.f32 %v987_v12, %v227_v13  ;;  %v989_v21 = vpop.f32.mrb[33].mxu1  ;;  %v676_v27 = vpop.f32.mrb[34].mxu0  ;;  %4591 = vmatprep.subr.bf16.mxu0 %v4590_v23  ;;  %v1207_v39 = vmax.f32 %v673_v25, 0.0 }
 0x128   :  { %v4676_v24 = vpack.c.bf16 %v1205_v17, %v1201_v9  ;;  %v990_v26 = vadd.f32 %v989_v21, %v227_v13  ;;  %v677_v29 = vadd.f32 %v676_v27, %v232_v22  ;;  %v678_v33 = vpop.f32.mrb[35].mxu0  ;;  %4593 = vmatpush1.bf16.msra.mxu0 %v4592_v14 }
 0x129   :  { %v1208_v32 = vmax.f32 %v988_v19, 0.0  ;;  %v679_v37 = vadd.f32 %v678_v33, %v232_v22 }
 0x12a   :  { %v993_v28 = vpop.f32.mrb[34].mxu1  ;;  %4677 = vmatprep.subr.bf16.mxu1 %v4676_v24  ;;  %v1210_v35 = vmax.f32 %v677_v29, 0.0  ;;  %v1209_v40 = vmax.f32 %v990_v26, 0.0 }
 0x12b   :  { %v994_v30 = vadd.f32 %v993_v28, %v232_v22  ;;  %v995_v34 = vpop.f32.mrb[35].mxu1  ;;  %4679 = vmatpush1.bf16.msra.mxu1 %v4678_v15  ;;  %v682_v41 = vpop.f32.mrb[36].mxu0  ;;  %v1211_v46 = vmax.f32 %v679_v37, 0.0 }
 0x12c   :  { %v996_v38 = vadd.f32 %v995_v34, %v232_v22  ;;  %v4596_v44 = vpack.c.bf16 %v1210_v35, %v1206_v31  ;;  %v683_v48 = vadd.f32 %v682_v41, %v237_v43  ;;  %v684_v50 = vpop.f32.mrb[37].mxu0 }
 0x12d   :  { %v1212_v36 = vmax.f32 %v994_v30, 0.0  ;;  %v4594_v53 = vpack.c.bf16 %v1211_v46, %v1207_v39  ;;  %v685_v55 = vadd.f32 %v684_v50, %v237_v43 }
 0x12e   :  { %v999_v42 = vpop.f32.mrb[36].mxu1  ;;  %v1213_v47 = vmax.f32 %v996_v38, 0.0  ;;  %v1214_v61 = vmax.f32 %v683_v48, 0.0  ;;  %v262_v48 = vpop.permute.xlu1 %261 }
 0x12f   :  { %v4682_v45 = vpack.c.bf16 %v1212_v36, %v1208_v32  ;;  %v1000_v49 = vadd.f32 %v999_v42, %v237_v43  ;;  %v1001_v51 = vpop.f32.mrb[37].mxu1  ;;  %v688_v57 = vpop.f32.mrb[38].mxu0  ;;  %4595 = vmatprep.subr.bf16.mxu0 %v4594_v53  ;;  %v1215_v5 = vmax.f32 %v685_v55, 0.0 }
 0x130   :  { %v4680_v54 = vpack.c.bf16 %v1213_v47, %v1209_v40  ;;  %v1002_v56 = vadd.f32 %v1001_v51, %v237_v43  ;;  %v689_v59 = vadd.f32 %v688_v57, %v242_v52  ;;  %v690_v63 = vpop.f32.mrb[39].mxu0  ;;  %4597 = vmatpush1.bf16.msra.mxu0 %v4596_v44  ;;  %v257_v47 = vpop.permute.xlu0 %256 }
 0x131   :  { %v1216_v62 = vmax.f32 %v1000_v49, 0.0  ;;  %v691_v3 = vadd.f32 %v690_v63, %v242_v52 }
 0x132   :  { %v1005_v58 = vpop.f32.mrb[38].mxu1  ;;  %4681 = vmatprep.subr.bf16.mxu1 %v4680_v54  ;;  %v1218_v1 = vmax.f32 %v689_v59, 0.0  ;;  %v1217_v7 = vmax.f32 %v1002_v56, 0.0 }
 0x133   :  { %v1006_v60 = vadd.f32 %v1005_v58, %v242_v52  ;;  %v1007_v0 = vpop.f32.mrb[39].mxu1  ;;  %4683 = vmatpush1.bf16.msra.mxu1 %v4682_v45  ;;  %v694_v8 = vpop.f32.mrb[40].mxu0  ;;  %v1219_v14 = vmax.f32 %v691_v3, 0.0 }
 0x134   :  { %v1008_v4 = vadd.f32 %v1007_v0, %v242_v52  ;;  %v4600_v12 = vpack.c.bf16 %v1218_v1, %v1214_v61  ;;  %v695_v16 = vadd.f32 %v694_v8, %v247_v10  ;;  %v696_v18 = vpop.f32.mrb[41].mxu0 }
 0x135   :  { %v1220_v2 = vmax.f32 %v1006_v60, 0.0  ;;  %v4598_v21 = vpack.c.bf16 %v1219_v14, %v1215_v5  ;;  %v697_v23 = vadd.f32 %v696_v18, %v247_v10  ;;  %v272_v18 = vpop.permute.xlu1 %271 }
 0x136   :  { %v1011_v9 = vpop.f32.mrb[40].mxu1  ;;  %v1221_v15 = vmax.f32 %v1008_v4, 0.0  ;;  %v1222_v29 = vmax.f32 %v695_v16, 0.0 }
 0x137   :  { %v4686_v13 = vpack.c.bf16 %v1220_v2, %v1216_v62  ;;  %v1012_v17 = vadd.f32 %v1011_v9, %v247_v10  ;;  %v1013_v19 = vpop.f32.mrb[41].mxu1  ;;  %v700_v25 = vpop.f32.mrb[42].mxu0  ;;  %4599 = vmatprep.subr.bf16.mxu0 %v4598_v21  ;;  %v1223_v37 = vmax.f32 %v697_v23, 0.0 }
 0x138   :  { %v4684_v22 = vpack.c.bf16 %v1221_v15, %v1217_v7  ;;  %v1014_v24 = vadd.f32 %v1013_v19, %v247_v10  ;;  %v701_v27 = vadd.f32 %v700_v25, %v252_v20  ;;  %v702_v31 = vpop.f32.mrb[43].mxu0  ;;  %4601 = vmatpush1.bf16.msra.mxu0 %v4600_v12  ;;  %v267_v15 = vpop.permute.xlu0 %266 }
 0x139   :  { %v1224_v30 = vmax.f32 %v1012_v17, 0.0  ;;  %v703_v35 = vadd.f32 %v702_v31, %v252_v20 }
 0x13a   :  { %v1017_v26 = vpop.f32.mrb[42].mxu1  ;;  %4685 = vmatprep.subr.bf16.mxu1 %v4684_v22  ;;  %v1226_v33 = vmax.f32 %v701_v27, 0.0  ;;  %v1225_v38 = vmax.f32 %v1014_v24, 0.0 }
 0x13b   :  { %v1018_v28 = vadd.f32 %v1017_v26, %v252_v20  ;;  %v1019_v32 = vpop.f32.mrb[43].mxu1  ;;  %4687 = vmatpush1.bf16.msra.mxu1 %v4686_v13  ;;  %v706_v39 = vpop.f32.mrb[44].mxu0  ;;  %v1227_v43 = vmax.f32 %v703_v35, 0.0 }
 0x13c   :  { %v1020_v36 = vadd.f32 %v1019_v32, %v252_v20  ;;  %v4604_v41 = vpack.c.bf16 %v1226_v33, %v1222_v29  ;;  %v708_v45 = vpop.f32.mrb[45].mxu0  ;;  %v707_v51 = vadd.f32 %v706_v39, %v257_v47 }
 0x13d   :  { %v1228_v34 = vmax.f32 %v1018_v28, 0.0  ;;  %v4602_v49 = vpack.c.bf16 %v1227_v43, %v1223_v37  ;;  %v709_v53 = vadd.f32 %v708_v45, %v257_v47  ;;  %v277_v45 = vpop.permute.xlu0 %276 }
 0x13e   :  { %v1023_v40 = vpop.f32.mrb[44].mxu1  ;;  %v1229_v44 = vmax.f32 %v1020_v36, 0.0  ;;  %v1230_v63 = vmax.f32 %v707_v51, 0.0 }
 0x13f   :  { %v4690_v42 = vpack.c.bf16 %v1228_v34, %v1224_v30  ;;  %v1025_v46 = vpop.f32.mrb[45].mxu1  ;;  %v1024_v52 = vadd.f32 %v1023_v40, %v257_v47  ;;  %v712_v55 = vpop.f32.mrb[46].mxu0  ;;  %4603 = vmatprep.subr.bf16.mxu0 %v4602_v49  ;;  %v1231_v3 = vmax.f32 %v709_v53, 0.0 }
 0x140   :  { %v4688_v50 = vpack.c.bf16 %v1229_v44, %v1225_v38  ;;  %v1026_v54 = vadd.f32 %v1025_v46, %v257_v47  ;;  %v713_v57 = vadd.f32 %v712_v55, %v262_v48  ;;  %v714_v59 = vpop.f32.mrb[47].mxu0  ;;  %4605 = vmatpush1.bf16.msra.mxu0 %v4604_v41 }
 0x141   :  { %v715_v61 = vadd.f32 %v714_v59, %v262_v48  ;;  %v1232_v0 = vmax.f32 %v1024_v52, 0.0 }
 0x142   :  { %v1029_v56 = vpop.f32.mrb[46].mxu1  ;;  %4689 = vmatprep.subr.bf16.mxu1 %v4688_v50  ;;  %v1234_v1 = vmax.f32 %v713_v57, 0.0  ;;  %v1233_v4 = vmax.f32 %v1026_v54, 0.0 }
 0x143   :  { %v1030_v58 = vadd.f32 %v1029_v56, %v262_v48  ;;  %v1031_v60 = vpop.f32.mrb[47].mxu1  ;;  %4691 = vmatpush1.bf16.msra.mxu1 %v4690_v42  ;;  %v1235_v5 = vmax.f32 %v715_v61, 0.0  ;;  %v718_v8 = vpop.f32.mrb[48].mxu0 }
 0x144   :  { %v1032_v62 = vadd.f32 %v1031_v60, %v262_v48  ;;  %v4608_v10 = vpack.c.bf16 %v1234_v1, %v1230_v63  ;;  %v720_v13 = vpop.f32.mrb[49].mxu0  ;;  %v719_v19 = vadd.f32 %v718_v8, %v267_v15  ;;  %v282_v48 = vpop.permute.xlu1 %281 }
 0x145   :  { %v1236_v2 = vmax.f32 %v1030_v58, 0.0  ;;  %v4606_v16 = vpack.c.bf16 %v1235_v5, %v1231_v3  ;;  %v721_v21 = vadd.f32 %v720_v13, %v267_v15  ;;  %v287_v13 = vpop.permute.xlu0 %286 }
 0x146   :  { %v1237_v7 = vmax.f32 %v1032_v62, 0.0  ;;  %v1035_v9 = vpop.f32.mrb[48].mxu1  ;;  %v1238_v31 = vmax.f32 %v719_v19, 0.0 }
 0x147   :  { %v4694_v12 = vpack.c.bf16 %v1236_v2, %v1232_v0  ;;  %v1037_v14 = vpop.f32.mrb[49].mxu1  ;;  %v1036_v20 = vadd.f32 %v1035_v9, %v267_v15  ;;  %v724_v23 = vpop.f32.mrb[50].mxu0  ;;  %4607 = vmatprep.subr.bf16.mxu0 %v4606_v16  ;;  %v1239_v35 = vmax.f32 %v721_v21, 0.0 }
 0x148   :  { %v4692_v17 = vpack.c.bf16 %v1237_v7, %v1233_v4  ;;  %v1038_v22 = vadd.f32 %v1037_v14, %v267_v15  ;;  %v725_v25 = vadd.f32 %v724_v23, %v272_v18  ;;  %v726_v27 = vpop.f32.mrb[51].mxu0  ;;  %4609 = vmatpush1.bf16.msra.mxu0 %v4608_v10  ;;  %v292_v16 = vpop.permute.xlu1 %291 }
 0x149   :  { %v727_v29 = vadd.f32 %v726_v27, %v272_v18  ;;  %v1240_v32 = vmax.f32 %v1036_v20, 0.0 }
 0x14a   :  { %v1041_v24 = vpop.f32.mrb[50].mxu1  ;;  %4693 = vmatprep.subr.bf16.mxu1 %v4692_v17  ;;  %v1242_v33 = vmax.f32 %v725_v25, 0.0  ;;  %v1241_v36 = vmax.f32 %v1038_v22, 0.0 }
 0x14b   :  { %v1042_v26 = vadd.f32 %v1041_v24, %v272_v18  ;;  %v1043_v28 = vpop.f32.mrb[51].mxu1  ;;  %4695 = vmatpush1.bf16.msra.mxu1 %v4694_v12  ;;  %v1243_v37 = vmax.f32 %v727_v29, 0.0  ;;  %v730_v39 = vpop.f32.mrb[52].mxu0 }
 0x14c   :  { %v1044_v30 = vadd.f32 %v1043_v28, %v272_v18  ;;  %v4612_v41 = vpack.c.bf16 %v1242_v33, %v1238_v31  ;;  %v732_v43 = vpop.f32.mrb[53].mxu0  ;;  %v731_v49 = vadd.f32 %v730_v39, %v277_v45 }
 0x14d   :  { %v1244_v34 = vmax.f32 %v1042_v26, 0.0  ;;  %v4610_v46 = vpack.c.bf16 %v1243_v37, %v1239_v35  ;;  %v733_v51 = vadd.f32 %v732_v43, %v277_v45  ;;  %v297_v43 = vpop.permute.xlu0 %296 }
 0x14e   :  { %v1245_v38 = vmax.f32 %v1044_v30, 0.0  ;;  %v1047_v40 = vpop.f32.mrb[52].mxu1  ;;  %v1246_v61 = vmax.f32 %v731_v49, 0.0 }
 0x14f   :  { %v4698_v42 = vpack.c.bf16 %v1244_v34, %v1240_v32  ;;  %v1049_v44 = vpop.f32.mrb[53].mxu1  ;;  %v1048_v50 = vadd.f32 %v1047_v40, %v277_v45  ;;  %v736_v53 = vpop.f32.mrb[54].mxu0  ;;  %4611 = vmatprep.subr.bf16.mxu0 %v4610_v46  ;;  %v1247_v1 = vmax.f32 %v733_v51, 0.0 }
 0x150   :  { %v4696_v47 = vpack.c.bf16 %v1245_v38, %v1241_v36  ;;  %v1050_v52 = vadd.f32 %v1049_v44, %v277_v45  ;;  %v737_v55 = vadd.f32 %v736_v53, %v282_v48  ;;  %v738_v57 = vpop.f32.mrb[55].mxu0  ;;  %4613 = vmatpush1.bf16.msra.mxu0 %v4612_v41  ;;  %v302_v46 = vpop.permute.xlu1 %301 }
 0x151   :  { %v739_v59 = vadd.f32 %v738_v57, %v282_v48  ;;  %v1248_v62 = vmax.f32 %v1048_v50, 0.0 }
 0x152   :  { %v1053_v54 = vpop.f32.mrb[54].mxu1  ;;  %4697 = vmatprep.subr.bf16.mxu1 %v4696_v47  ;;  %v1250_v63 = vmax.f32 %v737_v55, 0.0  ;;  %v1249_v2 = vmax.f32 %v1050_v52, 0.0 }
 0x153   :  { %v1054_v56 = vadd.f32 %v1053_v54, %v282_v48  ;;  %v1055_v58 = vpop.f32.mrb[55].mxu1  ;;  %4699 = vmatpush1.bf16.msra.mxu1 %v4698_v42  ;;  %v1251_v3 = vmax.f32 %v739_v59, 0.0  ;;  %v742_v5 = vpop.f32.mrb[56].mxu0 }
 0x154   :  { %v1056_v60 = vadd.f32 %v1055_v58, %v282_v48  ;;  %v4616_v8 = vpack.c.bf16 %v1250_v63, %v1246_v61  ;;  %v744_v10 = vpop.f32.mrb[57].mxu0  ;;  %v743_v17 = vadd.f32 %v742_v5, %v287_v13 }
 0x155   :  { %v1252_v0 = vmax.f32 %v1054_v56, 0.0  ;;  %v4614_v14 = vpack.c.bf16 %v1251_v3, %v1247_v1  ;;  %v745_v19 = vadd.f32 %v744_v10, %v287_v13  ;;  %v307_v10 = vpop.permute.xlu0 %306 }
 0x156   :  { %v1253_v4 = vmax.f32 %v1056_v60, 0.0  ;;  %v1059_v7 = vpop.f32.mrb[56].mxu1  ;;  %v1254_v29 = vmax.f32 %v743_v17, 0.0 }
 0x157   :  { %v4702_v9 = vpack.c.bf16 %v1252_v0, %v1248_v62  ;;  %v1061_v12 = vpop.f32.mrb[57].mxu1  ;;  %v1060_v18 = vadd.f32 %v1059_v7, %v287_v13  ;;  %v748_v21 = vpop.f32.mrb[58].mxu0  ;;  %4615 = vmatprep.subr.bf16.mxu0 %v4614_v14  ;;  %v1255_v33 = vmax.f32 %v745_v19, 0.0 }
 0x158   :  { %v4700_v15 = vpack.c.bf16 %v1253_v4, %v1249_v2  ;;  %v1062_v20 = vadd.f32 %v1061_v12, %v287_v13  ;;  %v749_v23 = vadd.f32 %v748_v21, %v292_v16  ;;  %v750_v25 = vpop.f32.mrb[59].mxu0  ;;  %4617 = vmatpush1.bf16.msra.mxu0 %v4616_v8  ;;  %v312_v14 = vpop.permute.xlu1 %311 }
 0x159   :  { %v751_v27 = vadd.f32 %v750_v25, %v292_v16  ;;  %v1256_v30 = vmax.f32 %v1060_v18, 0.0  ;;  %v1310_v25 = vld [vmem:[%s6453_s3] sm:$0xff] }
 0x15a   :  { %v1065_v22 = vpop.f32.mrb[58].mxu1  ;;  %4701 = vmatprep.subr.bf16.mxu1 %v4700_v15  ;;  %v1258_v31 = vmax.f32 %v749_v23, 0.0  ;;  %v1257_v34 = vmax.f32 %v1062_v20, 0.0 }
 0x15b   :  { %v1066_v24 = vadd.f32 %v1065_v22, %v292_v16  ;;  %v1067_v26 = vpop.f32.mrb[59].mxu1  ;;  %4703 = vmatpush1.bf16.msra.mxu1 %v4702_v9  ;;  %v1259_v35 = vmax.f32 %v751_v27, 0.0  ;;  %v754_v37 = vpop.f32.mrb[60].mxu0 }
 0x15c   :  { %v1068_v28 = vadd.f32 %v1067_v26, %v292_v16  ;;  %v4620_v39 = vpack.c.bf16 %v1258_v31, %v1254_v29  ;;  %v756_v41 = vpop.f32.mrb[61].mxu0  ;;  %v755_v47 = vadd.f32 %v754_v37, %v297_v43 }
 0x15d   :  { %v1260_v32 = vmax.f32 %v1066_v24, 0.0  ;;  %v4618_v44 = vpack.c.bf16 %v1259_v35, %v1255_v33  ;;  %v757_v49 = vadd.f32 %v756_v41, %v297_v43 }
 0x15e   :  { %v1261_v36 = vmax.f32 %v1068_v28, 0.0  ;;  %v1071_v38 = vpop.f32.mrb[60].mxu1  ;;  %v1262_v59 = vmax.f32 %v755_v47, 0.0  ;;  %v1314_v28 = vld [vmem:[%s6453_s3 + $0x20] sm:$0xff]  ;;  %v322_v47 = vpop.permute.xlu1 %321 }
 0x15f   :  { %v4706_v40 = vpack.c.bf16 %v1260_v32, %v1256_v30  ;;  %v1073_v42 = vpop.f32.mrb[61].mxu1  ;;  %v1072_v48 = vadd.f32 %v1071_v38, %v297_v43  ;;  %v760_v51 = vpop.f32.mrb[62].mxu0  ;;  %4619 = vmatprep.subr.bf16.mxu0 %v4618_v44  ;;  %v1263_v63 = vmax.f32 %v757_v49, 0.0 }
 0x160   :  { %v4704_v45 = vpack.c.bf16 %v1261_v36, %v1257_v34  ;;  %v1074_v50 = vadd.f32 %v1073_v42, %v297_v43  ;;  %v761_v53 = vadd.f32 %v760_v51, %v302_v46  ;;  %v762_v55 = vpop.f32.mrb[63].mxu0  ;;  %4621 = vmatpush1.bf16.msra.mxu0 %v4620_v39  ;;  %v1313_v43 = vld [vmem:[%s6453_s3 + $0x18] sm:$0xff]  ;;  %v317_v44 = vpop.permute.xlu0 %316 }
 0x161   :  { %v763_v57 = vadd.f32 %v762_v55, %v302_v46  ;;  %v1264_v60 = vmax.f32 %v1072_v48, 0.0 }
 0x162   :  { %v1077_v52 = vpop.f32.mrb[62].mxu1  ;;  %4705 = vmatprep.subr.bf16.mxu1 %v4704_v45  ;;  %v1266_v61 = vmax.f32 %v761_v53, 0.0  ;;  %v1265_v0 = vmax.f32 %v1074_v50, 0.0 }
 0x163   :  { %v1078_v54 = vadd.f32 %v1077_v52, %v302_v46  ;;  %v1079_v56 = vpop.f32.mrb[63].mxu1  ;;  %4707 = vmatpush1.bf16.msra.mxu1 %v4706_v40  ;;  %v1267_v1 = vmax.f32 %v763_v57, 0.0  ;;  %v766_v3 = vpop.f32.mrb[64].mxu0 }
 0x164   :  { %v1080_v58 = vadd.f32 %v1079_v56, %v302_v46  ;;  %v4624_v5 = vpack.c.bf16 %v1266_v61, %v1262_v59  ;;  %v768_v8 = vpop.f32.mrb[65].mxu0  ;;  %v767_v15 = vadd.f32 %v766_v3, %v307_v10  ;;  %v1316_v59 = vld [vmem:[%s6453_s3 + $0x30] sm:$0xff] }
 0x165   :  { %v1268_v62 = vmax.f32 %v1078_v54, 0.0  ;;  %v4622_v12 = vpack.c.bf16 %v1267_v1, %v1263_v63  ;;  %v769_v17 = vadd.f32 %v768_v8, %v307_v10  ;;  %v1317_v54 = vld [vmem:[%s6453_s3 + $0x38] sm:$0xff] }
 0x166   :  { %v1269_v2 = vmax.f32 %v1080_v58, 0.0  ;;  %v1083_v4 = vpop.f32.mrb[64].mxu1  ;;  %v1270_v29 = vmax.f32 %v767_v15, 0.0  ;;  %v1319_v15 = vld [vmem:[%s6453_s3 + $0x48] sm:$0xff] }
 0x167   :  { %v4710_v7 = vpack.c.bf16 %v1268_v62, %v1264_v60  ;;  %v1085_v9 = vpop.f32.mrb[65].mxu1  ;;  %v1084_v16 = vadd.f32 %v1083_v4, %v307_v10  ;;  %v772_v19 = vpop.f32.mrb[66].mxu0  ;;  %4623 = vmatprep.subr.bf16.mxu0 %v4622_v12  ;;  %v1271_v33 = vmax.f32 %v769_v17, 0.0 }
 0x168   :  { %v4708_v13 = vpack.c.bf16 %v1269_v2, %v1265_v0  ;;  %v1086_v18 = vadd.f32 %v1085_v9, %v307_v10  ;;  %v773_v21 = vadd.f32 %v772_v19, %v312_v14  ;;  %v774_v23 = vpop.f32.mrb[67].mxu0  ;;  %4625 = vmatpush1.bf16.msra.mxu0 %v4624_v5  ;;  %v1320_v2 = vld [vmem:[%s6453_s3 + $0x50] sm:$0xff]  ;;  %v332_v19 = vpop.permute.xlu1 %331 }
 0x169   :  { %v775_v26 = vadd.f32 %v774_v23, %v312_v14  ;;  %v1272_v30 = vmax.f32 %v1084_v16, 0.0  ;;  %v327_v16 = vpop.permute.xlu0 %326 }
 0x16a   :  { %v1089_v20 = vpop.f32.mrb[66].mxu1  ;;  %4709 = vmatprep.subr.bf16.mxu1 %v4708_v13  ;;  %v1274_v31 = vmax.f32 %v773_v21, 0.0  ;;  %v1273_v34 = vmax.f32 %v1086_v18, 0.0 }
 0x16b   :  { %v1090_v22 = vadd.f32 %v1089_v20, %v312_v14  ;;  %v1091_v24 = vpop.f32.mrb[67].mxu1  ;;  %4711 = vmatpush1.bf16.msra.mxu1 %v4710_v7  ;;  %v1275_v35 = vmax.f32 %v775_v26, 0.0  ;;  %v778_v37 = vpop.f32.mrb[68].mxu0  ;;  %1640 = vmatmul.mubr.f32.vlgmr.msra.gmra.mrb[84].mxu0 %v1310_v25  ;;  %v1323_v26 = vld [vmem:[%s6453_s3 + $0x68] sm:$0xff] }
 0x16c   :  { %v1092_v27 = vadd.f32 %v1091_v24, %v312_v14  ;;  %v4628_v39 = vpack.c.bf16 %v1274_v31, %v1270_v29  ;;  %v780_v41 = vpop.f32.mrb[69].mxu0  ;;  %1645 = vmatprep.mubr.f32.mxu0 %v1314_v28  ;;  %v779_v48 = vadd.f32 %v778_v37, %v317_v44  ;;  %v1322_v31 = vld [vmem:[%s6453_s3 + $0x60] sm:$0xff] }
 0x16d   :  { %v1276_v32 = vmax.f32 %v1090_v22, 0.0  ;;  %v4626_v45 = vpack.c.bf16 %v1275_v35, %v1271_v33  ;;  %v781_v50 = vadd.f32 %v780_v41, %v317_v44 }
 0x16e   :  { %v1277_v36 = vmax.f32 %v1092_v27, 0.0  ;;  %v1095_v38 = vpop.f32.mrb[68].mxu1  ;;  %2022 = vmatmul.mubr.f32.vlgmr.msra.gmra.mrb[84].mxu1 %v1310_v25  ;;  %v1278_v62 = vmax.f32 %v779_v48, 0.0 }
 0x16f   :  { %v4714_v40 = vpack.c.bf16 %v1276_v32, %v1272_v30  ;;  %v1097_v42 = vpop.f32.mrb[69].mxu1  ;;  %2027 = vmatprep.mubr.f32.mxu1 %v1314_v28  ;;  %v1096_v49 = vadd.f32 %v1095_v38, %v317_v44  ;;  %v784_v52 = vpop.f32.mrb[70].mxu0  ;;  %1646 = vmatmul.mubr.f32.gmra.mrb[86].mxu0 %v1313_v43  ;;  %v1279_v3 = vmax.f32 %v781_v50, 0.0  ;;  %v1326_v38 = vld [vmem:[%s6453_s3 + $0x80] sm:$0xff] }
 0x170   :  { %v4712_v46 = vpack.c.bf16 %v1277_v36, %v1273_v34  ;;  %v1098_v51 = vadd.f32 %v1097_v42, %v317_v44  ;;  %4627 = vmatprep.subr.bf16.mxu0 %v4626_v45  ;;  %v785_v55 = vadd.f32 %v784_v52, %v322_v47  ;;  %v786_v57 = vpop.f32.mrb[71].mxu0  ;;  %1651 = vmatprep.mubr.f32.mxu0 %v1317_v54  ;;  %v337_v50 = vpop.permute.xlu0 %336 }
 0x171   :  { %v787_v60 = vadd.f32 %v786_v57, %v322_v47  ;;  %4629 = vmatpush1.bf16.msra.mxu0 %v4628_v39  ;;  %v1280_v63 = vmax.f32 %v1096_v49, 0.0  ;;  %v1325_v49 = vld [vmem:[%s6453_s3 + $0x78] sm:$0xff] }
 0x172   :  { %v1101_v53 = vpop.f32.mrb[70].mxu1  ;;  %2028 = vmatmul.mubr.f32.gmra.mrb[86].mxu1 %v1313_v43  ;;  %4713 = vmatprep.subr.bf16.mxu1 %v4712_v46  ;;  %v1282_v0 = vmax.f32 %v785_v55, 0.0  ;;  %v1281_v4 = vmax.f32 %v1098_v51, 0.0 }
 0x173   :  { %v1102_v56 = vadd.f32 %v1101_v53, %v322_v47  ;;  %v1103_v58 = vpop.f32.mrb[71].mxu1  ;;  %4715 = vmatpush1.bf16.msra.mxu1 %v4714_v40  ;;  %2033 = vmatprep.mubr.f32.mxu1 %v1317_v54  ;;  %v1283_v5 = vmax.f32 %v787_v60, 0.0  ;;  %v790_v8 = vpop.f32.mrb[72].mxu0  ;;  %v1329_v60 = vld [vmem:[%s6453_s3 + $0x98] sm:$0xff] }
 0x174   :  { %v1104_v61 = vadd.f32 %v1103_v58, %v322_v47  ;;  %1652 = vmatmul.mubr.f32.gmra.mrb[88].mxu0 %v1316_v59  ;;  %v4632_v10 = vpack.c.bf16 %v1282_v0, %v1278_v62  ;;  %v792_v13 = vpop.f32.mrb[73].mxu0  ;;  %v791_v20 = vadd.f32 %v790_v8, %v327_v16  ;;  %v342_v53 = vpop.permute.xlu1 %341 }
 0x175   :  { %v1284_v1 = vmax.f32 %v1102_v56, 0.0  ;;  %v4630_v17 = vpack.c.bf16 %v1283_v5, %v1279_v3  ;;  %1657 = vmatprep.mubr.f32.mxu0 %v1320_v2  ;;  %v793_v22 = vadd.f32 %v792_v13, %v327_v16 }
 0x176   :  { %v1285_v7 = vmax.f32 %v1104_v61, 0.0  ;;  %v1107_v9 = vpop.f32.mrb[72].mxu1  ;;  %2034 = vmatmul.mubr.f32.gmra.mrb[88].mxu1 %v1316_v59  ;;  %v1286_v34 = vmax.f32 %v791_v20, 0.0 }
 0x177   :  { %v4718_v12 = vpack.c.bf16 %v1284_v1, %v1280_v63  ;;  %v1109_v14 = vpop.f32.mrb[73].mxu1  ;;  %v1108_v21 = vadd.f32 %v1107_v9, %v327_v16  ;;  %2039 = vmatprep.mubr.f32.mxu1 %v1320_v2  ;;  %v796_v24 = vpop.f32.mrb[74].mxu0  ;;  %4631 = vmatprep.subr.bf16.mxu0 %v4630_v17  ;;  %v1287_v39 = vmax.f32 %v793_v22, 0.0  ;;  %v1328_v1 = vld [vmem:[%s6453_s3 + $0x90] sm:$0xff] }
 0x178   :  { %v4716_v18 = vpack.c.bf16 %v1285_v7, %v1281_v4  ;;  %v1110_v23 = vadd.f32 %v1109_v14, %v327_v16  ;;  %1658 = vmatmul.mubr.f32.gmra.mrb[90].mxu0 %v1319_v15  ;;  %v797_v27 = vadd.f32 %v796_v24, %v332_v19  ;;  %v798_v29 = vpop.f32.mrb[75].mxu0  ;;  %v1332_v9 = vld [vmem:[%s6453_s3 + $0xb0] sm:$0xff]  ;;  %v347_v22 = vpop.permute.xlu0 %346 }
 0x179   :  { %v799_v32 = vadd.f32 %v798_v29, %v332_v19  ;;  %4633 = vmatpush1.bf16.msra.mxu0 %v4632_v10  ;;  %v1288_v35 = vmax.f32 %v1108_v21, 0.0  ;;  %1663 = vmatprep.mubr.f32.mxu0 %v1323_v26  ;;  %v1331_v21 = vld [vmem:[%s6453_s3 + $0xa8] sm:$0xff] }
 0x17a   :  { %v1113_v25 = vpop.f32.mrb[74].mxu1  ;;  %2040 = vmatmul.mubr.f32.gmra.mrb[90].mxu1 %v1319_v15  ;;  %4717 = vmatprep.subr.bf16.mxu1 %v4716_v18  ;;  %v1290_v36 = vmax.f32 %v797_v27, 0.0  ;;  %v1289_v40 = vmax.f32 %v1110_v23, 0.0 }
 0x17b   :  { %v1114_v28 = vadd.f32 %v1113_v25, %v332_v19  ;;  %v1115_v30 = vpop.f32.mrb[75].mxu1  ;;  %4719 = vmatpush1.bf16.msra.mxu1 %v4718_v12  ;;  %2045 = vmatprep.mubr.f32.mxu1 %v1323_v26  ;;  %v1291_v41 = vmax.f32 %v799_v32, 0.0  ;;  %v802_v43 = vpop.f32.mrb[76].mxu0  ;;  %v1335_v32 = vld [vmem:[%s6453_s3 + $0xc8] sm:$0xff] }
 0x17c   :  { %v1116_v33 = vadd.f32 %v1115_v30, %v332_v19  ;;  %1664 = vmatmul.mubr.f32.gmra.mrb[92].mxu0 %v1322_v31  ;;  %v4636_v45 = vpack.c.bf16 %v1290_v36, %v1286_v34  ;;  %v804_v47 = vpop.f32.mrb[77].mxu0  ;;  %v803_v54 = vadd.f32 %v802_v43, %v337_v50  ;;  %v352_v25 = vpop.permute.xlu1 %351 }
 0x17d   :  { %v1292_v37 = vmax.f32 %v1114_v28, 0.0  ;;  %v4634_v51 = vpack.c.bf16 %v1291_v41, %v1287_v39  ;;  %1669 = vmatprep.mubr.f32.mxu0 %v1326_v38  ;;  %v805_v56 = vadd.f32 %v804_v47, %v337_v50 }
 0x17e   :  { %v1293_v42 = vmax.f32 %v1116_v33, 0.0  ;;  %v1119_v44 = vpop.f32.mrb[76].mxu1  ;;  %2046 = vmatmul.mubr.f32.gmra.mrb[92].mxu1 %v1322_v31  ;;  %v1294_v4 = vmax.f32 %v803_v54, 0.0  ;;  %v1341_v54 = vld [vmem:[%s6453_s3 + $0xf8] sm:$0xff] }
 0x17f   :  { %v4722_v46 = vpack.c.bf16 %v1292_v37, %v1288_v35  ;;  %v1121_v48 = vpop.f32.mrb[77].mxu1  ;;  %v1120_v55 = vadd.f32 %v1119_v44, %v337_v50  ;;  %2051 = vmatprep.mubr.f32.mxu1 %v1326_v38  ;;  %v808_v58 = vpop.f32.mrb[78].mxu0  ;;  %4635 = vmatprep.subr.bf16.mxu0 %v4634_v51  ;;  %v1295_v10 = vmax.f32 %v805_v56, 0.0  ;;  %v1334_v37 = vld [vmem:[%s6453_s3 + $0xc0] sm:$0xff]  ;;  %v1337_v51 = vld [vmem:[%s6453_s3 + $0xd8] sm:$0xff]  ;;  %v1344_v56 = vld [vmem:[%s6453_s3 + $0x110] sm:$0xff] }
 0x180   :  { %v4720_v52 = vpack.c.bf16 %v1293_v42, %v1289_v40  ;;  %v1122_v57 = vadd.f32 %v1121_v48, %v337_v50  ;;  %1670 = vmatmul.mubr.f32.gmra.mrb[94].mxu0 %v1325_v49  ;;  %v809_v61 = vadd.f32 %v808_v58, %v342_v53  ;;  %v810_v63 = vpop.f32.mrb[79].mxu0  ;;  %v1338_v40 = vld [vmem:[%s6453_s3 + $0xe0] sm:$0xff]  ;;  %v1347_v58 = vld [vmem:[%s6453_s3 + $0x128] sm:$0xff] }
 0x181   :  { %v811_v2 = vadd.f32 %v810_v63, %v342_v53  ;;  %4637 = vmatpush1.bf16.msra.mxu0 %v4636_v45  ;;  %v1296_v5 = vmax.f32 %v1120_v55, 0.0  ;;  %1675 = vmatprep.mubr.f32.mxu0 %v1329_v60  ;;  %v1340_v55 = vld [vmem:[%s6453_s3 + $0xf0] sm:$0xff] }
 0x182   :  { %v1125_v59 = vpop.f32.mrb[78].mxu1  ;;  %2052 = vmatmul.mubr.f32.gmra.mrb[94].mxu1 %v1325_v49  ;;  %4721 = vmatprep.subr.bf16.mxu1 %v4720_v52  ;;  %v1298_v7 = vmax.f32 %v809_v61, 0.0  ;;  %v1297_v12 = vmax.f32 %v1122_v57, 0.0  ;;  %v1343_v57 = vld [vmem:[%s6453_s3 + $0x108] sm:$0xff]  ;;  %v1349_v61 = vld [vmem:[%s6453_s3 + $0x138] sm:$0xff]  ;;  %v1352_v63 = vld [vmem:[%s6453_s3 + $0x150] sm:$0xff] }
 0x183   :  { %v1126_v62 = vadd.f32 %v1125_v59, %v342_v53  ;;  %v1127_v0 = vpop.f32.mrb[79].mxu1  ;;  %4723 = vmatpush1.bf16.msra.mxu1 %v4722_v46  ;;  %2057 = vmatprep.mubr.f32.mxu1 %v1329_v60  ;;  %v1299_v13 = vmax.f32 %v811_v2, 0.0  ;;  %v814_v15 = vpop.f32.mrb[80].mxu0  ;;  %v1346_v59 = vld [vmem:[%s6453_s3 + $0x120] sm:$0xff]  ;;  %v1359_v2 = vld [vmem:[%s6453_s3 + $0x188] sm:$0xff] }
 0x184   :  { %v1128_v3 = vadd.f32 %v1127_v0, %v342_v53  ;;  %1676 = vmatmul.mubr.f32.gmra.mrb[96].mxu0 %v1328_v1  ;;  %v4640_v17 = vpack.c.bf16 %v1298_v7, %v1294_v4  ;;  %v816_v19 = vpop.f32.mrb[81].mxu0  ;;  %v815_v26 = vadd.f32 %v814_v15, %v347_v22  ;;  %v1350_v60 = vld [vmem:[%s6453_s3 + $0x140] sm:$0xff]  ;;  %v1356_v0 = vld [vmem:[%s6453_s3 + $0x170] sm:$0xff]  ;;  %v1365_v7 = vld [vmem:[%s6453_s3 + $0x1b8] sm:$0xff] }
 0x185   :  { %v1300_v8 = vmax.f32 %v1126_v62, 0.0  ;;  %v4638_v23 = vpack.c.bf16 %v1299_v13, %v1295_v10  ;;  %1681 = vmatprep.mubr.f32.mxu0 %v1332_v9  ;;  %v817_v28 = vadd.f32 %v816_v19, %v347_v22  ;;  %v1353_v62 = vld [vmem:[%s6453_s3 + $0x158] sm:$0xff]  ;;  %v1362_v4 = vld [vmem:[%s6453_s3 + $0x1a0] sm:$0xff]  ;;  %v1367_v10 = vld [vmem:[%s6453_s3 + $0x1c8] sm:$0xff] }
 0x186   :  { %v1301_v14 = vmax.f32 %v1128_v3, 0.0  ;;  %v1131_v16 = vpop.f32.mrb[80].mxu1  ;;  %2058 = vmatmul.mubr.f32.gmra.mrb[96].mxu1 %v1328_v1  ;;  %v1302_v41 = vmax.f32 %v815_v26, 0.0  ;;  %v1355_v1 = vld [vmem:[%s6453_s3 + $0x168] sm:$0xff]  ;;  %v1358_v3 = vld [vmem:[%s6453_s3 + $0x180] sm:$0xff]  ;;  %v1348_v26 = vld [vmem:[%s6453_s3 + $0x130] sm:$0xff] }
 0x187   :  { %v4726_v18 = vpack.c.bf16 %v1300_v8, %v1296_v5  ;;  %v1133_v20 = vpop.f32.mrb[81].mxu1  ;;  %v1132_v27 = vadd.f32 %v1131_v16, %v347_v22  ;;  %2063 = vmatprep.mubr.f32.mxu1 %v1332_v9  ;;  %v820_v30 = vpop.f32.mrb[82].mxu0  ;;  %4639 = vmatprep.subr.bf16.mxu0 %v4638_v23  ;;  %v1303_v45 = vmax.f32 %v817_v28, 0.0  ;;  %v1361_v5 = vld [vmem:[%s6453_s3 + $0x198] sm:$0xff]  ;;  %v1364_v8 = vld [vmem:[%s6453_s3 + $0x1b0] sm:$0xff]  ;;  %v1315_v15 = vld [vmem:[%s6453_s3 + $0x28] sm:$0xff] }
 0x188   :  { %v4724_v24 = vpack.c.bf16 %v1301_v14, %v1297_v12  ;;  %v1134_v29 = vadd.f32 %v1133_v20, %v347_v22  ;;  %1682 = vmatmul.mubr.f32.gmra.mrb[98].mxu0 %v1331_v21  ;;  %v821_v33 = vadd.f32 %v820_v30, %v352_v25  ;;  %v822_v35 = vpop.f32.mrb[83].mxu0  ;;  %v1368_v9 = vld [vmem:[%s6453_s3 + $0x1d0] sm:$0xff]  ;;  %v1371_v12 = vld [vmem:[%s6453_s3 + $0x1e8] sm:$0x1f]  ;;  %v1370_v13 = vld [vmem:[%s6453_s3 + $0x1e0] sm:$0x1f] }
 0x189   :  { %v823_v38 = vadd.f32 %v822_v35, %v352_v25  ;;  %4641 = vmatpush1.bf16.msra.mxu0 %v4640_v17  ;;  %v1304_v42 = vmax.f32 %v1132_v27, 0.0  ;;  %1687 = vmatprep.mubr.f32.mxu0 %v1335_v32  ;;  %v1312_v14 = vld [vmem:[%s6453_s3 + $0x10] sm:$0xff]  ;;  %v1318_v16 = vld [vmem:[%s6453_s3 + $0x40] sm:$0xff]  ;;  %v1321_v17 = vld [vmem:[%s6453_s3 + $0x58] sm:$0xff] }
 0x18a   :  { %v1137_v31 = vpop.f32.mrb[82].mxu1  ;;  %2064 = vmatmul.mubr.f32.gmra.mrb[98].mxu1 %v1331_v21  ;;  %4725 = vmatprep.subr.bf16.mxu1 %v4724_v24  ;;  %v1306_v43 = vmax.f32 %v821_v33, 0.0  ;;  %v1305_v46 = vmax.f32 %v1134_v29, 0.0  ;;  %v1327_v19 = vld [vmem:[%s6453_s3 + $0x88] sm:$0xff]  ;;  %v1330_v20 = vld [vmem:[%s6453_s3 + $0xa0] sm:$0xff]  ;;  %v1333_v21 = vld [vmem:[%s6453_s3 + $0xb8] sm:$0xff] }
 0x18b   :  { %v1138_v34 = vadd.f32 %v1137_v31, %v352_v25  ;;  %v1139_v36 = vpop.f32.mrb[83].mxu1  ;;  %4727 = vmatpush1.bf16.msra.mxu1 %v4726_v18  ;;  %2069 = vmatprep.mubr.f32.mxu1 %v1335_v32  ;;  %v1307_v47 = vmax.f32 %v823_v38, 0.0  ;;  %v1324_v18 = vld [vmem:[%s6453_s3 + $0x70] sm:$0xff]  ;;  %v1339_v23 = vld [vmem:[%s6453_s3 + $0xe8] sm:$0xff]  ;;  %v1342_v24 = vld [vmem:[%s6453_s3 + $0x100] sm:$0xff] }
 0x18c   :  { %v1140_v39 = vadd.f32 %v1139_v36, %v352_v25  ;;  %1688 = vmatmul.mubr.f32.gmra.mrb[100].mxu0 %v1334_v37  ;;  %v4645_v49 = vpack.c.bf16 %v1306_v43, %v1302_v41  ;;  %v1336_v22 = vld [vmem:[%s6453_s3 + $0xd0] sm:$0xff]  ;;  %v1345_v25 = vld [vmem:[%s6453_s3 + $0x118] sm:$0xff]  ;;  %v1351_v27 = vld [vmem:[%s6453_s3 + $0x148] sm:$0xff] }
 0x18d   :  { %v1308_v44 = vmax.f32 %v1138_v34, 0.0  ;;  %1693 = vmatprep.mubr.f32.mxu0 %v1338_v40  ;;  %v4642_v52 = vpack.c.bf16 %v1307_v47, %v1303_v45  ;;  %v1354_v28 = vld [vmem:[%s6453_s3 + $0x160] sm:$0xff]  ;;  %v1357_v29 = vld [vmem:[%s6453_s3 + $0x178] sm:$0xff]  ;;  %v1360_v30 = vld [vmem:[%s6453_s3 + $0x190] sm:$0xff] }
 0x18e   :  { %v1309_v48 = vmax.f32 %v1140_v39, 0.0  ;;  %2070 = vmatmul.mubr.f32.gmra.mrb[100].mxu1 %v1334_v37  ;;  %v1363_v31 = vld [vmem:[%s6453_s3 + $0x1a8] sm:$0xff]  ;;  %v1366_v32 = vld [vmem:[%s6453_s3 + $0x1c0] sm:$0xff]  ;;  %v1369_v33 = vld [vmem:[%s6453_s3 + $0x1d8] sm:$0xff]  ;;  %v1397_v39 = vpop.permute.xlu0 %1396 }
 0x18f   :  { %v4731_v50 = vpack.c.bf16 %v1308_v44, %v1304_v42  ;;  %2075 = vmatprep.mubr.f32.mxu1 %v1338_v40  ;;  %4644 = vmatprep.subr.msk.bf16.mxu0 %vm4643_vm3, %v4642_v52  ;;  %v1372_v34 = vld [vmem:[%s6453_s3 + $0x1f0] sm:$0x1f]  ;;  %v2424_v35 = vld [vmem:[%s6454_s5 + $0x8] sm:$0xff]  ;;  %v1402_v42 = vpop.permute.xlu1 %1401 }
 0x190   :  { %v4728_v53 = vpack.c.bf16 %v1309_v48, %v1305_v46  ;;  %1694 = vmatmul.mubr.f32.gmra.mrb[102].mxu0 %v1337_v51 }
 0x191   :  { %4647 = vmatpush1.bf16.msk.msra.mxu0 %vm4643_vm3, %v4645_v49  ;;  %1699 = vmatprep.mubr.f32.mxu0 %v1341_v54 }
 0x192   :  { %2076 = vmatmul.mubr.f32.gmra.mrb[102].mxu1 %v1337_v51  ;;  %4730 = vmatprep.subr.msk.bf16.mxu1 %vm4643_vm3, %v4728_v53 }
 0x193   :  { %4733 = vmatpush1.bf16.msk.msra.mxu1 %vm4643_vm3, %v4731_v50  ;;  %2081 = vmatprep.mubr.f32.mxu1 %v1341_v54 }
 0x194   :  { %1700 = vmatmul.mubr.f32.gmra.mrb[104].mxu0 %v1340_v55 }
 0x195   :  { %1705 = vmatprep.mubr.f32.mxu0 %v1344_v56 }
 0x196   :  { %2082 = vmatmul.mubr.f32.gmra.mrb[104].mxu1 %v1340_v55 }
 0x197   :  { %2087 = vmatprep.mubr.f32.mxu1 %v1344_v56 }
 0x198   :  { %1706 = vmatmul.mubr.f32.gmra.mrb[106].mxu0 %v1343_v57 }
 0x199   :  { %1711 = vmatprep.mubr.f32.mxu0 %v1347_v58 }
 0x19a   :  { %2088 = vmatmul.mubr.f32.gmra.mrb[106].mxu1 %v1343_v57 }
 0x19b   :  { %2093 = vmatprep.mubr.f32.mxu1 %v1347_v58 }
 0x19c   :  { %1712 = vmatmul.mubr.f32.gmra.mrb[108].mxu0 %v1346_v59 }
 0x19d   :  { %1717 = vmatprep.mubr.f32.mxu0 %v1350_v60 }
 0x19e   :  { %2094 = vmatmul.mubr.f32.gmra.mrb[108].mxu1 %v1346_v59 }
 0x19f   :  { %2099 = vmatprep.mubr.f32.mxu1 %v1350_v60 }
 0x1a0   :  { %1718 = vmatmul.mubr.f32.gmra.mrb[110].mxu0 %v1349_v61 }
 0x1a1   :  { %1723 = vmatprep.mubr.f32.mxu0 %v1353_v62 }
 0x1a2   :  { %2100 = vmatmul.mubr.f32.gmra.mrb[110].mxu1 %v1349_v61 }
 0x1a3   :  { %2105 = vmatprep.mubr.f32.mxu1 %v1353_v62 }
 0x1a4   :  { %1724 = vmatmul.mubr.f32.gmra.mrb[112].mxu0 %v1352_v63 }
 0x1a5   :  { %1729 = vmatprep.mubr.f32.mxu0 %v1356_v0 }
 0x1a6   :  { %2106 = vmatmul.mubr.f32.gmra.mrb[112].mxu1 %v1352_v63 }
 0x1a7   :  { %2111 = vmatprep.mubr.f32.mxu1 %v1356_v0 }
 0x1a8   :  { %1730 = vmatmul.mubr.f32.gmra.mrb[114].mxu0 %v1355_v1 }
 0x1a9   :  { %1735 = vmatprep.mubr.f32.mxu0 %v1359_v2 }
 0x1aa   :  { %2112 = vmatmul.mubr.f32.gmra.mrb[114].mxu1 %v1355_v1 }
 0x1ab   :  { %2117 = vmatprep.mubr.f32.mxu1 %v1359_v2  ;;  %v1407_v2 = vpop.permute.xlu0 %1406 }
 0x1ac   :  { %1736 = vmatmul.mubr.f32.gmra.mrb[116].mxu0 %v1358_v3 }
 0x1ad   :  { %1741 = vmatprep.mubr.f32.mxu0 %v1362_v4 }
 0x1ae   :  { %2118 = vmatmul.mubr.f32.gmra.mrb[116].mxu1 %v1358_v3 }
 0x1af   :  { %2123 = vmatprep.mubr.f32.mxu1 %v1362_v4 }
 0x1b0   :  { %1742 = vmatmul.mubr.f32.gmra.mrb[118].mxu0 %v1361_v5 }
 0x1b1   :  { %1747 = vmatprep.mubr.f32.mxu0 %v1365_v7 }
 0x1b2   :  { %2124 = vmatmul.mubr.f32.gmra.mrb[118].mxu1 %v1361_v5 }
 0x1b3   :  { %2129 = vmatprep.mubr.f32.mxu1 %v1365_v7 }
 0x1b4   :  { %1748 = vmatmul.mubr.f32.gmra.mrb[120].mxu0 %v1364_v8 }
 0x1b5   :  { %1753 = vmatprep.mubr.f32.mxu0 %v1368_v9 }
 0x1b6   :  { %2130 = vmatmul.mubr.f32.gmra.mrb[120].mxu1 %v1364_v8 }
 0x1b7   :  { %2135 = vmatprep.mubr.f32.mxu1 %v1368_v9  ;;  %v1412_v9 = vpop.permute.xlu1 %1411 }
 0x1b8   :  { %1754 = vmatmul.mubr.f32.gmra.mrb[122].mxu0 %v1367_v10 }
 0x1b9   :  { %1759 = vmatprep.mubr.f32.mxu0 %v1371_v12 }
 0x1ba   :  { %2136 = vmatmul.mubr.f32.gmra.mrb[122].mxu1 %v1367_v10 }
 0x1bb   :  { %2141 = vmatprep.mubr.f32.mxu1 %v1371_v12 }
 0x1bc   :  { %1760 = vmatmul.mubr.f32.gmra.mrb[124].mxu0 %v1370_v13 }
 0x1bd   :  { %1830 = vmatprep.mubr.f32.mxu0 %v5127_v11 }
 0x1be   :  { %2142 = vmatmul.mubr.f32.gmra.mrb[124].mxu1 %v1370_v13 }
 0x1bf   :  { %2212 = vmatprep.mubr.f32.mxu1 %v5127_v11 }
 0x1c0   :  { %4444 = vmatmul.mubr.msk.f32.vlgmr.msra.gmra.mrb[84].mxu0 %vm1499_vm4, %v1312_v14 }
 0x1c1   :  { %1836 = vmatprep.mubr.f32.mxu0 %v5127_v11 }
 0x1c2   :  { %4467 = vmatmul.mubr.msk.f32.vlgmr.msra.gmra.mrb[84].mxu1 %vm1499_vm4, %v1312_v14 }
 0x1c3   :  { %2218 = vmatprep.mubr.f32.mxu1 %v5127_v11 }
 0x1c4   :  { %4445 = vmatmul.mubr.msk.f32.gmra.mrb[86].mxu0 %vm1499_vm4, %v1315_v15 }
 0x1c5   :  { %1842 = vmatprep.mubr.f32.mxu0 %v5127_v11 }
 0x1c6   :  { %4468 = vmatmul.mubr.msk.f32.gmra.mrb[86].mxu1 %vm1499_vm4, %v1315_v15 }
 0x1c7   :  { %2224 = vmatprep.mubr.f32.mxu1 %v5127_v11 }
 0x1c8   :  { %4446 = vmatmul.mubr.msk.f32.gmra.mrb[88].mxu0 %vm1499_vm4, %v1318_v16 }
 0x1c9   :  { %1848 = vmatprep.mubr.f32.mxu0 %v5127_v11 }
 0x1ca   :  { %4469 = vmatmul.mubr.msk.f32.gmra.mrb[88].mxu1 %vm1499_vm4, %v1318_v16 }
 0x1cb   :  { %2230 = vmatprep.mubr.f32.mxu1 %v5127_v11 }
 0x1cc   :  { %4447 = vmatmul.mubr.msk.f32.gmra.mrb[90].mxu0 %vm1499_vm4, %v1321_v17 }
 0x1cd   :  { %1854 = vmatprep.mubr.f32.mxu0 %v5127_v11 }
 0x1ce   :  { %4470 = vmatmul.mubr.msk.f32.gmra.mrb[90].mxu1 %vm1499_vm4, %v1321_v17 }
 0x1cf   :  { %2236 = vmatprep.mubr.f32.mxu1 %v5127_v11 }
 0x1d0   :  { %4448 = vmatmul.mubr.msk.f32.gmra.mrb[92].mxu0 %vm1499_vm4, %v1324_v18 }
 0x1d1   :  { %1860 = vmatprep.mubr.f32.mxu0 %v5127_v11 }
 0x1d2   :  { %4471 = vmatmul.mubr.msk.f32.gmra.mrb[92].mxu1 %vm1499_vm4, %v1324_v18 }
 0x1d3   :  { %2242 = vmatprep.mubr.f32.mxu1 %v5127_v11 }
 0x1d4   :  { %4449 = vmatmul.mubr.msk.f32.gmra.mrb[94].mxu0 %vm1499_vm4, %v1327_v19 }
 0x1d5   :  { %1866 = vmatprep.mubr.f32.mxu0 %v5127_v11 }
 0x1d6   :  { %4472 = vmatmul.mubr.msk.f32.gmra.mrb[94].mxu1 %vm1499_vm4, %v1327_v19 }
 0x1d7   :  { %2248 = vmatprep.mubr.f32.mxu1 %v5127_v11 }
 0x1d8   :  { %4450 = vmatmul.mubr.msk.f32.gmra.mrb[96].mxu0 %vm1499_vm4, %v1330_v20 }
 0x1d9   :  { %1872 = vmatprep.mubr.f32.mxu0 %v5127_v11 }
 0x1da   :  { %4473 = vmatmul.mubr.msk.f32.gmra.mrb[96].mxu1 %vm1499_vm4, %v1330_v20 }
 0x1db   :  { %2254 = vmatprep.mubr.f32.mxu1 %v5127_v11 }
 0x1dc   :  { %4451 = vmatmul.mubr.msk.f32.gmra.mrb[98].mxu0 %vm1499_vm4, %v1333_v21 }
 0x1dd   :  { %1878 = vmatprep.mubr.f32.mxu0 %v5127_v11 }
 0x1de   :  { %4474 = vmatmul.mubr.msk.f32.gmra.mrb[98].mxu1 %vm1499_vm4, %v1333_v21 }
 0x1df   :  { %2260 = vmatprep.mubr.f32.mxu1 %v5127_v11 }
 0x1e0   :  { %4452 = vmatmul.mubr.msk.f32.gmra.mrb[100].mxu0 %vm1499_vm4, %v1336_v22 }
 0x1e1   :  { %1884 = vmatprep.mubr.f32.mxu0 %v5127_v11 }
 0x1e2   :  { %4475 = vmatmul.mubr.msk.f32.gmra.mrb[100].mxu1 %vm1499_vm4, %v1336_v22 }
 0x1e3   :  { %2266 = vmatprep.mubr.f32.mxu1 %v5127_v11 }
 0x1e4   :  { %4453 = vmatmul.mubr.msk.f32.gmra.mrb[102].mxu0 %vm1499_vm4, %v1339_v23 }
 0x1e5   :  { %1890 = vmatprep.mubr.f32.mxu0 %v5127_v11 }
 0x1e6   :  { %4476 = vmatmul.mubr.msk.f32.gmra.mrb[102].mxu1 %vm1499_vm4, %v1339_v23 }
 0x1e7   :  { %2272 = vmatprep.mubr.f32.mxu1 %v5127_v11 }
 0x1e8   :  { %4454 = vmatmul.mubr.msk.f32.gmra.mrb[104].mxu0 %vm1499_vm4, %v1342_v24 }
 0x1e9   :  { %1896 = vmatprep.mubr.f32.mxu0 %v5127_v11 }
 0x1ea   :  { %4477 = vmatmul.mubr.msk.f32.gmra.mrb[104].mxu1 %vm1499_vm4, %v1342_v24 }
 0x1eb   :  { %2278 = vmatprep.mubr.f32.mxu1 %v5127_v11 }
 0x1ec   :  { %4455 = vmatmul.mubr.msk.f32.gmra.mrb[106].mxu0 %vm1499_vm4, %v1345_v25 }
 0x1ed   :  { %1902 = vmatprep.mubr.f32.mxu0 %v5127_v11 }
 0x1ee   :  { %4478 = vmatmul.mubr.msk.f32.gmra.mrb[106].mxu1 %vm1499_vm4, %v1345_v25 }
 0x1ef   :  { %2284 = vmatprep.mubr.f32.mxu1 %v5127_v11 }
 0x1f0   :  { %4456 = vmatmul.mubr.msk.f32.gmra.mrb[108].mxu0 %vm1499_vm4, %v1348_v26 }
 0x1f1   :  { %1908 = vmatprep.mubr.f32.mxu0 %v5127_v11 }
 0x1f2   :  { %4479 = vmatmul.mubr.msk.f32.gmra.mrb[108].mxu1 %vm1499_vm4, %v1348_v26 }
 0x1f3   :  { %2290 = vmatprep.mubr.f32.mxu1 %v5127_v11 }
 0x1f4   :  { %4457 = vmatmul.mubr.msk.f32.gmra.mrb[110].mxu0 %vm1499_vm4, %v1351_v27 }
 0x1f5   :  { %1914 = vmatprep.mubr.f32.mxu0 %v5127_v11 }
 0x1f6   :  { %4480 = vmatmul.mubr.msk.f32.gmra.mrb[110].mxu1 %vm1499_vm4, %v1351_v27 }
 0x1f7   :  { %2296 = vmatprep.mubr.f32.mxu1 %v5127_v11 }
 0x1f8   :  { %4458 = vmatmul.mubr.msk.f32.gmra.mrb[112].mxu0 %vm1499_vm4, %v1354_v28 }
 0x1f9   :  { %1920 = vmatprep.mubr.f32.mxu0 %v5127_v11 }
 0x1fa   :  { %4481 = vmatmul.mubr.msk.f32.gmra.mrb[112].mxu1 %vm1499_vm4, %v1354_v28 }
 0x1fb   :  { %2302 = vmatprep.mubr.f32.mxu1 %v5127_v11 }
 0x1fc   :  { %4459 = vmatmul.mubr.msk.f32.gmra.mrb[114].mxu0 %vm1499_vm4, %v1357_v29 }
 0x1fd   :  { %1926 = vmatprep.mubr.f32.mxu0 %v5127_v11 }
 0x1fe   :  { %4482 = vmatmul.mubr.msk.f32.gmra.mrb[114].mxu1 %vm1499_vm4, %v1357_v29 }
 0x1ff   :  { %2308 = vmatprep.mubr.f32.mxu1 %v5127_v11 }
 0x200   :  { %4460 = vmatmul.mubr.msk.f32.gmra.mrb[116].mxu0 %vm1499_vm4, %v1360_v30 }
 0x201   :  { %1932 = vmatprep.mubr.f32.mxu0 %v5127_v11 }
 0x202   :  { %4483 = vmatmul.mubr.msk.f32.gmra.mrb[116].mxu1 %vm1499_vm4, %v1360_v30 }
 0x203   :  { %2314 = vmatprep.mubr.f32.mxu1 %v5127_v11 }
 0x204   :  { %4461 = vmatmul.mubr.msk.f32.gmra.mrb[118].mxu0 %vm1499_vm4, %v1363_v31 }
 0x205   :  { %1938 = vmatprep.mubr.f32.mxu0 %v5127_v11 }
 0x206   :  { %4484 = vmatmul.mubr.msk.f32.gmra.mrb[118].mxu1 %vm1499_vm4, %v1363_v31 }
 0x207   :  { %2320 = vmatprep.mubr.f32.mxu1 %v5127_v11 }
 0x208   :  { %4462 = vmatmul.mubr.msk.f32.gmra.mrb[120].mxu0 %vm1499_vm4, %v1366_v32 }
 0x209   :  { %1944 = vmatprep.mubr.f32.mxu0 %v5127_v11 }
 0x20a   :  { %4485 = vmatmul.mubr.msk.f32.gmra.mrb[120].mxu1 %vm1499_vm4, %v1366_v32 }
 0x20b   :  { %2326 = vmatprep.mubr.f32.mxu1 %v5127_v11 }
 0x20c   :  { %4463 = vmatmul.mubr.msk.f32.gmra.mrb[122].mxu0 %vm1499_vm4, %v1369_v33 }
 0x20d   :  { %1950 = vmatprep.mubr.f32.mxu0 %v5127_v11 }
 0x20e   :  { %4486 = vmatmul.mubr.msk.f32.gmra.mrb[122].mxu1 %vm1499_vm4, %v1369_v33 }
 0x20f   :  { %2332 = vmatprep.mubr.f32.mxu1 %v5127_v11 }
 0x210   :  { %4464 = vmatmul.mubr.msk.f32.gmra.mrb[124].mxu0 %vm1499_vm4, %v1372_v34 }
 0x211   :  { %4490 = vmatprep.mubr.msk.f32.mxu0 %vm2503_vm5, %v2424_v35 }
 0x212   :  { %4487 = vmatmul.mubr.msk.f32.gmra.mrb[124].mxu1 %vm1499_vm4, %v1372_v34  ;;  %v1417_v34 = vpop.permute.xlu0 %1416 }
 0x213   :  { %4502 = vmatprep.mubr.msk.f32.mxu1 %vm2503_vm5, %v2424_v35 }
 0x293   :  { %v1832_v36 = vpop.f32.mrb[84].mxu0 }
 0x294   :  { %v1834_v38 = vpop.f32.mrb[85].mxu0  ;;  %v4910_v41 = vadd.f32 %v1832_v36, %v1397_v39 }
 0x295   :  { %v2214_v37 = vpop.f32.mrb[84].mxu1  ;;  %v4911_v44 = vadd.f32 %v1834_v38, %v1397_v39 }
 0x296   :  { %v2216_v40 = vpop.f32.mrb[85].mxu1  ;;  %v4952_v43 = vadd.f32 %v2214_v37, %v1397_v39  ;;  %v2339_v53 = vmax.f32 %v4910_v41, 0.0 }
 0x297   :  { %v1838_v45 = vpop.f32.mrb[86].mxu0  ;;  %v4953_v46 = vadd.f32 %v2216_v40, %v1397_v39  ;;  %v2340_v57 = vmax.f32 %v4911_v44, 0.0  ;;  %v1422_v40 = vpop.permute.xlu1 %1421 }
 0x298   :  { %v4912_v47 = vadd.f32 %v1838_v45, %v1402_v42  ;;  %v1840_v49 = vpop.f32.mrb[87].mxu0  ;;  %v2341_v56 = vmax.f32 %v4952_v43, 0.0 }
 0x299   :  { %v2220_v48 = vpop.f32.mrb[86].mxu1  ;;  %v4913_v51 = vadd.f32 %v1840_v49, %v1402_v42  ;;  %v2342_v61 = vmax.f32 %v4953_v46, 0.0 }
 0x29a   :  { %v4954_v50 = vadd.f32 %v2220_v48, %v1402_v42  ;;  %v2222_v52 = vpop.f32.mrb[87].mxu1  ;;  %v2343_v54 = vmax.f32 %v4912_v47, 0.0 }
 0x29b   :  { %v4955_v55 = vadd.f32 %v2222_v52, %v1402_v42  ;;  %v2344_v59 = vmax.f32 %v4913_v51, 0.0  ;;  %v1844_v60 = vpop.f32.mrb[88].mxu0 }
 0x29c   :  { %v2345_v58 = vmax.f32 %v4954_v50, 0.0  ;;  %v4736_v62 = vpack.c.bf16 %v2343_v54, %v2339_v53  ;;  %v1846_v1 = vpop.f32.mrb[89].mxu0  ;;  %v4914_v8 = vadd.f32 %v1844_v60, %v1407_v2 }
 0x29d   :  { %v2346_v63 = vmax.f32 %v4955_v55, 0.0  ;;  %v2226_v0 = vpop.f32.mrb[88].mxu1  ;;  %v4734_v4 = vpack.c.bf16 %v2344_v59, %v2340_v57  ;;  %v4915_v12 = vadd.f32 %v1846_v1, %v1407_v2 }
 0x29e   :  { %v4776_v3 = vpack.c.bf16 %v2345_v58, %v2341_v56  ;;  %v2228_v5 = vpop.f32.mrb[89].mxu1  ;;  %v4956_v10 = vadd.f32 %v2226_v0, %v1407_v2  ;;  %v2347_v21 = vmax.f32 %v4914_v8, 0.0  ;;  %v1427_v0 = vpop.permute.xlu0 %1426 }
 0x29f   :  { %v4774_v7 = vpack.c.bf16 %v2346_v63, %v2342_v61  ;;  %v1850_v13 = vpop.f32.mrb[90].mxu0  ;;  %4735 = vmatprep.subr.bf16.mxu0 %v4734_v4  ;;  %v4957_v14 = vadd.f32 %v2228_v5, %v1407_v2  ;;  %v2348_v25 = vmax.f32 %v4915_v12, 0.0 }
 0x2a0   :  { %v4916_v15 = vadd.f32 %v1850_v13, %v1412_v9  ;;  %v1852_v17 = vpop.f32.mrb[91].mxu0  ;;  %4737 = vmatpush1.bf16.msra.mxu0 %v4736_v62  ;;  %v2349_v24 = vmax.f32 %v4956_v10, 0.0 }
 0x2a1   :  { %v2232_v16 = vpop.f32.mrb[90].mxu1  ;;  %4775 = vmatprep.subr.bf16.mxu1 %v4774_v7  ;;  %v4917_v19 = vadd.f32 %v1852_v17, %v1412_v9  ;;  %v2350_v29 = vmax.f32 %v4957_v14, 0.0  ;;  %v1432_v7 = vpop.permute.xlu1 %1431 }
 0x2a2   :  { %v4958_v18 = vadd.f32 %v2232_v16, %v1412_v9  ;;  %v2234_v20 = vpop.f32.mrb[91].mxu1  ;;  %4777 = vmatpush1.bf16.msra.mxu1 %v4776_v3  ;;  %v2351_v22 = vmax.f32 %v4916_v15, 0.0 }
 0x2a3   :  { %v4959_v23 = vadd.f32 %v2234_v20, %v1412_v9  ;;  %v2352_v27 = vmax.f32 %v4917_v19, 0.0  ;;  %v1856_v28 = vpop.f32.mrb[92].mxu0 }
 0x2a4   :  { %v2353_v26 = vmax.f32 %v4958_v18, 0.0  ;;  %v4740_v30 = vpack.c.bf16 %v2351_v22, %v2347_v21  ;;  %v1858_v33 = vpop.f32.mrb[93].mxu0  ;;  %v4918_v39 = vadd.f32 %v1856_v28, %v1417_v34 }
 0x2a5   :  { %v2354_v31 = vmax.f32 %v4959_v23, 0.0  ;;  %v2238_v32 = vpop.f32.mrb[92].mxu1  ;;  %v4738_v36 = vpack.c.bf16 %v2352_v27, %v2348_v25  ;;  %v4919_v42 = vadd.f32 %v1858_v33, %v1417_v34 }
 0x2a6   :  { %v4780_v35 = vpack.c.bf16 %v2353_v26, %v2349_v24  ;;  %v2240_v37 = vpop.f32.mrb[93].mxu1  ;;  %v4960_v41 = vadd.f32 %v2238_v32, %v1417_v34  ;;  %v2355_v51 = vmax.f32 %v4918_v39, 0.0  ;;  %v1437_v32 = vpop.permute.xlu0 %1436 }
 0x2a7   :  { %v4778_v38 = vpack.c.bf16 %v2354_v31, %v2350_v29  ;;  %v1862_v43 = vpop.f32.mrb[94].mxu0  ;;  %4739 = vmatprep.subr.bf16.mxu0 %v4738_v36  ;;  %v4961_v44 = vadd.f32 %v2240_v37, %v1417_v34  ;;  %v2356_v55 = vmax.f32 %v4919_v42, 0.0 }
 0x2a8   :  { %v4920_v45 = vadd.f32 %v1862_v43, %v1422_v40  ;;  %v1864_v47 = vpop.f32.mrb[95].mxu0  ;;  %4741 = vmatpush1.bf16.msra.mxu0 %v4740_v30  ;;  %v2357_v54 = vmax.f32 %v4960_v41, 0.0 }
 0x2a9   :  { %v2244_v46 = vpop.f32.mrb[94].mxu1  ;;  %4779 = vmatprep.subr.bf16.mxu1 %v4778_v38  ;;  %v4921_v49 = vadd.f32 %v1864_v47, %v1422_v40  ;;  %v2358_v59 = vmax.f32 %v4961_v44, 0.0  ;;  %v1442_v38 = vpop.permute.xlu1 %1441 }
 0x2aa   :  { %v4962_v48 = vadd.f32 %v2244_v46, %v1422_v40  ;;  %v2246_v50 = vpop.f32.mrb[95].mxu1  ;;  %4781 = vmatpush1.bf16.msra.mxu1 %v4780_v35  ;;  %v2359_v52 = vmax.f32 %v4920_v45, 0.0 }
 0x2ab   :  { %v4963_v53 = vadd.f32 %v2246_v50, %v1422_v40  ;;  %v2360_v57 = vmax.f32 %v4921_v49, 0.0  ;;  %v1868_v58 = vpop.f32.mrb[96].mxu0 }
 0x2ac   :  { %v2361_v56 = vmax.f32 %v4962_v48, 0.0  ;;  %v4744_v60 = vpack.c.bf16 %v2359_v52, %v2355_v51  ;;  %v1870_v63 = vpop.f32.mrb[97].mxu0  ;;  %v4922_v5 = vadd.f32 %v1868_v58, %v1427_v0 }
 0x2ad   :  { %v2362_v61 = vmax.f32 %v4963_v53, 0.0  ;;  %v2250_v62 = vpop.f32.mrb[96].mxu1  ;;  %v4742_v2 = vpack.c.bf16 %v2360_v57, %v2356_v55  ;;  %v4923_v9 = vadd.f32 %v1870_v63, %v1427_v0 }
 0x2ae   :  { %v4784_v1 = vpack.c.bf16 %v2361_v56, %v2357_v54  ;;  %v2252_v3 = vpop.f32.mrb[97].mxu1  ;;  %v4964_v8 = vadd.f32 %v2250_v62, %v1427_v0  ;;  %v2363_v19 = vmax.f32 %v4922_v5, 0.0  ;;  %v1447_v62 = vpop.permute.xlu0 %1446 }
 0x2af   :  { %v4782_v4 = vpack.c.bf16 %v2362_v61, %v2358_v59  ;;  %v1874_v10 = vpop.f32.mrb[98].mxu0  ;;  %4743 = vmatprep.subr.bf16.mxu0 %v4742_v2  ;;  %v4965_v12 = vadd.f32 %v2252_v3, %v1427_v0  ;;  %v2364_v23 = vmax.f32 %v4923_v9, 0.0 }
 0x2b0   :  { %v4924_v13 = vadd.f32 %v1874_v10, %v1432_v7  ;;  %v1876_v15 = vpop.f32.mrb[99].mxu0  ;;  %4745 = vmatpush1.bf16.msra.mxu0 %v4744_v60  ;;  %v2365_v22 = vmax.f32 %v4964_v8, 0.0 }
 0x2b1   :  { %v2256_v14 = vpop.f32.mrb[98].mxu1  ;;  %4783 = vmatprep.subr.bf16.mxu1 %v4782_v4  ;;  %v4925_v17 = vadd.f32 %v1876_v15, %v1432_v7  ;;  %v2366_v27 = vmax.f32 %v4965_v12, 0.0  ;;  %v1452_v4 = vpop.permute.xlu1 %1451 }
 0x2b2   :  { %v4966_v16 = vadd.f32 %v2256_v14, %v1432_v7  ;;  %v2258_v18 = vpop.f32.mrb[99].mxu1  ;;  %4785 = vmatpush1.bf16.msra.mxu1 %v4784_v1  ;;  %v2367_v20 = vmax.f32 %v4924_v13, 0.0 }
 0x2b3   :  { %v4967_v21 = vadd.f32 %v2258_v18, %v1432_v7  ;;  %v2368_v25 = vmax.f32 %v4925_v17, 0.0  ;;  %v1880_v26 = vpop.f32.mrb[100].mxu0 }
 0x2b4   :  { %v2369_v24 = vmax.f32 %v4966_v16, 0.0  ;;  %v4748_v28 = vpack.c.bf16 %v2367_v20, %v2363_v19  ;;  %v1882_v31 = vpop.f32.mrb[101].mxu0  ;;  %v4926_v37 = vadd.f32 %v1880_v26, %v1437_v32 }
 0x2b5   :  { %v2370_v29 = vmax.f32 %v4967_v21, 0.0  ;;  %v2262_v30 = vpop.f32.mrb[100].mxu1  ;;  %v4746_v34 = vpack.c.bf16 %v2368_v25, %v2364_v23  ;;  %v4927_v40 = vadd.f32 %v1882_v31, %v1437_v32 }
 0x2b6   :  { %v4788_v33 = vpack.c.bf16 %v2369_v24, %v2365_v22  ;;  %v2264_v35 = vpop.f32.mrb[101].mxu1  ;;  %v4968_v39 = vadd.f32 %v2262_v30, %v1437_v32  ;;  %v2371_v49 = vmax.f32 %v4926_v37, 0.0  ;;  %v1457_v30 = vpop.permute.xlu0 %1456 }
 0x2b7   :  { %v4786_v36 = vpack.c.bf16 %v2370_v29, %v2366_v27  ;;  %v1886_v41 = vpop.f32.mrb[102].mxu0  ;;  %4747 = vmatprep.subr.bf16.mxu0 %v4746_v34  ;;  %v4969_v42 = vadd.f32 %v2264_v35, %v1437_v32  ;;  %v2372_v53 = vmax.f32 %v4927_v40, 0.0 }
 0x2b8   :  { %v4928_v43 = vadd.f32 %v1886_v41, %v1442_v38  ;;  %v1888_v45 = vpop.f32.mrb[103].mxu0  ;;  %4749 = vmatpush1.bf16.msra.mxu0 %v4748_v28  ;;  %v2373_v52 = vmax.f32 %v4968_v39, 0.0 }
 0x2b9   :  { %v2268_v44 = vpop.f32.mrb[102].mxu1  ;;  %4787 = vmatprep.subr.bf16.mxu1 %v4786_v36  ;;  %v4929_v47 = vadd.f32 %v1888_v45, %v1442_v38  ;;  %v2374_v57 = vmax.f32 %v4969_v42, 0.0  ;;  %v1462_v36 = vpop.permute.xlu1 %1461 }
 0x2ba   :  { %v4970_v46 = vadd.f32 %v2268_v44, %v1442_v38  ;;  %v2270_v48 = vpop.f32.mrb[103].mxu1  ;;  %4789 = vmatpush1.bf16.msra.mxu1 %v4788_v33  ;;  %v2375_v50 = vmax.f32 %v4928_v43, 0.0 }
 0x2bb   :  { %v4971_v51 = vadd.f32 %v2270_v48, %v1442_v38  ;;  %v2376_v55 = vmax.f32 %v4929_v47, 0.0  ;;  %v1892_v56 = vpop.f32.mrb[104].mxu0 }
 0x2bc   :  { %v2377_v54 = vmax.f32 %v4970_v46, 0.0  ;;  %v4752_v58 = vpack.c.bf16 %v2375_v50, %v2371_v49  ;;  %v1894_v61 = vpop.f32.mrb[105].mxu0  ;;  %v4930_v3 = vadd.f32 %v1892_v56, %v1447_v62 }
 0x2bd   :  { %v2378_v59 = vmax.f32 %v4971_v51, 0.0  ;;  %v2274_v60 = vpop.f32.mrb[104].mxu1  ;;  %v4750_v0 = vpack.c.bf16 %v2376_v55, %v2372_v53  ;;  %v4931_v7 = vadd.f32 %v1894_v61, %v1447_v62 }
 0x2be   :  { %v4792_v63 = vpack.c.bf16 %v2377_v54, %v2373_v52  ;;  %v2276_v1 = vpop.f32.mrb[105].mxu1  ;;  %v4972_v5 = vadd.f32 %v2274_v60, %v1447_v62  ;;  %v2379_v17 = vmax.f32 %v4930_v3, 0.0  ;;  %v1467_v60 = vpop.permute.xlu0 %1466 }
 0x2bf   :  { %v4790_v2 = vpack.c.bf16 %v2378_v59, %v2374_v57  ;;  %v1898_v8 = vpop.f32.mrb[106].mxu0  ;;  %4751 = vmatprep.subr.bf16.mxu0 %v4750_v0  ;;  %v4973_v9 = vadd.f32 %v2276_v1, %v1447_v62  ;;  %v2380_v21 = vmax.f32 %v4931_v7, 0.0 }
 0x2c0   :  { %v4932_v10 = vadd.f32 %v1898_v8, %v1452_v4  ;;  %v1900_v13 = vpop.f32.mrb[107].mxu0  ;;  %4753 = vmatpush1.bf16.msra.mxu0 %v4752_v58  ;;  %v2381_v20 = vmax.f32 %v4972_v5, 0.0 }
 0x2c1   :  { %v2280_v12 = vpop.f32.mrb[106].mxu1  ;;  %4791 = vmatprep.subr.bf16.mxu1 %v4790_v2  ;;  %v4933_v15 = vadd.f32 %v1900_v13, %v1452_v4  ;;  %v2382_v25 = vmax.f32 %v4973_v9, 0.0  ;;  %v1472_v2 = vpop.permute.xlu1 %1471 }
 0x2c2   :  { %v4974_v14 = vadd.f32 %v2280_v12, %v1452_v4  ;;  %v2282_v16 = vpop.f32.mrb[107].mxu1  ;;  %4793 = vmatpush1.bf16.msra.mxu1 %v4792_v63  ;;  %v2383_v18 = vmax.f32 %v4932_v10, 0.0 }
 0x2c3   :  { %v4975_v19 = vadd.f32 %v2282_v16, %v1452_v4  ;;  %v2384_v23 = vmax.f32 %v4933_v15, 0.0  ;;  %v1904_v24 = vpop.f32.mrb[108].mxu0 }
 0x2c4   :  { %v2385_v22 = vmax.f32 %v4974_v14, 0.0  ;;  %v4756_v26 = vpack.c.bf16 %v2383_v18, %v2379_v17  ;;  %v1906_v29 = vpop.f32.mrb[109].mxu0  ;;  %v4934_v35 = vadd.f32 %v1904_v24, %v1457_v30 }
 0x2c5   :  { %v2386_v27 = vmax.f32 %v4975_v19, 0.0  ;;  %v2286_v28 = vpop.f32.mrb[108].mxu1  ;;  %v4754_v32 = vpack.c.bf16 %v2384_v23, %v2380_v21  ;;  %v4935_v38 = vadd.f32 %v1906_v29, %v1457_v30 }
 0x2c6   :  { %v4796_v31 = vpack.c.bf16 %v2385_v22, %v2381_v20  ;;  %v2288_v33 = vpop.f32.mrb[109].mxu1  ;;  %v4976_v37 = vadd.f32 %v2286_v28, %v1457_v30  ;;  %v2387_v47 = vmax.f32 %v4934_v35, 0.0  ;;  %v1477_v28 = vpop.permute.xlu0 %1476 }
 0x2c7   :  { %v4794_v34 = vpack.c.bf16 %v2386_v27, %v2382_v25  ;;  %v1910_v39 = vpop.f32.mrb[110].mxu0  ;;  %4755 = vmatprep.subr.bf16.mxu0 %v4754_v32  ;;  %v4977_v40 = vadd.f32 %v2288_v33, %v1457_v30  ;;  %v2388_v51 = vmax.f32 %v4935_v38, 0.0 }
 0x2c8   :  { %v4936_v41 = vadd.f32 %v1910_v39, %v1462_v36  ;;  %v1912_v43 = vpop.f32.mrb[111].mxu0  ;;  %4757 = vmatpush1.bf16.msra.mxu0 %v4756_v26  ;;  %v2389_v50 = vmax.f32 %v4976_v37, 0.0 }
 0x2c9   :  { %v2292_v42 = vpop.f32.mrb[110].mxu1  ;;  %4795 = vmatprep.subr.bf16.mxu1 %v4794_v34  ;;  %v4937_v45 = vadd.f32 %v1912_v43, %v1462_v36  ;;  %v2390_v55 = vmax.f32 %v4977_v40, 0.0  ;;  %v1482_v34 = vpop.permute.xlu1 %1481 }
 0x2ca   :  { %v4978_v44 = vadd.f32 %v2292_v42, %v1462_v36  ;;  %v2294_v46 = vpop.f32.mrb[111].mxu1  ;;  %4797 = vmatpush1.bf16.msra.mxu1 %v4796_v31  ;;  %v2391_v48 = vmax.f32 %v4936_v41, 0.0 }
 0x2cb   :  { %v4979_v49 = vadd.f32 %v2294_v46, %v1462_v36  ;;  %v2392_v53 = vmax.f32 %v4937_v45, 0.0  ;;  %v1916_v54 = vpop.f32.mrb[112].mxu0 }
 0x2cc   :  { %v2393_v52 = vmax.f32 %v4978_v44, 0.0  ;;  %v4760_v56 = vpack.c.bf16 %v2391_v48, %v2387_v47  ;;  %v1918_v59 = vpop.f32.mrb[113].mxu0  ;;  %v4938_v1 = vadd.f32 %v1916_v54, %v1467_v60 }
 0x2cd   :  { %v2394_v57 = vmax.f32 %v4979_v49, 0.0  ;;  %v2298_v58 = vpop.f32.mrb[112].mxu1  ;;  %v4758_v62 = vpack.c.bf16 %v2392_v53, %v2388_v51  ;;  %v4939_v4 = vadd.f32 %v1918_v59, %v1467_v60 }
 0x2ce   :  { %v4800_v61 = vpack.c.bf16 %v2393_v52, %v2389_v50  ;;  %v2300_v63 = vpop.f32.mrb[113].mxu1  ;;  %v4980_v3 = vadd.f32 %v2298_v58, %v1467_v60  ;;  %v2395_v15 = vmax.f32 %v4938_v1, 0.0  ;;  %v1487_v58 = vpop.permute.xlu0 %1486 }
 0x2cf   :  { %v4798_v0 = vpack.c.bf16 %v2394_v57, %v2390_v55  ;;  %v1922_v5 = vpop.f32.mrb[114].mxu0  ;;  %4759 = vmatprep.subr.bf16.mxu0 %v4758_v62  ;;  %v4981_v7 = vadd.f32 %v2300_v63, %v1467_v60  ;;  %v2396_v19 = vmax.f32 %v4939_v4, 0.0 }
 0x2d0   :  { %v4940_v8 = vadd.f32 %v1922_v5, %v1472_v2  ;;  %v1924_v10 = vpop.f32.mrb[115].mxu0  ;;  %4761 = vmatpush1.bf16.msra.mxu0 %v4760_v56  ;;  %v2397_v18 = vmax.f32 %v4980_v3, 0.0 }
 0x2d1   :  { %v2304_v9 = vpop.f32.mrb[114].mxu1  ;;  %4799 = vmatprep.subr.bf16.mxu1 %v4798_v0  ;;  %v4941_v13 = vadd.f32 %v1924_v10, %v1472_v2  ;;  %v2398_v23 = vmax.f32 %v4981_v7, 0.0  ;;  %v1492_v0 = vpop.permute.xlu1 %1491 }
 0x2d2   :  { %v4982_v12 = vadd.f32 %v2304_v9, %v1472_v2  ;;  %v2306_v14 = vpop.f32.mrb[115].mxu1  ;;  %4801 = vmatpush1.bf16.msra.mxu1 %v4800_v61  ;;  %v2399_v16 = vmax.f32 %v4940_v8, 0.0 }
 0x2d3   :  { %v4983_v17 = vadd.f32 %v2306_v14, %v1472_v2  ;;  %v2400_v21 = vmax.f32 %v4941_v13, 0.0  ;;  %v1928_v22 = vpop.f32.mrb[116].mxu0 }
 0x2d4   :  { %v2401_v20 = vmax.f32 %v4982_v12, 0.0  ;;  %v4764_v24 = vpack.c.bf16 %v2399_v16, %v2395_v15  ;;  %v1930_v27 = vpop.f32.mrb[117].mxu0  ;;  %v4942_v33 = vadd.f32 %v1928_v22, %v1477_v28  ;;  %v1497_v16 = vpop.permute.xlu0 %1496 }
 0x2d5   :  { %v2402_v25 = vmax.f32 %v4983_v17, 0.0  ;;  %v2310_v26 = vpop.f32.mrb[116].mxu1  ;;  %v4762_v30 = vpack.c.bf16 %v2400_v21, %v2396_v19  ;;  %v4943_v36 = vadd.f32 %v1930_v27, %v1477_v28 }
 0x2d6   :  { %v4804_v29 = vpack.c.bf16 %v2401_v20, %v2397_v18  ;;  %v2312_v31 = vpop.f32.mrb[117].mxu1  ;;  %v4984_v35 = vadd.f32 %v2310_v26, %v1477_v28  ;;  %v2403_v45 = vmax.f32 %v4942_v33, 0.0 }
 0x2d7   :  { %v4802_v32 = vpack.c.bf16 %v2402_v25, %v2398_v23  ;;  %v1934_v37 = vpop.f32.mrb[118].mxu0  ;;  %4763 = vmatprep.subr.bf16.mxu0 %v4762_v30  ;;  %v4985_v38 = vadd.f32 %v2312_v31, %v1477_v28  ;;  %v2404_v49 = vmax.f32 %v4943_v36, 0.0 }
 0x2d8   :  { %v4944_v39 = vadd.f32 %v1934_v37, %v1482_v34  ;;  %v1936_v41 = vpop.f32.mrb[119].mxu0  ;;  %4765 = vmatpush1.bf16.msra.mxu0 %v4764_v24  ;;  %v2405_v48 = vmax.f32 %v4984_v35, 0.0 }
 0x2d9   :  { %v2316_v40 = vpop.f32.mrb[118].mxu1  ;;  %4803 = vmatprep.subr.bf16.mxu1 %v4802_v32  ;;  %v4945_v43 = vadd.f32 %v1936_v41, %v1482_v34  ;;  %v2406_v53 = vmax.f32 %v4985_v38, 0.0  ;;  %v2423_v38 = vld [vmem:[%s6454_s5] sm:$0xff]  ;;  %v2425_v41 = vld [vmem:[%s6454_s5 + $0x10] sm:$0xff] }
 0x2da   :  { %v4986_v42 = vadd.f32 %v2316_v40, %v1482_v34  ;;  %v2318_v44 = vpop.f32.mrb[119].mxu1  ;;  %4805 = vmatpush1.bf16.msra.mxu1 %v4804_v29  ;;  %v2407_v46 = vmax.f32 %v4944_v39, 0.0  ;;  %v2426_v40 = vld [vmem:[%s6454_s5 + $0x18] sm:$0xff] }
 0x2db   :  { %v4987_v47 = vadd.f32 %v2318_v44, %v1482_v34  ;;  %v2408_v51 = vmax.f32 %v4945_v43, 0.0  ;;  %v1940_v52 = vpop.f32.mrb[120].mxu0  ;;  %v2427_v43 = vld [vmem:[%s6454_s5 + $0x20] sm:$0xff]  ;;  %v2430_v44 = vld [vmem:[%s6454_s5 + $0x38] sm:$0xff] }
 0x2dc   :  { %v2409_v50 = vmax.f32 %v4986_v42, 0.0  ;;  %v4768_v54 = vpack.c.bf16 %v2407_v46, %v2403_v45  ;;  %v1942_v57 = vpop.f32.mrb[121].mxu0  ;;  %v4946_v63 = vadd.f32 %v1940_v52, %v1487_v58  ;;  %v2428_v42 = vld [vmem:[%s6454_s5 + $0x28] sm:$0xff]  ;;  %v2429_v45 = vld [vmem:[%s6454_s5 + $0x30] sm:$0xff]  ;;  %v2438_v52 = vld [vmem:[%s6454_s5 + $0x78] sm:$0xff] }
 0x2dd   :  { %v2410_v55 = vmax.f32 %v4987_v47, 0.0  ;;  %v2322_v56 = vpop.f32.mrb[120].mxu1  ;;  %v4766_v60 = vpack.c.bf16 %v2408_v51, %v2404_v49  ;;  %v4947_v2 = vadd.f32 %v1942_v57, %v1487_v58  ;;  %v2432_v46 = vld [vmem:[%s6454_s5 + $0x48] sm:$0xff]  ;;  %v2431_v47 = vld [vmem:[%s6454_s5 + $0x40] sm:$0xff]  ;;  %v2433_v49 = vld [vmem:[%s6454_s5 + $0x50] sm:$0xff] }
 0x2de   :  { %v4808_v59 = vpack.c.bf16 %v2409_v50, %v2405_v48  ;;  %v2324_v61 = vpop.f32.mrb[121].mxu1  ;;  %v4988_v1 = vadd.f32 %v2322_v56, %v1487_v58  ;;  %v2411_v13 = vmax.f32 %v4946_v63, 0.0  ;;  %v2434_v48 = vld [vmem:[%s6454_s5 + $0x58] sm:$0xff]  ;;  %v2436_v50 = vld [vmem:[%s6454_s5 + $0x68] sm:$0xff]  ;;  %v2435_v51 = vld [vmem:[%s6454_s5 + $0x60] sm:$0xff] }
 0x2df   :  { %v4806_v62 = vpack.c.bf16 %v2410_v55, %v2406_v53  ;;  %v1946_v3 = vpop.f32.mrb[122].mxu0  ;;  %4767 = vmatprep.subr.bf16.mxu0 %v4766_v60  ;;  %v4989_v4 = vadd.f32 %v2324_v61, %v1487_v58  ;;  %v2412_v18 = vmax.f32 %v4947_v2, 0.0  ;;  %v2437_v53 = vld [vmem:[%s6454_s5 + $0x70] sm:$0xff]  ;;  %v2439_v55 = vld [vmem:[%s6454_s5 + $0x80] sm:$0xff]  ;;  %v2442_v56 = vld [vmem:[%s6454_s5 + $0x98] sm:$0xff]  ;;  %v2456_v61 = vpop.permute.xlu1 %2455 }
 0x2e0   :  { %v4948_v5 = vadd.f32 %v1946_v3, %v1492_v0  ;;  %v1948_v8 = vpop.f32.mrb[123].mxu0  ;;  %4769 = vmatpush1.bf16.msra.mxu0 %v4768_v54  ;;  %v2413_v17 = vmax.f32 %v4988_v1, 0.0  ;;  %v2440_v54 = vld [vmem:[%s6454_s5 + $0x88] sm:$0xff]  ;;  %v2441_v57 = vld [vmem:[%s6454_s5 + $0x90] sm:$0xff] }
 0x2e1   :  { %v2328_v7 = vpop.f32.mrb[122].mxu1  ;;  %4807 = vmatprep.subr.bf16.mxu1 %v4806_v62  ;;  %v4949_v10 = vadd.f32 %v1948_v8, %v1492_v0  ;;  %v2414_v22 = vmax.f32 %v4989_v4, 0.0 }
 0x2e2   :  { %v4990_v9 = vadd.f32 %v2328_v7, %v1492_v0  ;;  %v2330_v12 = vpop.f32.mrb[123].mxu1  ;;  %4809 = vmatpush1.bf16.msra.mxu1 %v4808_v59  ;;  %v2415_v14 = vmax.f32 %v4948_v5, 0.0 }
 0x2e3   :  { %v4991_v15 = vadd.f32 %v2330_v12, %v1492_v0  ;;  %v2416_v20 = vmax.f32 %v4949_v10, 0.0  ;;  %v1952_v21 = vpop.f32.mrb[124].mxu0  ;;  %v2461_v0 = vpop.permute.xlu0 %2460 }
 0x2e4   :  { %v2417_v19 = vmax.f32 %v4990_v9, 0.0  ;;  %v4772_v23 = vpack.c.bf16 %v2415_v14, %v2411_v13  ;;  %v1954_v26 = vpop.f32.mrb[125].mxu0  ;;  %v4950_v32 = vadd.f32 %v1952_v21, %v1497_v16 }
 0x2e5   :  { %v2418_v24 = vmax.f32 %v4991_v15, 0.0  ;;  %v2334_v25 = vpop.f32.mrb[124].mxu1  ;;  %v4770_v28 = vpack.c.bf16 %v2416_v20, %v2412_v18  ;;  %v4951_v29 = vadd.f32 %v1954_v26, %v1497_v16  ;;  %v2466_v26 = vpop.permute.xlu1 %2465 }
 0x2e6   :  { %v4812_v27 = vpack.c.bf16 %v2417_v19, %v2413_v17  ;;  %v2336_v30 = vpop.f32.mrb[125].mxu1  ;;  %v4992_v34 = vadd.f32 %v2334_v25, %v1497_v16  ;;  %v2419_v37 = vmax.f32 %v4950_v32, 0.0 }
 0x2e7   :  { %v4810_v31 = vpack.c.bf16 %v2418_v24, %v2414_v22  ;;  %v4993_v33 = vadd.f32 %v2336_v30, %v1497_v16  ;;  %v2420_v35 = vmax.f32 %v4951_v29, 0.0  ;;  %4771 = vmatprep.subr.bf16.mxu0 %v4770_v28  ;;  %v2471_v32 = vpop.permute.xlu0 %2470 }
 0x2e8   :  { %4773 = vmatpush1.bf16.msra.mxu0 %v4772_v23  ;;  %v2421_v39 = vmax.f32 %v4992_v34, 0.0 }
 0x2e9   :  { %v2422_v36 = vmax.f32 %v4993_v33, 0.0  ;;  %4811 = vmatprep.subr.bf16.mxu1 %v4810_v31  ;;  %4488 = vmatprep.subr.msk.mxu0 %vm2534_vm6, %v2420_v35 }
 0x2ea   :  { %4813 = vmatpush1.bf16.msra.mxu1 %v4812_v27 }
 0x2eb   :  { %4500 = vmatprep.subr.msk.mxu1 %vm2534_vm6, %v2422_v36 }
 0x2ec   :  { %4489 = vmatpush1.msk.msra.mxu0 %vm2534_vm6, %v2419_v37 }
 0x2ed   :  { %2612 = vmatmul.mubr.f32.vlgmr.msra.gmra.mrb[126].mxu0 %v2423_v38 }
 0x2ee   :  { %4501 = vmatpush1.msk.msra.mxu1 %vm2534_vm6, %v2421_v39  ;;  %4491 = vmatprep.mubr.msk.f32.mxu0 %vm2503_vm5, %v2426_v40 }
 0x2ef   :  { %2737 = vmatmul.mubr.f32.vlgmr.msra.gmra.mrb[126].mxu1 %v2423_v38 }
 0x2f0   :  { %4503 = vmatprep.mubr.msk.f32.mxu1 %vm2503_vm5, %v2426_v40 }
 0x2f1   :  { %2618 = vmatmul.mubr.f32.gmra.mrb[128].mxu0 %v2425_v41 }
 0x2f2   :  { %4492 = vmatprep.mubr.msk.f32.mxu0 %vm2503_vm5, %v2428_v42 }
 0x2f3   :  { %2743 = vmatmul.mubr.f32.gmra.mrb[128].mxu1 %v2425_v41 }
 0x2f4   :  { %4504 = vmatprep.mubr.msk.f32.mxu1 %vm2503_vm5, %v2428_v42 }
 0x2f5   :  { %2624 = vmatmul.mubr.f32.gmra.mrb[130].mxu0 %v2427_v43 }
 0x2f6   :  { %4493 = vmatprep.mubr.msk.f32.mxu0 %vm2503_vm5, %v2430_v44 }
 0x2f7   :  { %2749 = vmatmul.mubr.f32.gmra.mrb[130].mxu1 %v2427_v43 }
 0x2f8   :  { %4505 = vmatprep.mubr.msk.f32.mxu1 %vm2503_vm5, %v2430_v44 }
 0x2f9   :  { %2630 = vmatmul.mubr.f32.gmra.mrb[132].mxu0 %v2429_v45 }
 0x2fa   :  { %4494 = vmatprep.mubr.msk.f32.mxu0 %vm2503_vm5, %v2432_v46 }
 0x2fb   :  { %2755 = vmatmul.mubr.f32.gmra.mrb[132].mxu1 %v2429_v45 }
 0x2fc   :  { %4506 = vmatprep.mubr.msk.f32.mxu1 %vm2503_vm5, %v2432_v46 }
 0x2fd   :  { %2636 = vmatmul.mubr.f32.gmra.mrb[134].mxu0 %v2431_v47 }
 0x2fe   :  { %4495 = vmatprep.mubr.msk.f32.mxu0 %vm2503_vm5, %v2434_v48 }
 0x2ff   :  { %2761 = vmatmul.mubr.f32.gmra.mrb[134].mxu1 %v2431_v47 }
 0x300   :  { %4507 = vmatprep.mubr.msk.f32.mxu1 %vm2503_vm5, %v2434_v48 }
 0x301   :  { %2642 = vmatmul.mubr.f32.gmra.mrb[136].mxu0 %v2433_v49 }
 0x302   :  { %4496 = vmatprep.mubr.msk.f32.mxu0 %vm2503_vm5, %v2436_v50 }
 0x303   :  { %2767 = vmatmul.mubr.f32.gmra.mrb[136].mxu1 %v2433_v49 }
 0x304   :  { %4508 = vmatprep.mubr.msk.f32.mxu1 %vm2503_vm5, %v2436_v50 }
 0x305   :  { %2648 = vmatmul.mubr.f32.gmra.mrb[138].mxu0 %v2435_v51 }
 0x306   :  { %4497 = vmatprep.mubr.msk.f32.mxu0 %vm2503_vm5, %v2438_v52 }
 0x307   :  { %2773 = vmatmul.mubr.f32.gmra.mrb[138].mxu1 %v2435_v51 }
 0x308   :  { %4509 = vmatprep.mubr.msk.f32.mxu1 %vm2503_vm5, %v2438_v52 }
 0x309   :  { %2654 = vmatmul.mubr.f32.gmra.mrb[140].mxu0 %v2437_v53 }
 0x30a   :  { %4498 = vmatprep.mubr.msk.f32.mxu0 %vm2503_vm5, %v2440_v54 }
 0x30b   :  { %2779 = vmatmul.mubr.f32.gmra.mrb[140].mxu1 %v2437_v53 }
 0x30c   :  { %4510 = vmatprep.mubr.msk.f32.mxu1 %vm2503_vm5, %v2440_v54 }
 0x30d   :  { %2660 = vmatmul.mubr.f32.gmra.mrb[142].mxu0 %v2439_v55 }
 0x30e   :  { %4499 = vmatprep.mubr.msk.f32.mxu0 %vm2503_vm5, %v2442_v56 }
 0x30f   :  { %2785 = vmatmul.mubr.f32.gmra.mrb[142].mxu1 %v2439_v55 }
 0x310   :  { %4511 = vmatprep.mubr.msk.f32.mxu1 %vm2503_vm5, %v2442_v56  ;;  %v2476_v56 = vpop.permute.xlu1 %2475 }
 0x311   :  { %2666 = vmatmul.mubr.f32.gmra.mrb[144].mxu0 %v2441_v57 }
 0x312   :  { %2922 = vmatprep.mubr.f32.mxu0 %v5127_v11 }
 0x313   :  { %2791 = vmatmul.mubr.f32.gmra.mrb[144].mxu1 %v2441_v57 }
 0x314   :  { %2999 = vmatprep.mubr.f32.mxu1 %v5127_v11 }
 0x3c0   :  { %v2613_v58 = vpop.f32.mrb[126].mxu0 }
 0x3c1   :  { %v2615_v60 = vpop.f32.mrb[127].mxu0  ;;  %v2614_v63 = vadd.f32 %v2613_v58, %v2456_v61 }
 0x3c2   :  { %v2738_v59 = vpop.f32.mrb[126].mxu1  ;;  %v2616_v2 = vadd.f32 %v2615_v60, %v2456_v61 }
 0x3c3   :  { %v2740_v62 = vpop.f32.mrb[127].mxu1  ;;  %v2739_v1 = vadd.f32 %v2738_v59, %v2456_v61  ;;  %v2797_v13 = vmax.f32 %v2614_v63, 0.0 }
 0x3c4   :  { %v2619_v3 = vpop.f32.mrb[128].mxu0  ;;  %v2741_v4 = vadd.f32 %v2740_v62, %v2456_v61  ;;  %v2798_v17 = vmax.f32 %v2616_v2, 0.0  ;;  %v2481_v62 = vpop.permute.xlu0 %2480 }
 0x3c5   :  { %v2620_v5 = vadd.f32 %v2619_v3, %v2461_v0  ;;  %v2621_v8 = vpop.f32.mrb[129].mxu0  ;;  %v2799_v16 = vmax.f32 %v2739_v1, 0.0 }
 0x3c6   :  { %v2744_v7 = vpop.f32.mrb[128].mxu1  ;;  %v2622_v10 = vadd.f32 %v2621_v8, %v2461_v0  ;;  %v2800_v21 = vmax.f32 %v2741_v4, 0.0 }
 0x3c7   :  { %v2745_v9 = vadd.f32 %v2744_v7, %v2461_v0  ;;  %v2746_v12 = vpop.f32.mrb[129].mxu1  ;;  %v2801_v14 = vmax.f32 %v2620_v5, 0.0 }
 0x3c8   :  { %v2747_v15 = vadd.f32 %v2746_v12, %v2461_v0  ;;  %v2802_v19 = vmax.f32 %v2622_v10, 0.0  ;;  %v2625_v20 = vpop.f32.mrb[130].mxu0 }
 0x3c9   :  { %v2803_v18 = vmax.f32 %v2745_v9, 0.0  ;;  %v4816_v22 = vpack.c.bf16 %v2801_v14, %v2797_v13  ;;  %v2627_v25 = vpop.f32.mrb[131].mxu0  ;;  %v2626_v31 = vadd.f32 %v2625_v20, %v2466_v26 }
 0x3ca   :  { %v2804_v23 = vmax.f32 %v2747_v15, 0.0  ;;  %v2750_v24 = vpop.f32.mrb[130].mxu1  ;;  %v4814_v28 = vpack.c.bf16 %v2802_v19, %v2798_v17  ;;  %v2628_v34 = vadd.f32 %v2627_v25, %v2466_v26 }
 0x3cb   :  { %v4836_v27 = vpack.c.bf16 %v2803_v18, %v2799_v16  ;;  %v2752_v29 = vpop.f32.mrb[131].mxu1  ;;  %v2751_v33 = vadd.f32 %v2750_v24, %v2466_v26  ;;  %v2805_v43 = vmax.f32 %v2626_v31, 0.0  ;;  %v2486_v24 = vpop.permute.xlu1 %2485 }
 0x3cc   :  { %v4834_v30 = vpack.c.bf16 %v2804_v23, %v2800_v21  ;;  %v2631_v35 = vpop.f32.mrb[132].mxu0  ;;  %4815 = vmatprep.subr.bf16.mxu0 %v4814_v28  ;;  %v2753_v36 = vadd.f32 %v2752_v29, %v2466_v26  ;;  %v2806_v47 = vmax.f32 %v2628_v34, 0.0 }
 0x3cd   :  { %v2632_v37 = vadd.f32 %v2631_v35, %v2471_v32  ;;  %v2633_v39 = vpop.f32.mrb[133].mxu0  ;;  %4817 = vmatpush1.bf16.msra.mxu0 %v4816_v22  ;;  %v2807_v46 = vmax.f32 %v2751_v33, 0.0 }
 0x3ce   :  { %v2756_v38 = vpop.f32.mrb[132].mxu1  ;;  %4835 = vmatprep.subr.bf16.mxu1 %v4834_v30  ;;  %v2634_v41 = vadd.f32 %v2633_v39, %v2471_v32  ;;  %v2808_v51 = vmax.f32 %v2753_v36, 0.0  ;;  %v2491_v30 = vpop.permute.xlu0 %2490 }
 0x3cf   :  { %v2757_v40 = vadd.f32 %v2756_v38, %v2471_v32  ;;  %v2758_v42 = vpop.f32.mrb[133].mxu1  ;;  %4837 = vmatpush1.bf16.msra.mxu1 %v4836_v27  ;;  %v2809_v44 = vmax.f32 %v2632_v37, 0.0 }
 0x3d0   :  { %v2759_v45 = vadd.f32 %v2758_v42, %v2471_v32  ;;  %v2810_v49 = vmax.f32 %v2634_v41, 0.0  ;;  %v2637_v50 = vpop.f32.mrb[134].mxu0 }
 0x3d1   :  { %v2811_v48 = vmax.f32 %v2757_v40, 0.0  ;;  %v4820_v52 = vpack.c.bf16 %v2809_v44, %v2805_v43  ;;  %v2639_v55 = vpop.f32.mrb[135].mxu0  ;;  %v2638_v61 = vadd.f32 %v2637_v50, %v2476_v56 }
 0x3d2   :  { %v2812_v53 = vmax.f32 %v2759_v45, 0.0  ;;  %v2762_v54 = vpop.f32.mrb[134].mxu1  ;;  %v4818_v58 = vpack.c.bf16 %v2810_v49, %v2806_v47  ;;  %v2640_v0 = vadd.f32 %v2639_v55, %v2476_v56 }
 0x3d3   :  { %v4840_v57 = vpack.c.bf16 %v2811_v48, %v2807_v46  ;;  %v2764_v59 = vpop.f32.mrb[135].mxu1  ;;  %v2763_v63 = vadd.f32 %v2762_v54, %v2476_v56  ;;  %v2813_v10 = vmax.f32 %v2638_v61, 0.0  ;;  %v2496_v54 = vpop.permute.xlu1 %2495 }
 0x3d4   :  { %v4838_v60 = vpack.c.bf16 %v2812_v53, %v2808_v51  ;;  %v2643_v1 = vpop.f32.mrb[136].mxu0  ;;  %4819 = vmatprep.subr.bf16.mxu0 %v4818_v58  ;;  %v2765_v2 = vadd.f32 %v2764_v59, %v2476_v56  ;;  %v2814_v15 = vmax.f32 %v2640_v0, 0.0 }
 0x3d5   :  { %v2644_v3 = vadd.f32 %v2643_v1, %v2481_v62  ;;  %v2645_v5 = vpop.f32.mrb[137].mxu0  ;;  %4821 = vmatpush1.bf16.msra.mxu0 %v4820_v52  ;;  %v2815_v14 = vmax.f32 %v2763_v63, 0.0 }
 0x3d6   :  { %v2768_v4 = vpop.f32.mrb[136].mxu1  ;;  %4839 = vmatprep.subr.bf16.mxu1 %v4838_v60  ;;  %v2646_v8 = vadd.f32 %v2645_v5, %v2481_v62  ;;  %v2816_v19 = vmax.f32 %v2765_v2, 0.0  ;;  %v2501_v60 = vpop.permute.xlu0 %2500 }
 0x3d7   :  { %v2769_v7 = vadd.f32 %v2768_v4, %v2481_v62  ;;  %v2770_v9 = vpop.f32.mrb[137].mxu1  ;;  %4841 = vmatpush1.bf16.msra.mxu1 %v4840_v57  ;;  %v2817_v12 = vmax.f32 %v2644_v3, 0.0 }
 0x3d8   :  { %v2771_v13 = vadd.f32 %v2770_v9, %v2481_v62  ;;  %v2818_v17 = vmax.f32 %v2646_v8, 0.0  ;;  %v2649_v18 = vpop.f32.mrb[138].mxu0 }
 0x3d9   :  { %v2819_v16 = vmax.f32 %v2769_v7, 0.0  ;;  %v4824_v20 = vpack.c.bf16 %v2817_v12, %v2813_v10  ;;  %v2651_v23 = vpop.f32.mrb[139].mxu0  ;;  %v2650_v29 = vadd.f32 %v2649_v18, %v2486_v24 }
 0x3da   :  { %v2820_v21 = vmax.f32 %v2771_v13, 0.0  ;;  %v2774_v22 = vpop.f32.mrb[138].mxu1  ;;  %v4822_v26 = vpack.c.bf16 %v2818_v17, %v2814_v15  ;;  %v2652_v32 = vadd.f32 %v2651_v23, %v2486_v24  ;;  %v2838_v23 = vld [vmem:[%s6455_s7 + $0x8] sm:$0xff] }
 0x3db   :  { %v4844_v25 = vpack.c.bf16 %v2819_v16, %v2815_v14  ;;  %v2776_v27 = vpop.f32.mrb[139].mxu1  ;;  %v2775_v31 = vadd.f32 %v2774_v22, %v2486_v24  ;;  %v2821_v41 = vmax.f32 %v2650_v29, 0.0  ;;  %v2837_v22 = vld [vmem:[%s6455_s7] sm:$0xff] }
 0x3dc   :  { %v4842_v28 = vpack.c.bf16 %v2820_v21, %v2816_v19  ;;  %v2655_v33 = vpop.f32.mrb[140].mxu0  ;;  %4823 = vmatprep.subr.bf16.mxu0 %v4822_v26  ;;  %v2777_v34 = vadd.f32 %v2776_v27, %v2486_v24  ;;  %v2822_v45 = vmax.f32 %v2652_v32, 0.0  ;;  %v2844_v24 = vpop.permute.xlu1 %2843 }
 0x3dd   :  { %v2656_v35 = vadd.f32 %v2655_v33, %v2491_v30  ;;  %v2657_v37 = vpop.f32.mrb[141].mxu0  ;;  %4825 = vmatpush1.bf16.msra.mxu0 %v4824_v20  ;;  %v2823_v44 = vmax.f32 %v2775_v31, 0.0 }
 0x3de   :  { %v2780_v36 = vpop.f32.mrb[140].mxu1  ;;  %4843 = vmatprep.subr.bf16.mxu1 %v4842_v28  ;;  %v2658_v39 = vadd.f32 %v2657_v37, %v2491_v30  ;;  %v2824_v49 = vmax.f32 %v2777_v34, 0.0 }
 0x3df   :  { %v2781_v38 = vadd.f32 %v2780_v36, %v2491_v30  ;;  %v2782_v40 = vpop.f32.mrb[141].mxu1  ;;  %4845 = vmatpush1.bf16.msra.mxu1 %v4844_v25  ;;  %v2825_v42 = vmax.f32 %v2656_v35, 0.0 }
 0x3e0   :  { %v2783_v43 = vadd.f32 %v2782_v40, %v2491_v30  ;;  %v2826_v47 = vmax.f32 %v2658_v39, 0.0  ;;  %v2661_v48 = vpop.f32.mrb[142].mxu0  ;;  %v6197_v40 = vsub.s32 0, %v5235_v6 }
 0x3e1   :  { %v2827_v46 = vmax.f32 %v2781_v38, 0.0  ;;  %v4828_v50 = vpack.c.bf16 %v2825_v42, %v2821_v41  ;;  %v2663_v53 = vpop.f32.mrb[143].mxu0  ;;  %v2662_v59 = vadd.f32 %v2661_v48, %v2496_v54 }
 0x3e2   :  { %v2828_v51 = vmax.f32 %v2783_v43, 0.0  ;;  %v2786_v52 = vpop.f32.mrb[142].mxu1  ;;  %v4826_v56 = vpack.c.bf16 %v2826_v47, %v2822_v45  ;;  %v2664_v62 = vadd.f32 %v2663_v53, %v2496_v54 }
 0x3e3   :  { %v4848_v55 = vpack.c.bf16 %v2827_v46, %v2823_v44  ;;  %v2788_v57 = vpop.f32.mrb[143].mxu1  ;;  %v2787_v61 = vadd.f32 %v2786_v52, %v2496_v54  ;;  %v2829_v8 = vmax.f32 %v2662_v59, 0.0 }
 0x3e4   :  { %v4846_v58 = vpack.c.bf16 %v2828_v51, %v2824_v49  ;;  %v2667_v63 = vpop.f32.mrb[144].mxu0  ;;  %4827 = vmatprep.subr.bf16.mxu0 %v4826_v56  ;;  %v2789_v0 = vadd.f32 %v2788_v57, %v2496_v54  ;;  %v2830_v13 = vmax.f32 %v2664_v62, 0.0 }
 0x3e5   :  { %v2668_v1 = vadd.f32 %v2667_v63, %v2501_v60  ;;  %v2669_v3 = vpop.f32.mrb[145].mxu0  ;;  %4829 = vmatpush1.bf16.msra.mxu0 %v4828_v50  ;;  %v2831_v12 = vmax.f32 %v2787_v61, 0.0 }
 0x3e6   :  { %v2792_v2 = vpop.f32.mrb[144].mxu1  ;;  %4847 = vmatprep.subr.bf16.mxu1 %v4846_v58  ;;  %v2670_v5 = vadd.f32 %v2669_v3, %v2501_v60  ;;  %v2832_v16 = vmax.f32 %v2789_v0, 0.0 }
 0x3e7   :  { %v2793_v4 = vadd.f32 %v2792_v2, %v2501_v60  ;;  %v2794_v7 = vpop.f32.mrb[145].mxu1  ;;  %4849 = vmatpush1.bf16.msra.mxu1 %v4848_v55  ;;  %v2833_v9 = vmax.f32 %v2668_v1, 0.0 }
 0x3e8   :  { %v2795_v10 = vadd.f32 %v2794_v7, %v2501_v60  ;;  %v2834_v15 = vmax.f32 %v2670_v5, 0.0 }
 0x3e9   :  { %v2835_v14 = vmax.f32 %v2793_v4, 0.0  ;;  %v4832_v17 = vpack.c.bf16 %v2833_v9, %v2829_v8 }
 0x3ea   :  { %v2836_v18 = vmax.f32 %v2795_v10, 0.0  ;;  %v4830_v20 = vpack.c.bf16 %v2834_v15, %v2830_v13 }
 0x3eb   :  { %v4852_v19 = vpack.c.bf16 %v2835_v14, %v2831_v12 }
 0x3ec   :  { %v4850_v21 = vpack.c.bf16 %v2836_v18, %v2832_v16  ;;  %4831 = vmatprep.subr.bf16.mxu0 %v4830_v20 }
 0x3ed   :  { %4833 = vmatpush1.bf16.msra.mxu0 %v4832_v17 }
 0x3ee   :  { %4851 = vmatprep.subr.bf16.mxu1 %v4850_v21 }
 0x3ef   :  { %4853 = vmatpush1.bf16.msra.mxu1 %v4852_v19 }
 0x3f0   :  { %4512 = vmatmul.mubr.msk.f32.vlgmr.msra.gmra.mrb[146].mxu0 %vm2851_vm7, %v2837_v22 }
 0x3f1   :  { %2928 = vmatprep.mubr.f32.mxu0 %v5127_v11 }
 0x3f2   :  { %4514 = vmatmul.mubr.msk.f32.vlgmr.msra.gmra.mrb[146].mxu1 %vm2851_vm7, %v2837_v22 }
 0x3f3   :  { %3005 = vmatprep.mubr.f32.mxu1 %v5127_v11 }
 0x3f4   :  { %4513 = vmatmul.mubr.msk.f32.gmra.mrb[148].mxu0 %vm2851_vm7, %v2838_v23 }
 0x3f5   :  { %3496 = vmatprep.mubr.f32.mxu0 %v5127_v11 }
 0x3f6   :  { %4515 = vmatmul.mubr.msk.f32.gmra.mrb[148].mxu1 %vm2851_vm7, %v2838_v23 }
 0x3f7   :  { %3615 = vmatprep.mubr.f32.mxu1 %v5127_v11 }
 0x4c3   :  { %v2924_v25 = vpop.f32.mrb[146].mxu0 }
 0x4c4   :  { %v6179_v26 = vadd.f32 %v2924_v25, %v2844_v24  ;;  %v2926_v28 = vpop.f32.mrb[147].mxu0 }
 0x4c5   :  { %v3001_v27 = vpop.f32.mrb[146].mxu1  ;;  %v6183_v30 = vadd.f32 %v2926_v28, %v2844_v24 }
 0x4c6   :  { %v6181_v29 = vadd.f32 %v3001_v27, %v2844_v24  ;;  %v3003_v31 = vpop.f32.mrb[147].mxu1  ;;  %v3024_v32 = vrot.slane %v6179_v26, 1  ;;  %v3036_v36 = vrot.slane %v6179_v26, 2  ;;  %v3048_v46 = vrot.slane %v6179_v26, 3 }
 0x4c7   :  { %v6187_v34 = vpop.f32.mrb[148].mxu0  ;;  %v3025_v37 = vrot.slane %v6183_v30, 1  ;;  %v6201_v43 = vadd.f32 %v3003_v31, %v2844_v24  ;;  %v3037_v48 = vrot.slane %v6183_v30, 2  ;;  %v3049_v54 = vrot.slane %v6183_v30, 3 }
 0x4c8   :  { %v3026_v33 = vrot.slane %v6181_v29, 1  ;;  %v3032_v35 = vmax.f32 %v6179_v26, %v3024_v32  ;;  %v6194_v39 = vpop.f32.mrb[149].mxu0  ;;  %v3038_v42 = vrot.slane %v6181_v29, 2  ;;  %v3050_v50 = vrot.slane %v6181_v29, 3 }
 0x4c9   :  { %v6192_v38 = vpop.f32.mrb[148].mxu1  ;;  %v3033_v47 = vmax.f32 %v6183_v30, %v3025_v37  ;;  %v3027_v51 = vrot.slane %v6201_v43, 1  ;;  %v3039_v57 = vrot.slane %v6201_v43, 2  ;;  %v3051_v62 = vrot.slane %v6201_v43, 3 }
 0x4ca   :  { %v3034_v41 = vmax.f32 %v6181_v29, %v3026_v33  ;;  %v6203_v44 = vpop.f32.mrb[149].mxu1  ;;  %v3044_v45 = vmax.f32 %v3032_v35, %v3036_v36 }
 0x4cb   :  { %v3045_v53 = vmax.f32 %v3033_v47, %v3037_v48  ;;  %v3035_v56 = vmax.f32 %v6201_v43, %v3027_v51 }
 0x4cc   :  { %v3046_v49 = vmax.f32 %v3034_v41, %v3038_v42  ;;  %v3056_v52 = vmax.f32 %v3044_v45, %v3048_v46 }
 0x4cd   :  { %v3057_v59 = vmax.f32 %v3045_v53, %v3049_v54  ;;  %v3047_v61 = vmax.f32 %v3035_v56, %v3039_v57 }
 0x4ce   :  { %v3058_v55 = vmax.f32 %v3046_v49, %v3050_v50  ;;  %v3063_v58 = vrot.slane %v3056_v52, %v6197_v40  ;;  %v2849_v49 = vpop.permute.xlu0 %2848 }
 0x4cf   :  { %v3067_v0 = vrot.slane %v3057_v59, %v6197_v40  ;;  %v3059_v2 = vmax.f32 %v3047_v61, %v3051_v62  ;;  %v2931_v50 = vadd.f32 %v6187_v34, %v2849_v49  ;;  %v2933_v52 = vadd.f32 %v6194_v39, %v2849_v49 }
 0x4d0   :  { %v3071_v60 = vrot.slane %v3058_v55, %v6197_v40  ;;  %v3076_v63 = vsub.f32 %v6179_v26, %v3063_v58  ;;  %v3008_v61 = vadd.f32 %v6192_v38, %v2849_v49  ;;  %v3010_v39 = vadd.f32 %v6203_v44, %v2849_v49 }
 0x4d1   :  { %v3077_v4 = vsub.f32 %v6183_v30, %v3067_v0  ;;  %v3075_v7 = vrot.slane %v3059_v2, %v6197_v40  ;;  %v6258_v2 = vsub.s32 2, %v5235_v6  ;;  %v6262_v38 = vsub.s32 3, %v5235_v6 }
 0x4d2   :  { %v3078_v1 = vsub.f32 %v6181_v29, %v3071_v60  ;;  %v3080_v3 = vmul.f32 1.442695, %v3076_v63  ;;  %v6253_v63 = vsub.s32 1, %v5235_v6 }
 0x4d3   :  { %v3082_v8 = vmul.f32 1.442695, %v3077_v4  ;;  %v3079_v9 = vsub.f32 %v6201_v43, %v3075_v7 }
 0x4d4   :  { %v3084_v5 = vmul.f32 1.442695, %v3078_v1  ;;  %5085 = vpow2.f32 %v3080_v3 }
 0x4d5   :  { %v3086_v10 = vmul.f32 1.442695, %v3079_v9 }
 0x4d6   :  { %5087 = vpow2.f32 %v3084_v5 }
 0x4d7   :  { %5089 = vpow2.f32 %v3082_v8 }
 0x4d8   :  { %5091 = vpow2.f32 %v3086_v10 }
 0x4de   :  { %v6222_v12 = vpop.eup %5085 }
 0x4df   :  { %v3092_v14 = vrot.slane %v6222_v12, 1  ;;  %v3104_v19 = vrot.slane %v6222_v12, 2  ;;  %v3116_v27 = vrot.slane %v6222_v12, 3 }
 0x4e0   :  { %v6224_v13 = vpop.eup %5087 }
 0x4e1   :  { %v6227_v15 = vpop.eup %5089  ;;  %v3094_v16 = vrot.slane %v6224_v13, 1  ;;  %v3100_v18 = vadd.f32 %v6222_v12, %v3092_v14  ;;  %v3106_v21 = vrot.slane %v6224_v13, 2  ;;  %v3118_v32 = vrot.slane %v6224_v13, 3 }
 0x4e2   :  { %v3093_v17 = vrot.slane %v6227_v15, 1  ;;  %v6235_v22 = vpop.eup %5091  ;;  %v3105_v24 = vrot.slane %v6227_v15, 2  ;;  %v3117_v35 = vrot.slane %v6227_v15, 3 }
 0x4e3   :  { %v3102_v20 = vadd.f32 %v6224_v13, %v3094_v16  ;;  %v3112_v25 = vadd.f32 %v3104_v19, %v3100_v18  ;;  %v3095_v28 = vrot.slane %v6235_v22, 1  ;;  %v3107_v41 = vrot.slane %v6235_v22, 2 }
 0x4e4   :  { %v3101_v23 = vadd.f32 %v6227_v15, %v3093_v17  ;;  %v3119_v47 = vrot.slane %v6235_v22, 3 }
 0x4e5   :  { %v3114_v31 = vadd.f32 %v3106_v21, %v3102_v20  ;;  %v3124_v36 = vadd.f32 %v3116_v27, %v3112_v25  ;;  %v3103_v37 = vadd.f32 %v6235_v22, %v3095_v28 }
 0x4e6   :  { %v3113_v33 = vadd.f32 %v3105_v24, %v3101_v23 }
 0x4e7   :  { %v3126_v42 = vadd.f32 %v3118_v32, %v3114_v31  ;;  %5093 = vrcp.f32 %v3124_v36  ;;  %v3115_v46 = vadd.f32 %v3107_v41, %v3103_v37 }
 0x4e8   :  { %v3125_v45 = vadd.f32 %v3117_v35, %v3113_v33 }
 0x4e9   :  { %5095 = vrcp.f32 %v3126_v42  ;;  %v3127_v48 = vadd.f32 %v3119_v47, %v3115_v46 }
 0x4ea   :  { %5097 = vrcp.f32 %v3125_v45 }
 0x4eb   :  { %5099 = vrcp.f32 %v3127_v48 }
 0x4ec   :  { %5101 = vtanh.f32 %v6179_v26 }
 0x4ed   :  { %5103 = vtanh.f32 %v6183_v30 }
 0x4ee   :  { %5105 = vtanh.f32 %v2931_v50 }
 0x4ef   :  { %5107 = vtanh.f32 %v2933_v52 }
 0x4f0   :  { %5109 = vtanh.f32 %v6181_v29 }
 0x4f1   :  { %v5094_v51 = vpop.eup %5093  ;;  %5111 = vtanh.f32 %v6201_v43 }
 0x4f2   :  { %v3132_v54 = vmul.f32 %v5094_v51, %v3124_v36  ;;  %5113 = vtanh.f32 %v3008_v61 }
 0x4f3   :  { %v5096_v53 = vpop.eup %5095  ;;  %5115 = vtanh.f32 %v3010_v39 }
 0x4f4   :  { %v5098_v55 = vpop.eup %5097  ;;  %v3134_v56 = vmul.f32 %v5096_v53, %v3126_v42  ;;  %v3136_v58 = vsub.f32 2.0, %v3132_v54 }
 0x4f5   :  { %v3133_v57 = vmul.f32 %v5098_v55, %v3125_v45  ;;  %v5100_v60 = vpop.eup %5099 }
 0x4f6   :  { %v3138_v59 = vsub.f32 2.0, %v3134_v56  ;;  %v3140_v62 = vmul.f32 %v5094_v51, %v3136_v58  ;;  %v3135_v26 = vmul.f32 %v5100_v60, %v3127_v48  ;;  %v5102_v8 = vpop.eup %5101 }
 0x4f7   :  { %v3137_v34 = vsub.f32 2.0, %v3133_v57  ;;  %v5104_v14 = vpop.eup %5103 }
 0x4f8   :  { %v3142_v0 = vmul.f32 %v5096_v53, %v3138_v59  ;;  %v3147_v1 = vrot.slane %v3140_v62, %v6197_v40  ;;  %v3139_v3 = vsub.f32 2.0, %v3135_v26  ;;  %v5106_v18 = vpop.eup %5105 }
 0x4f9   :  { %v3141_v30 = vmul.f32 %v5098_v55, %v3137_v34  ;;  %v5108_v23 = vpop.eup %5107 }
 0x4fa   :  { %v3155_v44 = vrot.slane %v3142_v0, %v6197_v40  ;;  %v3160_v5 = vmul.f32 %v6222_v12, %v3147_v1  ;;  %v3143_v29 = vmul.f32 %v5100_v60, %v3139_v3  ;;  %v5110_v45 = vpop.eup %5109 }
 0x4fb   :  { %v3151_v4 = vrot.slane %v3141_v30, %v6197_v40  ;;  %v5112_v50 = vpop.eup %5111 }
 0x4fc   :  { %v6268_v7 = vmul.f32 %v6224_v13, %v3155_v44  ;;  %v3177_v43 = vrot.slane %v3160_v5, %v6197_v40  ;;  %v3197_v6 = vrot.slane %v3160_v5, %v6253_v63  ;;  %v3249_v10 = vrot.slane %v3160_v5, %v6258_v2  ;;  %v5114_v55 = vpop.eup %5113 }
 0x4fd   :  { %v3161_v9 = vmul.f32 %v6227_v15, %v3151_v4  ;;  %v3285_v16 = vrot.slane %v3160_v5, %v6262_v38  ;;  %v3159_v17 = vrot.slane %v3143_v29, %v6197_v40  ;;  %v5116_v60 = vpop.eup %5115 }
 0x4fe   :  { %v3185_v12 = vrot.slane %v6268_v7, %v6197_v40  ;;  %v3205_v13 = vrot.slane %v6268_v7, %v6253_v63  ;;  %v3190_v20 = vmul.f32 %v5102_v8, %v3177_v43  ;;  %v3210_v24 = vmul.f32 %v5102_v8, %v3197_v6 }
 0x4ff   :  { %v3168_v19 = vcombine.low %v3160_v5, %v3161_v9  ;;  %v3181_v15 = vrot.slane %v3161_v9, %v6197_v40  ;;  %v3201_v21 = vrot.slane %v3161_v9, %v6253_v63  ;;  %v3214_v25 = vmul.f32 %v5106_v18, %v3197_v6 }
 0x500   :  { %v3253_v27 = vrot.slane %v3161_v9, %v6258_v2  ;;  %v3262_v28 = vmul.f32 %v5106_v18, %v3249_v10  ;;  %v3289_v35 = vrot.slane %v3161_v9, %v6262_v38  ;;  %v3226_v36 = vrot.slane %v3210_v24, 3 }
 0x501   :  { %3172 = vst [vmem:[%s6456_s19] sm:$0xff] %v3168_v19  ;;  %v3191_v31 = vmul.f32 %v5104_v14, %v3181_v15  ;;  %v3211_v32 = vmul.f32 %v5104_v14, %v3201_v21  ;;  %v3215_v33 = vmul.f32 %v5108_v23, %v3201_v21  ;;  %v3227_v37 = vrot.slane %v3214_v25, 3 }
 0x502   :  { %v3263_v41 = vmul.f32 %v5108_v23, %v3253_v27  ;;  %v3270_v42 = vrot.slane %v3262_v28, 6  ;;  %v3298_v48 = vmul.f32 %v5106_v18, %v3285_v16  ;;  %v3299_v49 = vmul.f32 %v5108_v23, %v3289_v35 }
 0x503   :  { %v3229_v46 = vrot.slane %v3211_v32, 3  ;;  %v3230_v47 = vrot.slane %v3215_v33, 3  ;;  %v3228_v51 = vsel %vm2534_vm6, %v3226_v36, %v3227_v37  ;;  %v3163_v53 = vmul.f32 %v6235_v22, %v3159_v17  ;;  %v3329_v33 = vld [vmem:[%s6458_s9 + $0x8] sm:$0xff] }
 0x504   :  { %v3271_v52 = vrot.slane %v3263_v41, 6  ;;  %v3192_v54 = vmul.f32 %v5110_v45, %v3185_v12  ;;  %v3242_v57 = vadd.f32 %v3228_v51, %v3190_v20  ;;  %v3306_v58 = vrot.slane %v3298_v48, 1  ;;  %v3330_v41 = vld [vmem:[%s6458_s9 + $0x10] sm:$0xff]  ;;  %v3335_v48 = vld [vmem:[%s6458_s9 + $0x38] sm:$0xff] }
 0x505   :  { %v3231_v56 = vsel %vm2534_vm6, %v3229_v46, %v3230_v47  ;;  %v3307_v59 = vrot.slane %v3299_v49, 1  ;;  %v3169_v34 = vcombine.low %v6268_v7, %v3163_v53  ;;  %v3189_v62 = vrot.slane %v3163_v53, %v6197_v40  ;;  %v3333_v46 = vld [vmem:[%s6458_s9 + $0x28] sm:$0xff]  ;;  %v3334_v47 = vld [vmem:[%s6458_s9 + $0x30] sm:$0xff]  ;;  %v3336_v49 = vld [vmem:[%s6458_s9 + $0x40] sm:$0x7] }
 0x506   :  { %v3243_v61 = vadd.f32 %v3231_v56, %v3191_v31  ;;  %v3209_v39 = vrot.slane %v3163_v53, %v6253_v63  ;;  %v3278_v26 = vadd.f32 %v3270_v42, %v3242_v57  ;;  %v3212_v0 = vmul.f32 %v5110_v45, %v3205_v13  ;;  %v3331_v42 = vld [vmem:[%s6458_s9 + $0x18] sm:$0xff]  ;;  %v3332_v45 = vld [vmem:[%s6458_s9 + $0x20] sm:$0xff] }
 0x507   :  { %v3216_v30 = vmul.f32 %v5114_v55, %v3205_v13  ;;  %v3257_v22 = vrot.slane %v6268_v7, %v6258_v2  ;;  %3173 = vst [vmem:[%s6456_s19 + $0x8] sm:$0xff] %v3169_v34  ;;  %v3193_v3 = vmul.f32 %v5112_v50, %v3189_v62  ;;  %v3261_v40 = vrot.slane %v3163_v53, %v6258_v2 }
 0x508   :  { %v3279_v1 = vadd.f32 %v3271_v52, %v3243_v61  ;;  %v3213_v44 = vmul.f32 %v5112_v50, %v3209_v39  ;;  %v3217_v4 = vmul.f32 %v5116_v60, %v3209_v39  ;;  %v3314_v5 = vadd.f32 %v3306_v58, %v3278_v26  ;;  %v3349_v52 = vpop.permute.xlu1 %3348 }
 0x509   :  { %v3232_v29 = vrot.slane %v3212_v0, 3  ;;  %v3233_v8 = vrot.slane %v3216_v30, 3  ;;  %v3264_v6 = vmul.f32 %v5114_v55, %v3257_v22  ;;  %v3265_v14 = vmul.f32 %v5116_v60, %v3261_v40 }
 0x50a   :  { %v3315_v63 = vadd.f32 %v3307_v59, %v3279_v1  ;;  %v3235_v9 = vrot.slane %v3213_v44, 3  ;;  %v3236_v43 = vrot.slane %v3217_v4, 3  ;;  %v3293_v16 = vrot.slane %v6268_v7, %v6262_v38 }
 0x50b   :  { %v3234_v10 = vsel %vm2534_vm6, %v3232_v29, %v3233_v8  ;;  %v3297_v17 = vrot.slane %v3163_v53, %v6262_v38  ;;  %v3272_v20 = vrot.slane %v3264_v6, 6  ;;  %v3273_v2 = vrot.slane %v3265_v14, 6  ;;  %v3328_v38 = vld [vmem:[%s6458_s9] sm:$0xff] }
 0x50c   :  { %v3322_v12 = vcombine.high %v3314_v5, %v3315_v63  ;;  %v3392_v13 = vrot.slane %v3315_v63, 4  ;;  %v3237_v18 = vsel %vm2534_vm6, %v3235_v9, %v3236_v43  ;;  %v3244_v19 = vadd.f32 %v3234_v10, %v3192_v54  ;;  %v3354_v54 = vpop.permute.xlu0 %3353  ;;  %v3359_v1 = vpop.permute.xlu1 %3358 }
 0x50d   :  { %v3245_v15 = vadd.f32 %v3237_v18, %v3193_v3  ;;  %v3300_v21 = vmul.f32 %v5114_v55, %v3293_v16  ;;  %v3301_v23 = vmul.f32 %v5116_v60, %v3297_v17  ;;  %v3391_v24 = vrot.slane %v3314_v5, 4 }
 0x50e   :  { %3326 = vst [vmem:[%s6457_s17] sm:$0x77] %v3322_v12  ;;  %4516 = vmatprep.subr.msk.mxu0 %vm3423_vm8, %v3392_v13  ;;  %v3280_v7 = vadd.f32 %v3272_v20, %v3244_v19 }
 0x50f   :  { %v3281_v25 = vadd.f32 %v3273_v2, %v3245_v15  ;;  %v3308_v27 = vrot.slane %v3300_v21, 1  ;;  %v3309_v28 = vrot.slane %v3301_v23, 1  ;;  %4517 = vmatpush1.msk.msra.mxu0 %vm3423_vm8, %v3391_v24 }
 0x510   :  { %4518 = vmatmul.mubr.msk.f32.vlgmr.msra.gmra.mrb[150].mxu0 %vm3395_vm9, %v3328_v38  ;;  %v3364_v4 = vpop.permute.xlu0 %3363 }
 0x511   :  { %v3316_v31 = vadd.f32 %v3308_v27, %v3280_v7  ;;  %v3317_v32 = vadd.f32 %v3309_v28, %v3281_v25  ;;  %3502 = vmatprep.mubr.f32.mxu0 %v5127_v11  ;;  %v3369_v28 = vpop.permute.xlu1 %3368 }
 0x513   :  { %v3323_v35 = vcombine.high %v3316_v31, %v3317_v32  ;;  %v3394_v36 = vrot.slane %v3317_v32, 4  ;;  %v3393_v37 = vrot.slane %v3316_v31, 4 }
 0x514   :  { %4519 = vmatmul.mubr.msk.f32.gmra.mrb[152].mxu0 %vm3395_vm9, %v3329_v33 }
 0x515   :  { %3327 = vst [vmem:[%s6457_s17 + $0x8] sm:$0x77] %v3323_v35  ;;  %4527 = vmatprep.subr.msk.mxu1 %vm3423_vm8, %v3394_v36  ;;  %3508 = vmatprep.mubr.f32.mxu0 %v5127_v11 }
 0x516   :  { %4528 = vmatpush1.msk.msra.mxu1 %vm3423_vm8, %v3393_v37 }
 0x517   :  { %4529 = vmatmul.mubr.msk.f32.vlgmr.msra.gmra.mrb[150].mxu1 %vm3395_vm9, %v3328_v38 }
 0x518   :  { %3621 = vmatprep.mubr.f32.mxu1 %v5127_v11  ;;  %4520 = vmatmul.mubr.msk.f32.gmra.mrb[154].mxu0 %vm3395_vm9, %v3330_v41 }
 0x519   :  { %3514 = vmatprep.mubr.f32.mxu0 %v5127_v11 }
 0x51b   :  { %4530 = vmatmul.mubr.msk.f32.gmra.mrb[152].mxu1 %vm3395_vm9, %v3329_v33  ;;  %v3374_v33 = vpop.permute.xlu0 %3373 }
 0x51c   :  { %3627 = vmatprep.mubr.f32.mxu1 %v5127_v11  ;;  %4521 = vmatmul.mubr.msk.f32.gmra.mrb[156].mxu0 %vm3395_vm9, %v3331_v42 }
 0x51d   :  { %3520 = vmatprep.mubr.f32.mxu0 %v5127_v11 }
 0x51f   :  { %4531 = vmatmul.mubr.msk.f32.gmra.mrb[154].mxu1 %vm3395_vm9, %v3330_v41 }
 0x520   :  { %3633 = vmatprep.mubr.f32.mxu1 %v5127_v11  ;;  %4522 = vmatmul.mubr.msk.f32.gmra.mrb[158].mxu0 %vm3395_vm9, %v3332_v45 }
 0x521   :  { %3526 = vmatprep.mubr.f32.mxu0 %v5127_v11 }
 0x523   :  { %4532 = vmatmul.mubr.msk.f32.gmra.mrb[156].mxu1 %vm3395_vm9, %v3331_v42 }
 0x524   :  { %3639 = vmatprep.mubr.f32.mxu1 %v5127_v11  ;;  %4523 = vmatmul.mubr.msk.f32.gmra.mrb[160].mxu0 %vm3395_vm9, %v3333_v46 }
 0x525   :  { %3532 = vmatprep.mubr.f32.mxu0 %v5127_v11 }
 0x527   :  { %4533 = vmatmul.mubr.msk.f32.gmra.mrb[158].mxu1 %vm3395_vm9, %v3332_v45 }
 0x528   :  { %3645 = vmatprep.mubr.f32.mxu1 %v5127_v11  ;;  %4524 = vmatmul.mubr.msk.f32.gmra.mrb[162].mxu0 %vm3395_vm9, %v3334_v47 }
 0x529   :  { %3538 = vmatprep.mubr.f32.mxu0 %v5127_v11 }
 0x52b   :  { %4534 = vmatmul.mubr.msk.f32.gmra.mrb[160].mxu1 %vm3395_vm9, %v3333_v46 }
 0x52c   :  { %3651 = vmatprep.mubr.f32.mxu1 %v5127_v11  ;;  %4525 = vmatmul.mubr.msk.f32.gmra.mrb[164].mxu0 %vm3395_vm9, %v3335_v48 }
 0x52d   :  { %3544 = vmatprep.mubr.f32.mxu0 %v5127_v11 }
 0x52f   :  { %4535 = vmatmul.mubr.msk.f32.gmra.mrb[162].mxu1 %vm3395_vm9, %v3334_v47 }
 0x530   :  { %3657 = vmatprep.mubr.f32.mxu1 %v5127_v11  ;;  %4526 = vmatmul.mubr.msk.f32.gmra.mrb[166].mxu0 %vm3395_vm9, %v3336_v49 }
 0x531   :  { %3833 = vmatprep.mubr.f32.mxu0 %v5127_v11 }
 0x533   :  { %4536 = vmatmul.mubr.msk.f32.gmra.mrb[164].mxu1 %vm3395_vm9, %v3335_v48 }
 0x534   :  { %3663 = vmatprep.mubr.f32.mxu1 %v5127_v11 }
 0x537   :  { %4537 = vmatmul.mubr.msk.f32.gmra.mrb[166].mxu1 %vm3395_vm9, %v3336_v49 }
 0x538   :  { %3928 = vmatprep.mubr.f32.mxu1 %v5127_v11 }
 0x5e3   :  { %v3498_v50 = vpop.f32.mrb[150].mxu0 }
 0x5e4   :  { %v3500_v51 = vpop.f32.mrb[151].mxu0  ;;  %v3499_v53 = vadd.f32 %v3498_v50, %v3349_v52 }
 0x5e5   :  { %v3501_v55 = vadd.f32 %v3500_v51, %v3349_v52 }
 0x5e6   :  { %v3670_v60 = vmax.f32 %v3499_v53, 0.0 }
 0x5e7   :  { %v3504_v56 = vpop.f32.mrb[152].mxu0  ;;  %v3671_v62 = vmax.f32 %v3501_v55, 0.0 }
 0x5e8   :  { %v3505_v57 = vadd.f32 %v3504_v56, %v3354_v54  ;;  %v3506_v58 = vpop.f32.mrb[153].mxu0 }
 0x5e9   :  { %v3507_v59 = vadd.f32 %v3506_v58, %v3354_v54 }
 0x5ea   :  { %v3617_v61 = vpop.f32.mrb[150].mxu1  ;;  %v3674_v34 = vmax.f32 %v3505_v57, 0.0 }
 0x5eb   :  { %v3619_v39 = vpop.f32.mrb[151].mxu1  ;;  %v3675_v26 = vmax.f32 %v3507_v59, 0.0  ;;  %v3510_v0 = vpop.f32.mrb[154].mxu0  ;;  %v3618_v3 = vadd.f32 %v3617_v61, %v3349_v52 }
 0x5ec   :  { %v4856_v30 = vpack.c.bf16 %v3674_v34, %v3670_v60  ;;  %v3512_v22 = vpop.f32.mrb[155].mxu0  ;;  %v3620_v5 = vadd.f32 %v3619_v39, %v3349_v52  ;;  %v3511_v8 = vadd.f32 %v3510_v0, %v3359_v1  ;;  %v3379_v0 = vpop.permute.xlu1 %3378 }
 0x5ed   :  { %v4854_v44 = vpack.c.bf16 %v3675_v26, %v3671_v62  ;;  %v3513_v9 = vadd.f32 %v3512_v22, %v3359_v1  ;;  %v3672_v16 = vmax.f32 %v3618_v3, 0.0 }
 0x5ee   :  { %v3623_v29 = vpop.f32.mrb[152].mxu1  ;;  %v3673_v13 = vmax.f32 %v3620_v5, 0.0  ;;  %v3678_v19 = vmax.f32 %v3511_v8, 0.0 }
 0x5ef   :  { %v3624_v40 = vadd.f32 %v3623_v29, %v3354_v54  ;;  %v3625_v63 = vpop.f32.mrb[153].mxu1  ;;  %v3516_v43 = vpop.f32.mrb[156].mxu0  ;;  %4855 = vmatprep.subr.bf16.mxu0 %v4854_v44  ;;  %v3679_v21 = vmax.f32 %v3513_v9, 0.0 }
 0x5f0   :  { %v3626_v6 = vadd.f32 %v3625_v63, %v3354_v54  ;;  %v3517_v10 = vadd.f32 %v3516_v43, %v3364_v4  ;;  %v3518_v14 = vpop.f32.mrb[157].mxu0  ;;  %4857 = vmatpush1.bf16.msra.mxu0 %v4856_v30 }
 0x5f1   :  { %v3676_v17 = vmax.f32 %v3624_v40, 0.0  ;;  %v3519_v12 = vadd.f32 %v3518_v14, %v3364_v4 }
 0x5f2   :  { %v3677_v18 = vmax.f32 %v3626_v6, 0.0  ;;  %v3629_v15 = vpop.f32.mrb[154].mxu1  ;;  %v3682_v20 = vmax.f32 %v3517_v10, 0.0 }
 0x5f3   :  { %v4872_v2 = vpack.c.bf16 %v3676_v17, %v3672_v16  ;;  %v3631_v23 = vpop.f32.mrb[155].mxu1  ;;  %v3683_v24 = vmax.f32 %v3519_v12, 0.0  ;;  %v3522_v38 = vpop.f32.mrb[158].mxu0  ;;  %v3630_v31 = vadd.f32 %v3629_v15, %v3359_v1 }
 0x5f4   :  { %v4870_v7 = vpack.c.bf16 %v3677_v18, %v3673_v13  ;;  %v4860_v25 = vpack.c.bf16 %v3682_v20, %v3678_v19  ;;  %v3524_v27 = vpop.f32.mrb[159].mxu0  ;;  %v3632_v35 = vadd.f32 %v3631_v23, %v3359_v1  ;;  %v3523_v37 = vadd.f32 %v3522_v38, %v3369_v28  ;;  %v3384_v1 = vpop.permute.xlu0 %3383 }
 0x5f5   :  { %v4858_v32 = vpack.c.bf16 %v3683_v24, %v3679_v21  ;;  %v3525_v45 = vadd.f32 %v3524_v27, %v3369_v28  ;;  %v3680_v50 = vmax.f32 %v3630_v31, 0.0  ;;  %v3389_v23 = vpop.permute.xlu1 %3388 }
 0x5f6   :  { %v3635_v36 = vpop.f32.mrb[156].mxu1  ;;  %4871 = vmatprep.subr.bf16.mxu1 %v4870_v7  ;;  %v3681_v53 = vmax.f32 %v3632_v35, 0.0  ;;  %v3686_v55 = vmax.f32 %v3523_v37, 0.0 }
 0x5f7   :  { %v3636_v41 = vadd.f32 %v3635_v36, %v3364_v4  ;;  %v3637_v42 = vpop.f32.mrb[157].mxu1  ;;  %4873 = vmatpush1.bf16.msra.mxu1 %v4872_v2  ;;  %v3528_v46 = vpop.f32.mrb[160].mxu0  ;;  %4859 = vmatprep.subr.bf16.mxu0 %v4858_v32  ;;  %v3687_v59 = vmax.f32 %v3525_v45, 0.0 }
 0x5f8   :  { %v3638_v47 = vadd.f32 %v3637_v42, %v3364_v4  ;;  %v3529_v48 = vadd.f32 %v3528_v46, %v3374_v33  ;;  %v3530_v49 = vpop.f32.mrb[161].mxu0  ;;  %4861 = vmatpush1.bf16.msra.mxu0 %v4860_v25 }
 0x5f9   :  { %v3684_v51 = vmax.f32 %v3636_v41, 0.0  ;;  %v3531_v52 = vadd.f32 %v3530_v49, %v3374_v33 }
 0x5fa   :  { %v3685_v54 = vmax.f32 %v3638_v47, 0.0  ;;  %v3641_v56 = vpop.f32.mrb[158].mxu1  ;;  %v3690_v57 = vmax.f32 %v3529_v48, 0.0 }
 0x5fb   :  { %v4876_v58 = vpack.c.bf16 %v3684_v51, %v3680_v50  ;;  %v3643_v60 = vpop.f32.mrb[159].mxu1  ;;  %v3691_v61 = vmax.f32 %v3531_v52, 0.0  ;;  %v3534_v34 = vpop.f32.mrb[162].mxu0  ;;  %v3642_v30 = vadd.f32 %v3641_v56, %v3369_v28  ;;  %v3706_v50 = vld [vmem:[%s6459_s11] sm:$0xff] }
 0x5fc   :  { %v4874_v62 = vpack.c.bf16 %v3685_v54, %v3681_v53  ;;  %v4864_v39 = vpack.c.bf16 %v3690_v57, %v3686_v55  ;;  %v3536_v26 = vpop.f32.mrb[163].mxu0  ;;  %v3644_v3 = vadd.f32 %v3643_v60, %v3369_v28  ;;  %v3535_v4 = vadd.f32 %v3534_v34, %v3379_v0  ;;  %v3707_v57 = vld [vmem:[%s6459_s11 + $0x8] sm:$0xff]  ;;  %v3709_v60 = vld [vmem:[%s6459_s11 + $0x18] sm:$0xff] }
 0x5fd   :  { %v4862_v22 = vpack.c.bf16 %v3691_v61, %v3687_v59  ;;  %v3537_v8 = vadd.f32 %v3536_v26, %v3379_v0  ;;  %v3688_v6 = vmax.f32 %v3642_v30, 0.0  ;;  %v3708_v59 = vld [vmem:[%s6459_s11 + $0x10] sm:$0xff]  ;;  %v3710_v61 = vld [vmem:[%s6459_s11 + $0x20] sm:$0x1] }
 0x5fe   :  { %v3647_v44 = vpop.f32.mrb[160].mxu1  ;;  %4875 = vmatprep.subr.bf16.mxu1 %v4874_v62  ;;  %v3689_v16 = vmax.f32 %v3644_v3, 0.0  ;;  %v3694_v12 = vmax.f32 %v3535_v4, 0.0 }
 0x5ff   :  { %v3648_v5 = vadd.f32 %v3647_v44, %v3374_v33  ;;  %v3649_v29 = vpop.f32.mrb[161].mxu1  ;;  %4877 = vmatpush1.bf16.msra.mxu1 %v4876_v58  ;;  %v3540_v40 = vpop.f32.mrb[164].mxu0  ;;  %4863 = vmatprep.subr.bf16.mxu0 %v4862_v22  ;;  %v3695_v15 = vmax.f32 %v3537_v8, 0.0 }
 0x600   :  { %v3650_v63 = vadd.f32 %v3649_v29, %v3374_v33  ;;  %v3541_v9 = vadd.f32 %v3540_v40, %v3384_v1  ;;  %v3542_v43 = vpop.f32.mrb[165].mxu0  ;;  %4865 = vmatpush1.bf16.msra.mxu0 %v4864_v39  ;;  %v3719_v39 = vpop.permute.xlu0 %3718 }
 0x601   :  { %v3692_v10 = vmax.f32 %v3648_v5, 0.0  ;;  %v3543_v14 = vadd.f32 %v3542_v43, %v3384_v1 }
 0x602   :  { %v3693_v17 = vmax.f32 %v3650_v63, 0.0  ;;  %v3653_v13 = vpop.f32.mrb[162].mxu1  ;;  %v3698_v18 = vmax.f32 %v3541_v9, 0.0 }
 0x603   :  { %v4880_v19 = vpack.c.bf16 %v3692_v10, %v3688_v6  ;;  %v3655_v20 = vpop.f32.mrb[163].mxu1  ;;  %v3699_v2 = vmax.f32 %v3543_v14, 0.0  ;;  %v3546_v21 = vpop.f32.mrb[166].mxu0  ;;  %v3654_v25 = vadd.f32 %v3653_v13, %v3379_v0 }
 0x604   :  { %v4878_v24 = vpack.c.bf16 %v3693_v17, %v3689_v16  ;;  %v4868_v38 = vpack.c.bf16 %v3698_v18, %v3694_v12  ;;  %v3548_v7 = vpop.f32.mrb[167].mxu0  ;;  %v3656_v31 = vadd.f32 %v3655_v20, %v3379_v0  ;;  %v3547_v33 = vadd.f32 %v3546_v21, %v3389_v23  ;;  %v3724_v0 = vpop.permute.xlu1 %3723 }
 0x605   :  { %v4866_v27 = vpack.c.bf16 %v3699_v2, %v3695_v15  ;;  %v3549_v28 = vadd.f32 %v3548_v7, %v3389_v23  ;;  %v3696_v42 = vmax.f32 %v3654_v25, 0.0  ;;  %v3729_v10 = vpop.permute.xlu0 %3728 }
 0x606   :  { %v3659_v32 = vpop.f32.mrb[164].mxu1  ;;  %4879 = vmatprep.subr.bf16.mxu1 %v4878_v24  ;;  %v3697_v46 = vmax.f32 %v3656_v31, 0.0  ;;  %v3702_v48 = vmax.f32 %v3547_v33, 0.0 }
 0x607   :  { %v3660_v35 = vadd.f32 %v3659_v32, %v3384_v1  ;;  %v3661_v36 = vpop.f32.mrb[165].mxu1  ;;  %4881 = vmatpush1.bf16.msra.mxu1 %v4880_v19  ;;  %v3703_v37 = vmax.f32 %v3549_v28, 0.0  ;;  %4867 = vmatprep.subr.bf16.mxu0 %v4866_v27 }
 0x608   :  { %v3662_v41 = vadd.f32 %v3661_v36, %v3384_v1  ;;  %4869 = vmatpush1.bf16.msra.mxu0 %v4868_v38  ;;  %v3734_v17 = vpop.permute.xlu1 %3733 }
 0x609   :  { %v3700_v45 = vmax.f32 %v3660_v35, 0.0  ;;  %4538 = vmatprep.subr.msk.mxu0 %vm3423_vm8, %v3703_v37 }
 0x60a   :  { %v3701_v47 = vmax.f32 %v3662_v41, 0.0  ;;  %v3665_v49 = vpop.f32.mrb[166].mxu1 }
 0x60b   :  { %v4884_v51 = vpack.c.bf16 %v3700_v45, %v3696_v42  ;;  %v3667_v52 = vpop.f32.mrb[167].mxu1  ;;  %v3666_v55 = vadd.f32 %v3665_v49, %v3389_v23  ;;  %v3739_v45 = vpop.permute.xlu0 %3738 }
 0x60c   :  { %v4882_v53 = vpack.c.bf16 %v3701_v47, %v3697_v46  ;;  %v3668_v54 = vadd.f32 %v3667_v52, %v3389_v23  ;;  %4539 = vmatpush1.msk.msra.mxu0 %vm3423_vm8, %v3702_v48 }
 0x60d   :  { %4540 = vmatmul.mubr.msk.f32.vlgmr.msra.gmra.mrb[168].mxu0 %vm3741_vm10, %v3706_v50  ;;  %v3704_v58 = vmax.f32 %v3666_v55, 0.0 }
 0x60e   :  { %v3705_v56 = vmax.f32 %v3668_v54, 0.0  ;;  %4883 = vmatprep.subr.bf16.mxu1 %v4882_v53  ;;  %3839 = vmatprep.mubr.f32.mxu0 %v5127_v11 }
 0x60f   :  { %4885 = vmatpush1.bf16.msra.mxu1 %v4884_v51 }
 0x610   :  { %4545 = vmatprep.subr.msk.mxu1 %vm3423_vm8, %v3705_v56 }
 0x611   :  { %4541 = vmatmul.mubr.msk.f32.gmra.mrb[170].mxu0 %vm3741_vm10, %v3707_v57 }
 0x612   :  { %3845 = vmatprep.mubr.f32.mxu0 %v5127_v11 }
 0x613   :  { %4546 = vmatpush1.msk.msra.mxu1 %vm3423_vm8, %v3704_v58 }
 0x614   :  { %4547 = vmatmul.mubr.msk.f32.vlgmr.msra.gmra.mrb[168].mxu1 %vm3741_vm10, %v3706_v50 }
 0x615   :  { %3934 = vmatprep.mubr.f32.mxu1 %v5127_v11  ;;  %4542 = vmatmul.mubr.msk.f32.gmra.mrb[172].mxu0 %vm3741_vm10, %v3708_v59 }
 0x616   :  { %3851 = vmatprep.mubr.f32.mxu0 %v5127_v11 }
 0x618   :  { %4548 = vmatmul.mubr.msk.f32.gmra.mrb[170].mxu1 %vm3741_vm10, %v3707_v57 }
 0x619   :  { %3940 = vmatprep.mubr.f32.mxu1 %v5127_v11  ;;  %4543 = vmatmul.mubr.msk.f32.gmra.mrb[174].mxu0 %vm3741_vm10, %v3709_v60 }
 0x61a   :  { %3857 = vmatprep.mubr.f32.mxu0 %v5127_v11 }
 0x61c   :  { %4549 = vmatmul.mubr.msk.f32.gmra.mrb[172].mxu1 %vm3741_vm10, %v3708_v59 }
 0x61d   :  { %3946 = vmatprep.mubr.f32.mxu1 %v5127_v11  ;;  %4544 = vmatmul.mubr.msk.f32.gmra.mrb[176].mxu0 %vm3741_vm10, %v3710_v61 }
 0x61e   :  { %4077 = vmatprep.mubr.f32.mxu0 %v5127_v11 }
 0x620   :  { %4550 = vmatmul.mubr.msk.f32.gmra.mrb[174].mxu1 %vm3741_vm10, %v3709_v60 }
 0x621   :  { %3952 = vmatprep.mubr.f32.mxu1 %v5127_v11 }
 0x624   :  { %4551 = vmatmul.mubr.msk.f32.gmra.mrb[176].mxu1 %vm3741_vm10, %v3710_v61 }
 0x625   :  { %4154 = vmatprep.mubr.f32.mxu1 %v5127_v11 }
 0x6e0   :  { %v3835_v34 = vpop.f32.mrb[168].mxu0 }
 0x6e1   :  { %v3837_v62 = vpop.f32.mrb[169].mxu0  ;;  %v3836_v26 = vadd.f32 %v3835_v34, %v3719_v39 }
 0x6e2   :  { %v3838_v30 = vadd.f32 %v3837_v62, %v3719_v39 }
 0x6e3   :  { %v3959_v4 = vmax.f32 %v3836_v26, 0.0  ;;  %v3979_v26 = vld [vmem:[%s6460_s13] sm:$0xff] }
 0x6e4   :  { %v3841_v22 = vpop.f32.mrb[170].mxu0  ;;  %v3960_v8 = vmax.f32 %v3838_v30, 0.0 }
 0x6e5   :  { %v3842_v1 = vadd.f32 %v3841_v22, %v3724_v0  ;;  %v3843_v3 = vpop.f32.mrb[171].mxu0 }
 0x6e6   :  { %v3844_v44 = vadd.f32 %v3843_v3, %v3724_v0 }
 0x6e7   :  { %v3930_v5 = vpop.f32.mrb[168].mxu1  ;;  %v3963_v29 = vmax.f32 %v3842_v1, 0.0 }
 0x6e8   :  { %v3932_v40 = vpop.f32.mrb[169].mxu1  ;;  %v3964_v63 = vmax.f32 %v3844_v44, 0.0  ;;  %v3847_v9 = vpop.f32.mrb[172].mxu0  ;;  %v3931_v14 = vadd.f32 %v3930_v5, %v3719_v39 }
 0x6e9   :  { %v4888_v43 = vpack.c.bf16 %v3963_v29, %v3959_v4  ;;  %v3849_v6 = vpop.f32.mrb[173].mxu0  ;;  %v3933_v12 = vadd.f32 %v3932_v40, %v3719_v39  ;;  %v3848_v18 = vadd.f32 %v3847_v9, %v3729_v10  ;;  %v3980_v4 = vld [vmem:[%s6460_s13 + $0x8] sm:$0xff]  ;;  %v3986_v40 = vpop.permute.xlu1 %3985 }
 0x6ea   :  { %v4886_v16 = vpack.c.bf16 %v3964_v63, %v3960_v8  ;;  %v3850_v20 = vadd.f32 %v3849_v6, %v3729_v10  ;;  %v3961_v38 = vmax.f32 %v3931_v14, 0.0  ;;  %v3991_v9 = vpop.permute.xlu0 %3990 }
 0x6eb   :  { %v3936_v13 = vpop.f32.mrb[170].mxu1  ;;  %v3962_v27 = vmax.f32 %v3933_v12, 0.0  ;;  %v3967_v31 = vmax.f32 %v3848_v18, 0.0 }
 0x6ec   :  { %v3937_v19 = vadd.f32 %v3936_v13, %v3724_v0  ;;  %v3938_v15 = vpop.f32.mrb[171].mxu1  ;;  %v3853_v2 = vpop.f32.mrb[174].mxu0  ;;  %4887 = vmatprep.subr.bf16.mxu0 %v4886_v16  ;;  %v3968_v36 = vmax.f32 %v3850_v20, 0.0 }
 0x6ed   :  { %v3939_v21 = vadd.f32 %v3938_v15, %v3724_v0  ;;  %v3854_v23 = vadd.f32 %v3853_v2, %v3734_v17  ;;  %v3855_v24 = vpop.f32.mrb[175].mxu0  ;;  %4889 = vmatpush1.bf16.msra.mxu0 %v4888_v43 }
 0x6ee   :  { %v3965_v7 = vmax.f32 %v3937_v19, 0.0  ;;  %v3856_v25 = vadd.f32 %v3855_v24, %v3734_v17 }
 0x6ef   :  { %v3966_v28 = vmax.f32 %v3939_v21, 0.0  ;;  %v3942_v32 = vpop.f32.mrb[172].mxu1  ;;  %v3971_v33 = vmax.f32 %v3854_v23, 0.0 }
 0x6f0   :  { %v4896_v35 = vpack.c.bf16 %v3965_v7, %v3961_v38  ;;  %v3944_v37 = vpop.f32.mrb[173].mxu1  ;;  %v3972_v41 = vmax.f32 %v3856_v25, 0.0  ;;  %v3859_v42 = vpop.f32.mrb[176].mxu0  ;;  %v3943_v49 = vadd.f32 %v3942_v32, %v3729_v10  ;;  %v4175_v25 = vld [vmem:[%s6461_s15] sm:$0x7] }
 0x6f1   :  { %v4894_v46 = vpack.c.bf16 %v3966_v28, %v3962_v27  ;;  %v4892_v47 = vpack.c.bf16 %v3971_v33, %v3967_v31  ;;  %v3861_v48 = vpop.f32.mrb[177].mxu0  ;;  %v3945_v52 = vadd.f32 %v3944_v37, %v3729_v10  ;;  %v3860_v54 = vadd.f32 %v3859_v42, %v3739_v45 }
 0x6f2   :  { %v4890_v50 = vpack.c.bf16 %v3972_v41, %v3968_v36  ;;  %v3862_v51 = vadd.f32 %v3861_v48, %v3739_v45  ;;  %v3969_v59 = vmax.f32 %v3943_v49, 0.0  ;;  %v4180_v36 = vpop.permute.xlu1 %4179 }
 0x6f3   :  { %v3948_v53 = vpop.f32.mrb[174].mxu1  ;;  %4895 = vmatprep.subr.bf16.mxu1 %v4894_v46  ;;  %v3970_v61 = vmax.f32 %v3945_v52, 0.0  ;;  %v3975_v62 = vmax.f32 %v3860_v54, 0.0 }
 0x6f4   :  { %v3949_v55 = vadd.f32 %v3948_v53, %v3734_v17  ;;  %v3950_v56 = vpop.f32.mrb[175].mxu1  ;;  %4897 = vmatpush1.bf16.msra.mxu1 %v4896_v35  ;;  %v3976_v57 = vmax.f32 %v3862_v51, 0.0  ;;  %4891 = vmatprep.subr.bf16.mxu0 %v4890_v50 }
 0x6f5   :  { %v3951_v58 = vadd.f32 %v3950_v56, %v3734_v17  ;;  %4893 = vmatpush1.bf16.msra.mxu0 %v4892_v47 }
 0x6f6   :  { %v3973_v60 = vmax.f32 %v3949_v55, 0.0  ;;  %4552 = vmatprep.subr.msk.mxu0 %vm4000_vm11, %v3976_v57 }
 0x6f7   :  { %v3974_v34 = vmax.f32 %v3951_v58, 0.0  ;;  %v3954_v39 = vpop.f32.mrb[176].mxu1 }
 0x6f8   :  { %v4900_v0 = vpack.c.bf16 %v3973_v60, %v3969_v59  ;;  %v3956_v30 = vpop.f32.mrb[177].mxu1  ;;  %v3955_v3 = vadd.f32 %v3954_v39, %v3739_v45 }
 0x6f9   :  { %v4898_v22 = vpack.c.bf16 %v3974_v34, %v3970_v61  ;;  %v3957_v1 = vadd.f32 %v3956_v30, %v3739_v45  ;;  %4553 = vmatpush1.msk.msra.mxu0 %vm4000_vm11, %v3975_v62 }
 0x6fa   :  { %4554 = vmatmul.mubr.msk.f32.vlgmr.msra.gmra.mrb[178].mxu0 %vm3993_vm12, %v3979_v26  ;;  %v3977_v5 = vmax.f32 %v3955_v3, 0.0 }
 0x6fb   :  { %v3978_v44 = vmax.f32 %v3957_v1, 0.0  ;;  %4899 = vmatprep.subr.bf16.mxu1 %v4898_v22  ;;  %4083 = vmatprep.mubr.f32.mxu0 %v5127_v11 }
 0x6fc   :  { %4901 = vmatpush1.bf16.msra.mxu1 %v4900_v0 }
 0x6fd   :  { %4556 = vmatprep.subr.msk.mxu1 %vm4000_vm11, %v3978_v44 }
 0x6fe   :  { %4555 = vmatmul.mubr.msk.f32.gmra.mrb[180].mxu0 %vm3993_vm12, %v3980_v4 }
 0x6ff   :  { %4250 = vmatprep.mubr.f32.mxu0 %v5127_v11 }
 0x700   :  { %4557 = vmatpush1.msk.msra.mxu1 %vm4000_vm11, %v3977_v5 }
 0x701   :  { %4558 = vmatmul.mubr.msk.f32.vlgmr.msra.gmra.mrb[178].mxu1 %vm3993_vm12, %v3979_v26 }
 0x702   :  { %4160 = vmatprep.mubr.f32.mxu1 %v5127_v11 }
 0x705   :  { %4559 = vmatmul.mubr.msk.f32.gmra.mrb[180].mxu1 %vm3993_vm12, %v3980_v4 }
 0x706   :  { %4321 = vmatprep.mubr.f32.mxu1 %v5127_v11 }
 0x7cd   :  { %v4079_v29 = vpop.f32.mrb[178].mxu0 }
 0x7ce   :  { %v4081_v8 = vpop.f32.mrb[179].mxu0  ;;  %v4080_v63 = vadd.f32 %v4079_v29, %v3986_v40 }
 0x7cf   :  { %v4082_v43 = vadd.f32 %v4081_v8, %v3986_v40 }
 0x7d0   :  { %v4167_v17 = vmax.f32 %v4080_v63, 0.0 }
 0x7d1   :  { %v4085_v6 = vpop.f32.mrb[180].mxu0  ;;  %v4168_v18 = vmax.f32 %v4082_v43, 0.0 }
 0x7d2   :  { %v4086_v10 = vadd.f32 %v4085_v6, %v3991_v9  ;;  %v4087_v14 = vpop.f32.mrb[181].mxu0 }
 0x7d3   :  { %v4088_v16 = vadd.f32 %v4087_v14, %v3991_v9 }
 0x7d4   :  { %v4156_v12 = vpop.f32.mrb[178].mxu1  ;;  %v4171_v13 = vmax.f32 %v4086_v10, 0.0 }
 0x7d5   :  { %v4158_v19 = vpop.f32.mrb[179].mxu1  ;;  %v4172_v15 = vmax.f32 %v4088_v16, 0.0  ;;  %v4157_v2 = vadd.f32 %v4156_v12, %v3986_v40 }
 0x7d6   :  { %v4904_v20 = vpack.c.bf16 %v4171_v13, %v4167_v17  ;;  %v4159_v11 = vadd.f32 %v4158_v19, %v3986_v40 }
 0x7d7   :  { %v4902_v21 = vpack.c.bf16 %v4172_v15, %v4168_v18  ;;  %v4169_v27 = vmax.f32 %v4157_v2, 0.0 }
 0x7d8   :  { %v4162_v23 = vpop.f32.mrb[180].mxu1  ;;  %v4170_v31 = vmax.f32 %v4159_v11, 0.0 }
 0x7d9   :  { %v4163_v24 = vadd.f32 %v4162_v23, %v3991_v9  ;;  %v4164_v38 = vpop.f32.mrb[181].mxu1  ;;  %4903 = vmatprep.subr.bf16.mxu0 %v4902_v21 }
 0x7da   :  { %v4165_v7 = vadd.f32 %v4164_v38, %v3991_v9  ;;  %4905 = vmatpush1.bf16.msra.mxu0 %v4904_v20 }
 0x7db   :  { %v4173_v28 = vmax.f32 %v4163_v24, 0.0 }
 0x7dc   :  { %v4174_v32 = vmax.f32 %v4165_v7, 0.0 }
 0x7dd   :  { %v4908_v33 = vpack.c.bf16 %v4173_v28, %v4169_v27  ;;  %4560 = vmatmul.mubr.msk.f32.vlgmr.msra.gmra.mrb[182].mxu0 %vm4182_vm13, %v4175_v25 }
 0x7de   :  { %v4906_v35 = vpack.c.bf16 %v4174_v32, %v4170_v31 }
 0x7e0   :  { %4907 = vmatprep.subr.bf16.mxu1 %v4906_v35 }
 0x7e1   :  { %4909 = vmatpush1.bf16.msra.mxu1 %v4908_v33 }
 0x7e4   :  { %4561 = vmatmul.mubr.msk.f32.vlgmr.msra.gmra.mrb[182].mxu1 %vm4182_vm13, %v4175_v25 }
 0x8b0   :  { %v4252_v37 = vpop.f32.mrb[182].mxu0 }
 0x8b1   :  { %v4253_v41 = vadd.f32 %v4252_v37, %v4180_v36  ;;  %v4254_v42 = vpop.f32.mrb[183].mxu0 }
 0x8b2   :  { %v4255_v45 = vadd.f32 %v4254_v42, %v4180_v36 }
 0x8b3   :  { %5117 = vtanh.f32 %v4253_v41 }
 0x8b4   :  { %5119 = vtanh.f32 %v4255_v45 }
 0x8b7   :  { %v4323_v46 = vpop.f32.mrb[182].mxu1 }
 0x8b8   :  { %v4324_v47 = vadd.f32 %v4323_v46, %v4180_v36  ;;  %v4325_v48 = vpop.f32.mrb[183].mxu1 }
 0x8b9   :  { %v4326_v49 = vadd.f32 %v4325_v48, %v4180_v36 }
 0x8ba   :  { %5121 = vtanh.f32 %v4324_v47 }
 0x8bb   :  { %5123 = vtanh.f32 %v4326_v49 }
 0x8bd   :  { %v5118_v50 = vpop.eup %5117 }
 0x8be   :  { %v5120_v51 = vpop.eup %5119 }
 0x8bf   :  { %v4336_v52 = vcombine.low %v5118_v50, %v5120_v51 }
 0x8c1   :  { %4340 = vst [vmem:[%s6462_s18] sm:$0x77] %v4336_v52 }
 0x8c4   :  { %v5122_v53 = vpop.eup %5121 }
 0x8c5   :  { %v5124_v54 = vpop.eup %5123 }
 0x8c6   :  { %v4337_v55 = vcombine.low %v5122_v53, %v5124_v54 }
 0x8c8   :  { %4341 = vst [vmem:[%s6462_s18 + $0x8] sm:$0x77] %v4337_v55 }

</bundles_post_ra>
